<compile_context>
chip_gen: v5e
topology: v5e:2x2
jax: 0.10.0
libtpu: 0.0.40
codegen_flags: <defaults>
</compile_context>

<pallas_src>
import jax
import jax.numpy as jnp
from jax import lax
from jax.experimental import pallas as pl

# ------------------------- configuration (small, deterministic) -------------------------
B = 2                      # batch
SEQ_LEN = 8                # question sequence length
T = 4                      # num_virtual_tokens
AMORT_ENC_DIM = 32         # question-encoder hidden size (mlp_hidden_size)
TOKEN_DIM = 64             # baselm_token_dim (hidden_size)
NUM_HEADS = 8              # hard-coded in Aggregator.__init__
DIM_HEAD = 96              # hard-coded in Aggregator.__init__
DIM_HEAD_PAD = ((DIM_HEAD + 127) // 128) * 128   # 128: lane-aligned per-head slot
NUM_XATTN_BLOCKS = 2       # config.num_cross_attention_blocks
PROMPT_S, PROMPT_N = 3, 5  # prompt_set is (s, n, d); rearranged to (b, s*n, d)
VOCAB = 100
LN_EPS = 1e-5
R = T * B                  # number of (virtual-token, batch) rows


# ================================ fused forward kernel ==================================
# TODO(synk): CrossAttentionBlock source was not provided; implemented as the standard
# pre-norm multi-head cross-attention with residual (q from `condition`, k/v from the prompt
# context); dropout_p=0.0 so attn/proj dropout are identity.
def aggregator_kernel(
    x_ref, ctx_ref,
    # per-virtual-token MLP stack (row-expanded / stacked over T)
    g_rows_ref, b_rows_ref, mask_ref, w1_ref, b1_rows_ref, w2_ref, wsk_ref, bout_rows_ref,
    # cross-attention blocks (stacked over NUM_XATTN_BLOCKS)
    ln1_g_ref, ln1_b_ref, lnc_g_ref, lnc_b_ref,
    wq_ref, bq_ref, wk_ref, bk_ref, wv_ref, bv_ref, wo_ref, bo_ref,
    o_ref,
):
    f32, bf16 = jnp.float32, jnp.bfloat16

    # -------- stage 1: per-virtual-token MLPs on all T*B rows as one dense block --------
    x = x_ref[...].astype(f32)                                    # (R, De), rows are (t, b)
    mu = jnp.mean(x, axis=-1, keepdims=True)
    var = jnp.mean(jnp.square(x - mu), axis=-1, keepdims=True)
    xn = (x - mu) * lax.rsqrt(var + LN_EPS) * g_rows_ref[...] + b_rows_ref[...]

    n_tok = w1_ref.shape[0]
    # h1 = tanh(LN(x) @ W1_t + b1_t) with per-token weights, via disjoint row masks.
    h1 = b1_rows_ref[...]
    for t in range(n_tok):                                        # static unroll (T=4)
        m = mask_ref[t]                                           # (R, 1) one-hot row mask
        h1 = h1 + jnp.dot((xn * m).astype(bf16), w1_ref[t],
                          preferred_element_type=f32)
    h1 = jnp.tanh(h1)

    # condition_init = skip_t(x) + h1 @ W2_t  (+ fused biases);
    # NOTE: skip and the second MLP layer are kept as separate matmuls (no minor-dim concat)
    # to stay on guaranteed 2D-matmul lowering paths — the fusion would save ~1 MXU push.
    cond = bout_rows_ref[...]                                     # bsk_t + b2_t per row
    for t in range(n_tok):
        m = mask_ref[t]
        cond = cond + jnp.dot((h1 * m).astype(bf16), w2_ref[t],
                              preferred_element_type=f32)
        cond = cond + jnp.dot((x * m).astype(bf16), wsk_ref[t],
                              preferred_element_type=f32)
    # cond: (R, D) f32 — condition rows, kept resident in VMEM across the attention blocks.

    # -------- stage 2: cross-attention blocks (context shared by every batch row) --------
    ctx = ctx_ref[...].astype(f32)                                # (M, D), unbroadcast
    cmu = jnp.mean(ctx, axis=-1, keepdims=True)
    cvar = jnp.mean(jnp.square(ctx - cmu), axis=-1, keepdims=True)
    ctx_hat = (ctx - cmu) * lax.rsqrt(cvar + LN_EPS)              # affine applied per block

    n_blocks = wq_ref.shape[0]
    n_heads = wo_ref.shape[1]
    dhp = wo_ref.shape[2]                                         # padded head dim (128)
    for blk in range(n_blocks):                                   # static unroll (2 blocks)
        # pre-norm on queries
        qmu = jnp.mean(cond, axis=-1, keepdims=True)
        qvar = jnp.mean(jnp.square(cond - qmu), axis=-1, keepdims=True)
        xq = (cond - qmu) * lax.rsqrt(qvar + LN_EPS) * ln1_g_ref[blk] + ln1_b_ref[blk]
        # context norm: computed once per block (NOT per batch element)
        cn = ctx_hat * lnc_g_ref[blk] + lnc_b_ref[blk]

        # fused lane-dense projections (attention scale already folded into wq / bq)
        q = jnp.dot(xq.astype(bf16), wq_ref[blk], preferred_element_type=f32) + bq_ref[blk]
        k = jnp.dot(cn.astype(bf16), wk_ref[blk], preferred_element_type=f32) + bk_ref[blk]
        v = jnp.dot(cn.astype(bf16), wv_ref[blk], preferred_element_type=f32) + bv_ref[blk]

        acc = jnp.zeros_like(cond)
        for h in range(n_heads):                                  # 128-aligned head slices
            lo = h * dhp
            qh = q[:, lo:lo + dhp]                                # (R, 128), pad cols are 0
            kh = k[:, lo:lo + dhp]                                # (M, 128), pad cols are 0
            vh = v[:, lo:lo + dhp]
            s = lax.dot_general(qh.astype(bf16), kh.astype(bf16),
                                (((1,), (1,)), ((), ())),
                                preferred_element_type=f32)       # (R, M), pre-scaled
            s = s - jnp.max(s, axis=-1, keepdims=True)
            e = jnp.exp(s)
            p = e * pl.reciprocal(jnp.sum(e, axis=-1, keepdims=True), approx=True)
            oh = jnp.dot(p.astype(bf16), vh.astype(bf16),
                         preferred_element_type=f32)              # (R, 128)
            acc = acc + jnp.dot(oh.astype(bf16), wo_ref[blk, h],
                                preferred_element_type=f32)       # (R, D)
        cond = cond + acc + bo_ref[blk]                           # residual

    o_ref[...] = cond.astype(o_ref.dtype)                         # one dense (R, D) store


# ================================ parameter construction =================================
def make_params(key):
    ks = iter(jax.random.split(key, 64))
    n = lambda shape, s=0.02: (s * jax.random.normal(next(ks), shape)).astype(jnp.float32)
    De, Dt, H, DH, DHP = AMORT_ENC_DIM, TOKEN_DIM, NUM_HEADS, DIM_HEAD, DIM_HEAD_PAD

    # ---- per-virtual-token MLPs: LayerNorm -> Linear -> Tanh -> Linear, + Linear skip ----
    ln_g = jnp.ones((T, De), jnp.float32)
    ln_b = jnp.zeros((T, De), jnp.float32)
    w1, b1 = n((T, De, Dt)), n((T, Dt))
    w2, b2 = n((T, Dt, Dt)), n((T, Dt))
    wsk, bsk = n((T, De, Dt)), n((T, Dt))          # skip is a Linear (De != Dt)

    rep = lambda a: jnp.repeat(a, B, axis=0)       # (T, F) -> (T*B, F): row r = t*B + b
    masks = jnp.repeat(jnp.eye(T, dtype=jnp.float32), B, axis=1).reshape(T, R, 1)
    mlp = dict(
        g_rows=rep(ln_g), b_rows=rep(ln_b),
        w1=w1.astype(jnp.bfloat16), b1_rows=rep(b1),
        w2=w2.astype(jnp.bfloat16),
        wsk=wsk.astype(jnp.bfloat16),
        bout_rows=rep(bsk + b2),                   # fused output biases, per row
        masks=masks,
    )

    # ---- cross-attention blocks: fused, head-padded, scale-folded weights ----
    scale = DH ** -0.5
    def make_block():
        wq, bq = n((H, Dt, DH)), n((H, DH))
        wk, bk = n((H, Dt, DH)), n((H, DH))
        wv, bv = n((H, Dt, DH)), n((H, DH))
        wo, bo = n((H, DH, Dt)), n((Dt,))
        pad_w = lambda w: jnp.pad(w, ((0, 0), (0, 0), (0, DHP - DH)))     # (H, Dt, DHP)
        pad_b = lambda b: jnp.pad(b, ((0, 0), (0, DHP - DH)))             # (H, DHP)
        fuse_w = lambda w: jnp.transpose(pad_w(w), (1, 0, 2)).reshape(Dt, H * DHP)
        fuse_b = lambda b: pad_b(b).reshape(1, H * DHP)
        return dict(
            ln1_g=jnp.ones((1, Dt), jnp.float32), ln1_b=jnp.zeros((1, Dt), jnp.float32),
            lnc_g=jnp.ones((1, Dt), jnp.float32), lnc_b=jnp.zeros((1, Dt), jnp.float32),
            wq=fuse_w(wq * scale), bq=fuse_b(bq * scale),   # attention scale folded in
            wk=fuse_w(wk), bk=fuse_b(bk),
            wv=fuse_w(wv), bv=fuse_b(bv),
            wo=jnp.pad(wo, ((0, 0), (0, DHP - DH), (0, 0))),              # (H, DHP, Dt)
            bo=bo.reshape(1, Dt),
        )
    blocks = [make_block() for _ in range(NUM_XATTN_BLOCKS)]
    stack = lambda name: jnp.stack([blk[name] for blk in blocks], axis=0)
    xattn = dict(
        ln1_g=stack("ln1_g"), ln1_b=stack("ln1_b"),
        lnc_g=stack("lnc_g"), lnc_b=stack("lnc_b"),
        wq=stack("wq").astype(jnp.bfloat16), bq=stack("bq"),
        wk=stack("wk").astype(jnp.bfloat16), bk=stack("bk"),
        wv=stack("wv").astype(jnp.bfloat16), bv=stack("bv"),
        wo=stack("wo").astype(jnp.bfloat16), bo=stack("bo"),
    )

    return {"embed": n((VOCAB, AMORT_ENC_DIM), 0.1), "mlp": mlp, "xattn": xattn}


# ===================================== forward ===========================================
@jax.jit
def aggregator_forward(params, question_indices, qa_attention, prompt_set):
    # TODO(synk): the original question_encoder is an external HF model; replaced here by a
    # deterministic embedding lookup masked by qa_attention (plain-JAX glue).
    hidden = params["embed"][question_indices] * qa_attention[..., None]   # (B, L, De)

    # rows for the per-virtual-token MLPs: hidden_state[:, i, :] for i < T, t-major layout
    x_rows = jnp.transpose(hidden[:, :T, :], (1, 0, 2)).reshape(R, AMORT_ENC_DIM)

    # batch_prompt_set: 'b s n d -> b (s n) d'; the broadcast over batch is not materialized
    # because every batch row attends over the same context (K/V computed once in-kernel).
    s, npmt, d = prompt_set.shape
    ctx = prompt_set.reshape(s * npmt, d)                                  # (M, D)

    m, xa = params["mlp"], params["xattn"]
    out_flat = pl.pallas_call(
        aggregator_kernel,
        out_shape=jax.ShapeDtypeStruct((R, TOKEN_DIM), jnp.float32),
    )(x_rows, ctx,
      m["g_rows"], m["b_rows"], m["masks"], m["w1"], m["b1_rows"], m["w2"], m["wsk"],
      m["bout_rows"],
      xa["ln1_g"], xa["ln1_b"], xa["lnc_g"], xa["lnc_b"],
      xa["wq"], xa["bq"], xa["wk"], xa["bk"], xa["wv"], xa["bv"], xa["wo"], xa["bo"])

    # rows are (t, b) t-major -> (B, T, D)
    return jnp.transpose(out_flat.reshape(T, B, TOKEN_DIM), (1, 0, 2))


if __name__ == "__main__":
    key = jax.random.PRNGKey(0)
    k_param, k_idx, k_prompt = jax.random.split(key, 3)

    params = make_params(k_param)
    question_indices = jax.random.randint(k_idx, (B, SEQ_LEN), 0, VOCAB)
    qa_attention = jnp.ones((B, SEQ_LEN), jnp.float32)
    prompt_set = (0.1 * jax.random.normal(k_prompt, (PROMPT_S, PROMPT_N, TOKEN_DIM))
                  ).astype(jnp.float32)

    out = aggregator_forward(params, question_indices, qa_attention, prompt_set)
    out = jax.block_until_ready(out)
    assert out.shape == (B, T, TOKEN_DIM), out.shape
    assert bool(jnp.all(jnp.isfinite(out)))
    print("KERNEL_OK")
</pallas_src>

<mosaic_0001>
module attributes {stable_mosaic.version = 11 : i64} {
  func.func @aggregator_kernel(%arg0: memref<8x32xf32, #tpu.memory_space<vmem>>, %arg1: memref<15x64xf32, #tpu.memory_space<vmem>>, %arg2: memref<8x32xf32, #tpu.memory_space<vmem>>, %arg3: memref<8x32xf32, #tpu.memory_space<vmem>>, %arg4: memref<4x8x1xf32, #tpu.memory_space<vmem>>, %arg5: memref<4x32x64xbf16, #tpu.memory_space<vmem>>, %arg6: memref<8x64xf32, #tpu.memory_space<vmem>>, %arg7: memref<4x64x64xbf16, #tpu.memory_space<vmem>>, %arg8: memref<4x32x64xbf16, #tpu.memory_space<vmem>>, %arg9: memref<8x64xf32, #tpu.memory_space<vmem>>, %arg10: memref<2x1x64xf32, #tpu.memory_space<vmem>>, %arg11: memref<2x1x64xf32, #tpu.memory_space<vmem>>, %arg12: memref<2x1x64xf32, #tpu.memory_space<vmem>>, %arg13: memref<2x1x64xf32, #tpu.memory_space<vmem>>, %arg14: memref<2x64x1024xbf16, #tpu.memory_space<vmem>>, %arg15: memref<2x1x1024xf32, #tpu.memory_space<vmem>>, %arg16: memref<2x64x1024xbf16, #tpu.memory_space<vmem>>, %arg17: memref<2x1x1024xf32, #tpu.memory_space<vmem>>, %arg18: memref<2x64x1024xbf16, #tpu.memory_space<vmem>>, %arg19: memref<2x1x1024xf32, #tpu.memory_space<vmem>>, %arg20: memref<2x8x128x64xbf16, #tpu.memory_space<vmem>>, %arg21: memref<2x1x64xf32, #tpu.memory_space<vmem>>, %arg22: memref<8x64xf32, #tpu.memory_space<vmem>>) attributes {dimension_semantics = [], scalar_prefetch = 0 : i64, scratch_operands = 0 : i64, tpu.core_type = #tpu.core_type<tc>} {
    %c0 = arith.constant 0 : index
    %c0_0 = arith.constant 0 : index
    %0 = vector.load %arg0[%c0, %c0_0] : memref<8x32xf32, #tpu.memory_space<vmem>>, vector<8x32xf32>
    %cst = arith.constant dense<0.000000e+00> : vector<8xf32>
    %1 = vector.multi_reduction <add>, %0, %cst [1] : vector<8x32xf32> to vector<8xf32>
    %2 = vector.shape_cast %1 : vector<8xf32> to vector<8x1xf32>
    %cst_1 = arith.constant 3.200000e+01 : f32
    %3 = vector.broadcast %cst_1 : f32 to vector<8x1xf32>
    %4 = arith.divf %2, %3 : vector<8x1xf32>
    %5 = vector.broadcast %4 : vector<8x1xf32> to vector<8x32xf32>
    %6 = arith.subf %0, %5 : vector<8x32xf32>
    %7 = arith.mulf %6, %6 : vector<8x32xf32>
    %cst_2 = arith.constant dense<0.000000e+00> : vector<8xf32>
    %8 = vector.multi_reduction <add>, %7, %cst_2 [1] : vector<8x32xf32> to vector<8xf32>
    %9 = vector.shape_cast %8 : vector<8xf32> to vector<8x1xf32>
    %cst_3 = arith.constant 3.200000e+01 : f32
    %10 = vector.broadcast %cst_3 : f32 to vector<8x1xf32>
    %11 = arith.divf %9, %10 : vector<8x1xf32>
    %12 = vector.broadcast %4 : vector<8x1xf32> to vector<8x32xf32>
    %13 = arith.subf %0, %12 : vector<8x32xf32>
    %cst_4 = arith.constant 9.99999974E-6 : f32
    %14 = vector.broadcast %cst_4 : f32 to vector<8x1xf32>
    %15 = arith.addf %11, %14 : vector<8x1xf32>
    %16 = math.rsqrt %15 : vector<8x1xf32>
    %17 = vector.broadcast %16 : vector<8x1xf32> to vector<8x32xf32>
    %18 = arith.mulf %13, %17 : vector<8x32xf32>
    %c0_5 = arith.constant 0 : index
    %c0_6 = arith.constant 0 : index
    %19 = vector.load %arg2[%c0_5, %c0_6] : memref<8x32xf32, #tpu.memory_space<vmem>>, vector<8x32xf32>
    %20 = arith.mulf %18, %19 : vector<8x32xf32>
    %c0_7 = arith.constant 0 : index
    %c0_8 = arith.constant 0 : index
    %21 = vector.load %arg3[%c0_7, %c0_8] : memref<8x32xf32, #tpu.memory_space<vmem>>, vector<8x32xf32>
    %22 = arith.addf %20, %21 : vector<8x32xf32>
    %c0_9 = arith.constant 0 : index
    %c0_10 = arith.constant 0 : index
    %23 = vector.load %arg6[%c0_9, %c0_10] : memref<8x64xf32, #tpu.memory_space<vmem>>, vector<8x64xf32>
    %c0_11 = arith.constant 0 : index
    %c0_12 = arith.constant 0 : index
    %c0_13 = arith.constant 0 : index
    %24 = vector.load %arg4[%c0_11, %c0_12, %c0_13] : memref<4x8x1xf32, #tpu.memory_space<vmem>>, vector<1x8x1xf32>
    %25 = vector.shape_cast %24 : vector<1x8x1xf32> to vector<8x1xf32>
    %26 = vector.broadcast %25 : vector<8x1xf32> to vector<8x32xf32>
    %27 = arith.mulf %22, %26 : vector<8x32xf32>
    %28 = arith.truncf %27 : vector<8x32xf32> to vector<8x32xbf16>
    %c0_14 = arith.constant 0 : index
    %c0_15 = arith.constant 0 : index
    %c0_16 = arith.constant 0 : index
    %29 = vector.load %arg5[%c0_14, %c0_15, %c0_16] : memref<4x32x64xbf16, #tpu.memory_space<vmem>>, vector<1x32x64xbf16>
    %30 = vector.shape_cast %29 : vector<1x32x64xbf16> to vector<32x64xbf16>
    %cst_17 = arith.constant dense<0.000000e+00> : vector<8x64xf32>
    %31 = tpu.matmul %28, %30, %cst_17 {dimension_numbers = #tpu.dot_dimension_numbers<[1], [0], [0], [1], [0, 0, 1, 1], [], []>} : vector<8x32xbf16>, vector<32x64xbf16>, vector<8x64xf32> -> vector<8x64xf32>
    %32 = arith.addf %23, %31 : vector<8x64xf32>
    %c1 = arith.constant 1 : index
    %c0_18 = arith.constant 0 : index
    %c0_19 = arith.constant 0 : index
    %33 = vector.load %arg4[%c1, %c0_18, %c0_19] : memref<4x8x1xf32, #tpu.memory_space<vmem>>, vector<1x8x1xf32>
    %34 = vector.shape_cast %33 : vector<1x8x1xf32> to vector<8x1xf32>
    %35 = vector.broadcast %34 : vector<8x1xf32> to vector<8x32xf32>
    %36 = arith.mulf %22, %35 : vector<8x32xf32>
    %37 = arith.truncf %36 : vector<8x32xf32> to vector<8x32xbf16>
    %c1_20 = arith.constant 1 : index
    %c0_21 = arith.constant 0 : index
    %c0_22 = arith.constant 0 : index
    %38 = vector.load %arg5[%c1_20, %c0_21, %c0_22] : memref<4x32x64xbf16, #tpu.memory_space<vmem>>, vector<1x32x64xbf16>
    %39 = vector.shape_cast %38 : vector<1x32x64xbf16> to vector<32x64xbf16>
    %cst_23 = arith.constant dense<0.000000e+00> : vector<8x64xf32>
    %40 = tpu.matmul %37, %39, %cst_23 {dimension_numbers = #tpu.dot_dimension_numbers<[1], [0], [0], [1], [0, 0, 1, 1], [], []>} : vector<8x32xbf16>, vector<32x64xbf16>, vector<8x64xf32> -> vector<8x64xf32>
    %41 = arith.addf %32, %40 : vector<8x64xf32>
    %c2 = arith.constant 2 : index
    %c0_24 = arith.constant 0 : index
    %c0_25 = arith.constant 0 : index
    %42 = vector.load %arg4[%c2, %c0_24, %c0_25] : memref<4x8x1xf32, #tpu.memory_space<vmem>>, vector<1x8x1xf32>
    %43 = vector.shape_cast %42 : vector<1x8x1xf32> to vector<8x1xf32>
    %44 = vector.broadcast %43 : vector<8x1xf32> to vector<8x32xf32>
    %45 = arith.mulf %22, %44 : vector<8x32xf32>
    %46 = arith.truncf %45 : vector<8x32xf32> to vector<8x32xbf16>
    %c2_26 = arith.constant 2 : index
    %c0_27 = arith.constant 0 : index
    %c0_28 = arith.constant 0 : index
    %47 = vector.load %arg5[%c2_26, %c0_27, %c0_28] : memref<4x32x64xbf16, #tpu.memory_space<vmem>>, vector<1x32x64xbf16>
    %48 = vector.shape_cast %47 : vector<1x32x64xbf16> to vector<32x64xbf16>
    %cst_29 = arith.constant dense<0.000000e+00> : vector<8x64xf32>
    %49 = tpu.matmul %46, %48, %cst_29 {dimension_numbers = #tpu.dot_dimension_numbers<[1], [0], [0], [1], [0, 0, 1, 1], [], []>} : vector<8x32xbf16>, vector<32x64xbf16>, vector<8x64xf32> -> vector<8x64xf32>
    %50 = arith.addf %41, %49 : vector<8x64xf32>
    %c3 = arith.constant 3 : index
    %c0_30 = arith.constant 0 : index
    %c0_31 = arith.constant 0 : index
    %51 = vector.load %arg4[%c3, %c0_30, %c0_31] : memref<4x8x1xf32, #tpu.memory_space<vmem>>, vector<1x8x1xf32>
    %52 = vector.shape_cast %51 : vector<1x8x1xf32> to vector<8x1xf32>
    %53 = vector.broadcast %52 : vector<8x1xf32> to vector<8x32xf32>
    %54 = arith.mulf %22, %53 : vector<8x32xf32>
    %55 = arith.truncf %54 : vector<8x32xf32> to vector<8x32xbf16>
    %c3_32 = arith.constant 3 : index
    %c0_33 = arith.constant 0 : index
    %c0_34 = arith.constant 0 : index
    %56 = vector.load %arg5[%c3_32, %c0_33, %c0_34] : memref<4x32x64xbf16, #tpu.memory_space<vmem>>, vector<1x32x64xbf16>
    %57 = vector.shape_cast %56 : vector<1x32x64xbf16> to vector<32x64xbf16>
    %cst_35 = arith.constant dense<0.000000e+00> : vector<8x64xf32>
    %58 = tpu.matmul %55, %57, %cst_35 {dimension_numbers = #tpu.dot_dimension_numbers<[1], [0], [0], [1], [0, 0, 1, 1], [], []>} : vector<8x32xbf16>, vector<32x64xbf16>, vector<8x64xf32> -> vector<8x64xf32>
    %59 = arith.addf %50, %58 : vector<8x64xf32>
    %60 = math.tanh %59 : vector<8x64xf32>
    %c0_36 = arith.constant 0 : index
    %c0_37 = arith.constant 0 : index
    %61 = vector.load %arg9[%c0_36, %c0_37] : memref<8x64xf32, #tpu.memory_space<vmem>>, vector<8x64xf32>
    %c0_38 = arith.constant 0 : index
    %c0_39 = arith.constant 0 : index
    %c0_40 = arith.constant 0 : index
    %62 = vector.load %arg4[%c0_38, %c0_39, %c0_40] : memref<4x8x1xf32, #tpu.memory_space<vmem>>, vector<1x8x1xf32>
    %63 = vector.shape_cast %62 : vector<1x8x1xf32> to vector<8x1xf32>
    %64 = vector.broadcast %63 : vector<8x1xf32> to vector<8x64xf32>
    %65 = arith.mulf %60, %64 : vector<8x64xf32>
    %66 = arith.truncf %65 : vector<8x64xf32> to vector<8x64xbf16>
    %c0_41 = arith.constant 0 : index
    %c0_42 = arith.constant 0 : index
    %c0_43 = arith.constant 0 : index
    %67 = vector.load %arg7[%c0_41, %c0_42, %c0_43] : memref<4x64x64xbf16, #tpu.memory_space<vmem>>, vector<1x64x64xbf16>
    %68 = vector.shape_cast %67 : vector<1x64x64xbf16> to vector<64x64xbf16>
    %cst_44 = arith.constant dense<0.000000e+00> : vector<8x64xf32>
    %69 = tpu.matmul %66, %68, %cst_44 {dimension_numbers = #tpu.dot_dimension_numbers<[1], [0], [0], [1], [0, 0, 1, 1], [], []>} : vector<8x64xbf16>, vector<64x64xbf16>, vector<8x64xf32> -> vector<8x64xf32>
    %70 = arith.addf %61, %69 : vector<8x64xf32>
    %71 = vector.broadcast %63 : vector<8x1xf32> to vector<8x32xf32>
    %72 = arith.mulf %0, %71 : vector<8x32xf32>
    %73 = arith.truncf %72 : vector<8x32xf32> to vector<8x32xbf16>
    %c0_45 = arith.constant 0 : index
    %c0_46 = arith.constant 0 : index
    %c0_47 = arith.constant 0 : index
    %74 = vector.load %arg8[%c0_45, %c0_46, %c0_47] : memref<4x32x64xbf16, #tpu.memory_space<vmem>>, vector<1x32x64xbf16>
    %75 = vector.shape_cast %74 : vector<1x32x64xbf16> to vector<32x64xbf16>
    %cst_48 = arith.constant dense<0.000000e+00> : vector<8x64xf32>
    %76 = tpu.matmul %73, %75, %cst_48 {dimension_numbers = #tpu.dot_dimension_numbers<[1], [0], [0], [1], [0, 0, 1, 1], [], []>} : vector<8x32xbf16>, vector<32x64xbf16>, vector<8x64xf32> -> vector<8x64xf32>
    %77 = arith.addf %70, %76 : vector<8x64xf32>
    %c1_49 = arith.constant 1 : index
    %c0_50 = arith.constant 0 : index
    %c0_51 = arith.constant 0 : index
    %78 = vector.load %arg4[%c1_49, %c0_50, %c0_51] : memref<4x8x1xf32, #tpu.memory_space<vmem>>, vector<1x8x1xf32>
    %79 = vector.shape_cast %78 : vector<1x8x1xf32> to vector<8x1xf32>
    %80 = vector.broadcast %79 : vector<8x1xf32> to vector<8x64xf32>
    %81 = arith.mulf %60, %80 : vector<8x64xf32>
    %82 = arith.truncf %81 : vector<8x64xf32> to vector<8x64xbf16>
    %c1_52 = arith.constant 1 : index
    %c0_53 = arith.constant 0 : index
    %c0_54 = arith.constant 0 : index
    %83 = vector.load %arg7[%c1_52, %c0_53, %c0_54] : memref<4x64x64xbf16, #tpu.memory_space<vmem>>, vector<1x64x64xbf16>
    %84 = vector.shape_cast %83 : vector<1x64x64xbf16> to vector<64x64xbf16>
    %cst_55 = arith.constant dense<0.000000e+00> : vector<8x64xf32>
    %85 = tpu.matmul %82, %84, %cst_55 {dimension_numbers = #tpu.dot_dimension_numbers<[1], [0], [0], [1], [0, 0, 1, 1], [], []>} : vector<8x64xbf16>, vector<64x64xbf16>, vector<8x64xf32> -> vector<8x64xf32>
    %86 = arith.addf %77, %85 : vector<8x64xf32>
    %87 = vector.broadcast %79 : vector<8x1xf32> to vector<8x32xf32>
    %88 = arith.mulf %0, %87 : vector<8x32xf32>
    %89 = arith.truncf %88 : vector<8x32xf32> to vector<8x32xbf16>
    %c1_56 = arith.constant 1 : index
    %c0_57 = arith.constant 0 : index
    %c0_58 = arith.constant 0 : index
    %90 = vector.load %arg8[%c1_56, %c0_57, %c0_58] : memref<4x32x64xbf16, #tpu.memory_space<vmem>>, vector<1x32x64xbf16>
    %91 = vector.shape_cast %90 : vector<1x32x64xbf16> to vector<32x64xbf16>
    %cst_59 = arith.constant dense<0.000000e+00> : vector<8x64xf32>
    %92 = tpu.matmul %89, %91, %cst_59 {dimension_numbers = #tpu.dot_dimension_numbers<[1], [0], [0], [1], [0, 0, 1, 1], [], []>} : vector<8x32xbf16>, vector<32x64xbf16>, vector<8x64xf32> -> vector<8x64xf32>
    %93 = arith.addf %86, %92 : vector<8x64xf32>
    %c2_60 = arith.constant 2 : index
    %c0_61 = arith.constant 0 : index
    %c0_62 = arith.constant 0 : index
    %94 = vector.load %arg4[%c2_60, %c0_61, %c0_62] : memref<4x8x1xf32, #tpu.memory_space<vmem>>, vector<1x8x1xf32>
    %95 = vector.shape_cast %94 : vector<1x8x1xf32> to vector<8x1xf32>
    %96 = vector.broadcast %95 : vector<8x1xf32> to vector<8x64xf32>
    %97 = arith.mulf %60, %96 : vector<8x64xf32>
    %98 = arith.truncf %97 : vector<8x64xf32> to vector<8x64xbf16>
    %c2_63 = arith.constant 2 : index
    %c0_64 = arith.constant 0 : index
    %c0_65 = arith.constant 0 : index
    %99 = vector.load %arg7[%c2_63, %c0_64, %c0_65] : memref<4x64x64xbf16, #tpu.memory_space<vmem>>, vector<1x64x64xbf16>
    %100 = vector.shape_cast %99 : vector<1x64x64xbf16> to vector<64x64xbf16>
    %cst_66 = arith.constant dense<0.000000e+00> : vector<8x64xf32>
    %101 = tpu.matmul %98, %100, %cst_66 {dimension_numbers = #tpu.dot_dimension_numbers<[1], [0], [0], [1], [0, 0, 1, 1], [], []>} : vector<8x64xbf16>, vector<64x64xbf16>, vector<8x64xf32> -> vector<8x64xf32>
    %102 = arith.addf %93, %101 : vector<8x64xf32>
    %103 = vector.broadcast %95 : vector<8x1xf32> to vector<8x32xf32>
    %104 = arith.mulf %0, %103 : vector<8x32xf32>
    %105 = arith.truncf %104 : vector<8x32xf32> to vector<8x32xbf16>
    %c2_67 = arith.constant 2 : index
    %c0_68 = arith.constant 0 : index
    %c0_69 = arith.constant 0 : index
    %106 = vector.load %arg8[%c2_67, %c0_68, %c0_69] : memref<4x32x64xbf16, #tpu.memory_space<vmem>>, vector<1x32x64xbf16>
    %107 = vector.shape_cast %106 : vector<1x32x64xbf16> to vector<32x64xbf16>
    %cst_70 = arith.constant dense<0.000000e+00> : vector<8x64xf32>
    %108 = tpu.matmul %105, %107, %cst_70 {dimension_numbers = #tpu.dot_dimension_numbers<[1], [0], [0], [1], [0, 0, 1, 1], [], []>} : vector<8x32xbf16>, vector<32x64xbf16>, vector<8x64xf32> -> vector<8x64xf32>
    %109 = arith.addf %102, %108 : vector<8x64xf32>
    %c3_71 = arith.constant 3 : index
    %c0_72 = arith.constant 0 : index
    %c0_73 = arith.constant 0 : index
    %110 = vector.load %arg4[%c3_71, %c0_72, %c0_73] : memref<4x8x1xf32, #tpu.memory_space<vmem>>, vector<1x8x1xf32>
    %111 = vector.shape_cast %110 : vector<1x8x1xf32> to vector<8x1xf32>
    %112 = vector.broadcast %111 : vector<8x1xf32> to vector<8x64xf32>
    %113 = arith.mulf %60, %112 : vector<8x64xf32>
    %114 = arith.truncf %113 : vector<8x64xf32> to vector<8x64xbf16>
    %c3_74 = arith.constant 3 : index
    %c0_75 = arith.constant 0 : index
    %c0_76 = arith.constant 0 : index
    %115 = vector.load %arg7[%c3_74, %c0_75, %c0_76] : memref<4x64x64xbf16, #tpu.memory_space<vmem>>, vector<1x64x64xbf16>
    %116 = vector.shape_cast %115 : vector<1x64x64xbf16> to vector<64x64xbf16>
    %cst_77 = arith.constant dense<0.000000e+00> : vector<8x64xf32>
    %117 = tpu.matmul %114, %116, %cst_77 {dimension_numbers = #tpu.dot_dimension_numbers<[1], [0], [0], [1], [0, 0, 1, 1], [], []>} : vector<8x64xbf16>, vector<64x64xbf16>, vector<8x64xf32> -> vector<8x64xf32>
    %118 = arith.addf %109, %117 : vector<8x64xf32>
    %119 = vector.broadcast %111 : vector<8x1xf32> to vector<8x32xf32>
    %120 = arith.mulf %0, %119 : vector<8x32xf32>
    %121 = arith.truncf %120 : vector<8x32xf32> to vector<8x32xbf16>
    %c3_78 = arith.constant 3 : index
    %c0_79 = arith.constant 0 : index
    %c0_80 = arith.constant 0 : index
    %122 = vector.load %arg8[%c3_78, %c0_79, %c0_80] : memref<4x32x64xbf16, #tpu.memory_space<vmem>>, vector<1x32x64xbf16>
    %123 = vector.shape_cast %122 : vector<1x32x64xbf16> to vector<32x64xbf16>
    %cst_81 = arith.constant dense<0.000000e+00> : vector<8x64xf32>
    %124 = tpu.matmul %121, %123, %cst_81 {dimension_numbers = #tpu.dot_dimension_numbers<[1], [0], [0], [1], [0, 0, 1, 1], [], []>} : vector<8x32xbf16>, vector<32x64xbf16>, vector<8x64xf32> -> vector<8x64xf32>
    %125 = arith.addf %118, %124 : vector<8x64xf32>
    %c0_82 = arith.constant 0 : index
    %c0_83 = arith.constant 0 : index
    %126 = vector.load %arg1[%c0_82, %c0_83] : memref<15x64xf32, #tpu.memory_space<vmem>>, vector<15x64xf32>
    %cst_84 = arith.constant dense<0.000000e+00> : vector<15xf32>
    %127 = vector.multi_reduction <add>, %126, %cst_84 [1] : vector<15x64xf32> to vector<15xf32>
    %128 = vector.shape_cast %127 : vector<15xf32> to vector<15x1xf32>
    %cst_85 = arith.constant 6.400000e+01 : f32
    %129 = vector.broadcast %cst_85 : f32 to vector<15x1xf32>
    %130 = arith.divf %128, %129 : vector<15x1xf32>
    %131 = vector.broadcast %130 : vector<15x1xf32> to vector<15x64xf32>
    %132 = arith.subf %126, %131 : vector<15x64xf32>
    %133 = arith.mulf %132, %132 : vector<15x64xf32>
    %cst_86 = arith.constant dense<0.000000e+00> : vector<15xf32>
    %134 = vector.multi_reduction <add>, %133, %cst_86 [1] : vector<15x64xf32> to vector<15xf32>
    %135 = vector.shape_cast %134 : vector<15xf32> to vector<15x1xf32>
    %cst_87 = arith.constant 6.400000e+01 : f32
    %136 = vector.broadcast %cst_87 : f32 to vector<15x1xf32>
    %137 = arith.divf %135, %136 : vector<15x1xf32>
    %138 = vector.broadcast %130 : vector<15x1xf32> to vector<15x64xf32>
    %139 = arith.subf %126, %138 : vector<15x64xf32>
    %cst_88 = arith.constant 9.99999974E-6 : f32
    %140 = vector.broadcast %cst_88 : f32 to vector<15x1xf32>
    %141 = arith.addf %137, %140 : vector<15x1xf32>
    %142 = math.rsqrt %141 : vector<15x1xf32>
    %143 = vector.broadcast %142 : vector<15x1xf32> to vector<15x64xf32>
    %144 = arith.mulf %139, %143 : vector<15x64xf32>
    %cst_89 = arith.constant dense<0.000000e+00> : vector<8xf32>
    %145 = vector.multi_reduction <add>, %125, %cst_89 [1] : vector<8x64xf32> to vector<8xf32>
    %146 = vector.shape_cast %145 : vector<8xf32> to vector<8x1xf32>
    %cst_90 = arith.constant 6.400000e+01 : f32
    %147 = vector.broadcast %cst_90 : f32 to vector<8x1xf32>
    %148 = arith.divf %146, %147 : vector<8x1xf32>
    %149 = vector.broadcast %148 : vector<8x1xf32> to vector<8x64xf32>
    %150 = arith.subf %125, %149 : vector<8x64xf32>
    %151 = arith.mulf %150, %150 : vector<8x64xf32>
    %cst_91 = arith.constant dense<0.000000e+00> : vector<8xf32>
    %152 = vector.multi_reduction <add>, %151, %cst_91 [1] : vector<8x64xf32> to vector<8xf32>
    %153 = vector.shape_cast %152 : vector<8xf32> to vector<8x1xf32>
    %cst_92 = arith.constant 6.400000e+01 : f32
    %154 = vector.broadcast %cst_92 : f32 to vector<8x1xf32>
    %155 = arith.divf %153, %154 : vector<8x1xf32>
    %156 = vector.broadcast %148 : vector<8x1xf32> to vector<8x64xf32>
    %157 = arith.subf %125, %156 : vector<8x64xf32>
    %cst_93 = arith.constant 9.99999974E-6 : f32
    %158 = vector.broadcast %cst_93 : f32 to vector<8x1xf32>
    %159 = arith.addf %155, %158 : vector<8x1xf32>
    %160 = math.rsqrt %159 : vector<8x1xf32>
    %161 = vector.broadcast %160 : vector<8x1xf32> to vector<8x64xf32>
    %162 = arith.mulf %157, %161 : vector<8x64xf32>
    %c0_94 = arith.constant 0 : index
    %c0_95 = arith.constant 0 : index
    %c0_96 = arith.constant 0 : index
    %163 = vector.load %arg10[%c0_94, %c0_95, %c0_96] : memref<2x1x64xf32, #tpu.memory_space<vmem>>, vector<1x1x64xf32>
    %164 = vector.shape_cast %163 : vector<1x1x64xf32> to vector<1x64xf32>
    %165 = vector.broadcast %164 : vector<1x64xf32> to vector<8x64xf32>
    %166 = arith.mulf %162, %165 : vector<8x64xf32>
    %c0_97 = arith.constant 0 : index
    %c0_98 = arith.constant 0 : index
    %c0_99 = arith.constant 0 : index
    %167 = vector.load %arg11[%c0_97, %c0_98, %c0_99] : memref<2x1x64xf32, #tpu.memory_space<vmem>>, vector<1x1x64xf32>
    %168 = vector.shape_cast %167 : vector<1x1x64xf32> to vector<1x64xf32>
    %169 = vector.broadcast %168 : vector<1x64xf32> to vector<8x64xf32>
    %170 = arith.addf %166, %169 : vector<8x64xf32>
    %c0_100 = arith.constant 0 : index
    %c0_101 = arith.constant 0 : index
    %c0_102 = arith.constant 0 : index
    %171 = vector.load %arg12[%c0_100, %c0_101, %c0_102] : memref<2x1x64xf32, #tpu.memory_space<vmem>>, vector<1x1x64xf32>
    %172 = vector.shape_cast %171 : vector<1x1x64xf32> to vector<1x64xf32>
    %173 = vector.broadcast %172 : vector<1x64xf32> to vector<15x64xf32>
    %174 = arith.mulf %144, %173 : vector<15x64xf32>
    %c0_103 = arith.constant 0 : index
    %c0_104 = arith.constant 0 : index
    %c0_105 = arith.constant 0 : index
    %175 = vector.load %arg13[%c0_103, %c0_104, %c0_105] : memref<2x1x64xf32, #tpu.memory_space<vmem>>, vector<1x1x64xf32>
    %176 = vector.shape_cast %175 : vector<1x1x64xf32> to vector<1x64xf32>
    %177 = vector.broadcast %176 : vector<1x64xf32> to vector<15x64xf32>
    %178 = arith.addf %174, %177 : vector<15x64xf32>
    %179 = arith.truncf %170 : vector<8x64xf32> to vector<8x64xbf16>
    %c0_106 = arith.constant 0 : index
    %c0_107 = arith.constant 0 : index
    %c0_108 = arith.constant 0 : index
    %180 = vector.load %arg14[%c0_106, %c0_107, %c0_108] : memref<2x64x1024xbf16, #tpu.memory_space<vmem>>, vector<1x64x1024xbf16>
    %181 = vector.shape_cast %180 : vector<1x64x1024xbf16> to vector<64x1024xbf16>
    %cst_109 = arith.constant dense<0.000000e+00> : vector<8x1024xf32>
    %182 = tpu.matmul %179, %181, %cst_109 {dimension_numbers = #tpu.dot_dimension_numbers<[1], [0], [0], [1], [0, 0, 1, 1], [], []>} : vector<8x64xbf16>, vector<64x1024xbf16>, vector<8x1024xf32> -> vector<8x1024xf32>
    %c0_110 = arith.constant 0 : index
    %c0_111 = arith.constant 0 : index
    %c0_112 = arith.constant 0 : index
    %183 = vector.load %arg15[%c0_110, %c0_111, %c0_112] : memref<2x1x1024xf32, #tpu.memory_space<vmem>>, vector<1x1x1024xf32>
    %184 = vector.shape_cast %183 : vector<1x1x1024xf32> to vector<1x1024xf32>
    %185 = vector.broadcast %184 : vector<1x1024xf32> to vector<8x1024xf32>
    %186 = arith.addf %182, %185 : vector<8x1024xf32>
    %187 = arith.truncf %178 : vector<15x64xf32> to vector<15x64xbf16>
    %c0_113 = arith.constant 0 : index
    %c0_114 = arith.constant 0 : index
    %c0_115 = arith.constant 0 : index
    %188 = vector.load %arg16[%c0_113, %c0_114, %c0_115] : memref<2x64x1024xbf16, #tpu.memory_space<vmem>>, vector<1x64x1024xbf16>
    %189 = vector.shape_cast %188 : vector<1x64x1024xbf16> to vector<64x1024xbf16>
    %cst_116 = arith.constant dense<0.000000e+00> : vector<15x1024xf32>
    %190 = tpu.matmul %187, %189, %cst_116 {dimension_numbers = #tpu.dot_dimension_numbers<[1], [0], [0], [1], [0, 0, 1, 1], [], []>} : vector<15x64xbf16>, vector<64x1024xbf16>, vector<15x1024xf32> -> vector<15x1024xf32>
    %c0_117 = arith.constant 0 : index
    %c0_118 = arith.constant 0 : index
    %c0_119 = arith.constant 0 : index
    %191 = vector.load %arg17[%c0_117, %c0_118, %c0_119] : memref<2x1x1024xf32, #tpu.memory_space<vmem>>, vector<1x1x1024xf32>
    %192 = vector.shape_cast %191 : vector<1x1x1024xf32> to vector<1x1024xf32>
    %193 = vector.broadcast %192 : vector<1x1024xf32> to vector<15x1024xf32>
    %194 = arith.addf %190, %193 : vector<15x1024xf32>
    %195 = arith.truncf %178 : vector<15x64xf32> to vector<15x64xbf16>
    %c0_120 = arith.constant 0 : index
    %c0_121 = arith.constant 0 : index
    %c0_122 = arith.constant 0 : index
    %196 = vector.load %arg18[%c0_120, %c0_121, %c0_122] : memref<2x64x1024xbf16, #tpu.memory_space<vmem>>, vector<1x64x1024xbf16>
    %197 = vector.shape_cast %196 : vector<1x64x1024xbf16> to vector<64x1024xbf16>
    %cst_123 = arith.constant dense<0.000000e+00> : vector<15x1024xf32>
    %198 = tpu.matmul %195, %197, %cst_123 {dimension_numbers = #tpu.dot_dimension_numbers<[1], [0], [0], [1], [0, 0, 1, 1], [], []>} : vector<15x64xbf16>, vector<64x1024xbf16>, vector<15x1024xf32> -> vector<15x1024xf32>
    %c0_124 = arith.constant 0 : index
    %c0_125 = arith.constant 0 : index
    %c0_126 = arith.constant 0 : index
    %199 = vector.load %arg19[%c0_124, %c0_125, %c0_126] : memref<2x1x1024xf32, #tpu.memory_space<vmem>>, vector<1x1x1024xf32>
    %200 = vector.shape_cast %199 : vector<1x1x1024xf32> to vector<1x1024xf32>
    %201 = vector.broadcast %200 : vector<1x1024xf32> to vector<15x1024xf32>
    %202 = arith.addf %198, %201 : vector<15x1024xf32>
    %cst_127 = arith.constant 0.000000e+00 : f32
    %203 = vector.broadcast %cst_127 : f32 to vector<8x64xf32>
    %204 = vector.extract_strided_slice %186 {offsets = [0, 0], sizes = [8, 128], strides = [1, 1]} : vector<8x1024xf32> to vector<8x128xf32>
    %205 = vector.extract_strided_slice %194 {offsets = [0, 0], sizes = [15, 128], strides = [1, 1]} : vector<15x1024xf32> to vector<15x128xf32>
    %206 = vector.extract_strided_slice %202 {offsets = [0, 0], sizes = [15, 128], strides = [1, 1]} : vector<15x1024xf32> to vector<15x128xf32>
    %207 = arith.truncf %204 : vector<8x128xf32> to vector<8x128xbf16>
    %208 = arith.truncf %205 : vector<15x128xf32> to vector<15x128xbf16>
    %cst_128 = arith.constant dense<0.000000e+00> : vector<8x15xf32>
    %209 = tpu.matmul %207, %208, %cst_128 {dimension_numbers = #tpu.dot_dimension_numbers<[1], [1], [0], [0], [0, 0, 1, 0], [], []>} : vector<8x128xbf16>, vector<15x128xbf16>, vector<8x15xf32> -> vector<8x15xf32>
    %cst_129 = arith.constant dense<0xFF800000> : vector<8xf32>
    %210 = vector.multi_reduction <maximumf>, %209, %cst_129 [1] : vector<8x15xf32> to vector<8xf32>
    %211 = vector.shape_cast %210 : vector<8xf32> to vector<8x1xf32>
    %212 = vector.broadcast %211 : vector<8x1xf32> to vector<8x15xf32>
    %213 = arith.subf %209, %212 : vector<8x15xf32>
    %214 = math.exp %213 : vector<8x15xf32>
    %cst_130 = arith.constant dense<0.000000e+00> : vector<8xf32>
    %215 = vector.multi_reduction <add>, %214, %cst_130 [1] : vector<8x15xf32> to vector<8xf32>
    %216 = vector.shape_cast %215 : vector<8xf32> to vector<8x1xf32>
    %217 = tpu.reciprocal %216 {approx = true} : vector<8x1xf32> -> vector<8x1xf32>
    %218 = vector.broadcast %217 : vector<8x1xf32> to vector<8x15xf32>
    %219 = arith.mulf %214, %218 : vector<8x15xf32>
    %220 = arith.truncf %219 : vector<8x15xf32> to vector<8x15xbf16>
    %221 = arith.truncf %206 : vector<15x128xf32> to vector<15x128xbf16>
    %cst_131 = arith.constant dense<0.000000e+00> : vector<8x128xf32>
    %222 = tpu.matmul %220, %221, %cst_131 {dimension_numbers = #tpu.dot_dimension_numbers<[1], [0], [0], [1], [0, 0, 1, 1], [], []>} : vector<8x15xbf16>, vector<15x128xbf16>, vector<8x128xf32> -> vector<8x128xf32>
    %223 = arith.truncf %222 : vector<8x128xf32> to vector<8x128xbf16>
    %c0_132 = arith.constant 0 : index
    %c0_133 = arith.constant 0 : index
    %c0_134 = arith.constant 0 : index
    %c0_135 = arith.constant 0 : index
    %224 = vector.load %arg20[%c0_132, %c0_133, %c0_134, %c0_135] : memref<2x8x128x64xbf16, #tpu.memory_space<vmem>>, vector<1x1x128x64xbf16>
    %225 = vector.shape_cast %224 : vector<1x1x128x64xbf16> to vector<128x64xbf16>
    %cst_136 = arith.constant dense<0.000000e+00> : vector<8x64xf32>
    %226 = tpu.matmul %223, %225, %cst_136 {dimension_numbers = #tpu.dot_dimension_numbers<[1], [0], [0], [1], [0, 0, 1, 1], [], []>} : vector<8x128xbf16>, vector<128x64xbf16>, vector<8x64xf32> -> vector<8x64xf32>
    %227 = arith.addf %203, %226 : vector<8x64xf32>
    %228 = vector.extract_strided_slice %186 {offsets = [0, 128], sizes = [8, 128], strides = [1, 1]} : vector<8x1024xf32> to vector<8x128xf32>
    %229 = vector.extract_strided_slice %194 {offsets = [0, 128], sizes = [15, 128], strides = [1, 1]} : vector<15x1024xf32> to vector<15x128xf32>
    %230 = vector.extract_strided_slice %202 {offsets = [0, 128], sizes = [15, 128], strides = [1, 1]} : vector<15x1024xf32> to vector<15x128xf32>
    %231 = arith.truncf %228 : vector<8x128xf32> to vector<8x128xbf16>
    %232 = arith.truncf %229 : vector<15x128xf32> to vector<15x128xbf16>
    %cst_137 = arith.constant dense<0.000000e+00> : vector<8x15xf32>
    %233 = tpu.matmul %231, %232, %cst_137 {dimension_numbers = #tpu.dot_dimension_numbers<[1], [1], [0], [0], [0, 0, 1, 0], [], []>} : vector<8x128xbf16>, vector<15x128xbf16>, vector<8x15xf32> -> vector<8x15xf32>
    %cst_138 = arith.constant dense<0xFF800000> : vector<8xf32>
    %234 = vector.multi_reduction <maximumf>, %233, %cst_138 [1] : vector<8x15xf32> to vector<8xf32>
    %235 = vector.shape_cast %234 : vector<8xf32> to vector<8x1xf32>
    %236 = vector.broadcast %235 : vector<8x1xf32> to vector<8x15xf32>
    %237 = arith.subf %233, %236 : vector<8x15xf32>
    %238 = math.exp %237 : vector<8x15xf32>
    %cst_139 = arith.constant dense<0.000000e+00> : vector<8xf32>
    %239 = vector.multi_reduction <add>, %238, %cst_139 [1] : vector<8x15xf32> to vector<8xf32>
    %240 = vector.shape_cast %239 : vector<8xf32> to vector<8x1xf32>
    %241 = tpu.reciprocal %240 {approx = true} : vector<8x1xf32> -> vector<8x1xf32>
    %242 = vector.broadcast %241 : vector<8x1xf32> to vector<8x15xf32>
    %243 = arith.mulf %238, %242 : vector<8x15xf32>
    %244 = arith.truncf %243 : vector<8x15xf32> to vector<8x15xbf16>
    %245 = arith.truncf %230 : vector<15x128xf32> to vector<15x128xbf16>
    %cst_140 = arith.constant dense<0.000000e+00> : vector<8x128xf32>
    %246 = tpu.matmul %244, %245, %cst_140 {dimension_numbers = #tpu.dot_dimension_numbers<[1], [0], [0], [1], [0, 0, 1, 1], [], []>} : vector<8x15xbf16>, vector<15x128xbf16>, vector<8x128xf32> -> vector<8x128xf32>
    %247 = arith.truncf %246 : vector<8x128xf32> to vector<8x128xbf16>
    %c0_141 = arith.constant 0 : index
    %c1_142 = arith.constant 1 : index
    %c0_143 = arith.constant 0 : index
    %c0_144 = arith.constant 0 : index
    %248 = vector.load %arg20[%c0_141, %c1_142, %c0_143, %c0_144] : memref<2x8x128x64xbf16, #tpu.memory_space<vmem>>, vector<1x1x128x64xbf16>
    %249 = vector.shape_cast %248 : vector<1x1x128x64xbf16> to vector<128x64xbf16>
    %cst_145 = arith.constant dense<0.000000e+00> : vector<8x64xf32>
    %250 = tpu.matmul %247, %249, %cst_145 {dimension_numbers = #tpu.dot_dimension_numbers<[1], [0], [0], [1], [0, 0, 1, 1], [], []>} : vector<8x128xbf16>, vector<128x64xbf16>, vector<8x64xf32> -> vector<8x64xf32>
    %251 = arith.addf %227, %250 : vector<8x64xf32>
    %252 = vector.extract_strided_slice %186 {offsets = [0, 256], sizes = [8, 128], strides = [1, 1]} : vector<8x1024xf32> to vector<8x128xf32>
    %253 = vector.extract_strided_slice %194 {offsets = [0, 256], sizes = [15, 128], strides = [1, 1]} : vector<15x1024xf32> to vector<15x128xf32>
    %254 = vector.extract_strided_slice %202 {offsets = [0, 256], sizes = [15, 128], strides = [1, 1]} : vector<15x1024xf32> to vector<15x128xf32>
    %255 = arith.truncf %252 : vector<8x128xf32> to vector<8x128xbf16>
    %256 = arith.truncf %253 : vector<15x128xf32> to vector<15x128xbf16>
    %cst_146 = arith.constant dense<0.000000e+00> : vector<8x15xf32>
    %257 = tpu.matmul %255, %256, %cst_146 {dimension_numbers = #tpu.dot_dimension_numbers<[1], [1], [0], [0], [0, 0, 1, 0], [], []>} : vector<8x128xbf16>, vector<15x128xbf16>, vector<8x15xf32> -> vector<8x15xf32>
    %cst_147 = arith.constant dense<0xFF800000> : vector<8xf32>
    %258 = vector.multi_reduction <maximumf>, %257, %cst_147 [1] : vector<8x15xf32> to vector<8xf32>
    %259 = vector.shape_cast %258 : vector<8xf32> to vector<8x1xf32>
    %260 = vector.broadcast %259 : vector<8x1xf32> to vector<8x15xf32>
    %261 = arith.subf %257, %260 : vector<8x15xf32>
    %262 = math.exp %261 : vector<8x15xf32>
    %cst_148 = arith.constant dense<0.000000e+00> : vector<8xf32>
    %263 = vector.multi_reduction <add>, %262, %cst_148 [1] : vector<8x15xf32> to vector<8xf32>
    %264 = vector.shape_cast %263 : vector<8xf32> to vector<8x1xf32>
    %265 = tpu.reciprocal %264 {approx = true} : vector<8x1xf32> -> vector<8x1xf32>
    %266 = vector.broadcast %265 : vector<8x1xf32> to vector<8x15xf32>
    %267 = arith.mulf %262, %266 : vector<8x15xf32>
    %268 = arith.truncf %267 : vector<8x15xf32> to vector<8x15xbf16>
    %269 = arith.truncf %254 : vector<15x128xf32> to vector<15x128xbf16>
    %cst_149 = arith.constant dense<0.000000e+00> : vector<8x128xf32>
    %270 = tpu.matmul %268, %269, %cst_149 {dimension_numbers = #tpu.dot_dimension_numbers<[1], [0], [0], [1], [0, 0, 1, 1], [], []>} : vector<8x15xbf16>, vector<15x128xbf16>, vector<8x128xf32> -> vector<8x128xf32>
    %271 = arith.truncf %270 : vector<8x128xf32> to vector<8x128xbf16>
    %c0_150 = arith.constant 0 : index
    %c2_151 = arith.constant 2 : index
    %c0_152 = arith.constant 0 : index
    %c0_153 = arith.constant 0 : index
    %272 = vector.load %arg20[%c0_150, %c2_151, %c0_152, %c0_153] : memref<2x8x128x64xbf16, #tpu.memory_space<vmem>>, vector<1x1x128x64xbf16>
    %273 = vector.shape_cast %272 : vector<1x1x128x64xbf16> to vector<128x64xbf16>
    %cst_154 = arith.constant dense<0.000000e+00> : vector<8x64xf32>
    %274 = tpu.matmul %271, %273, %cst_154 {dimension_numbers = #tpu.dot_dimension_numbers<[1], [0], [0], [1], [0, 0, 1, 1], [], []>} : vector<8x128xbf16>, vector<128x64xbf16>, vector<8x64xf32> -> vector<8x64xf32>
    %275 = arith.addf %251, %274 : vector<8x64xf32>
    %276 = vector.extract_strided_slice %186 {offsets = [0, 384], sizes = [8, 128], strides = [1, 1]} : vector<8x1024xf32> to vector<8x128xf32>
    %277 = vector.extract_strided_slice %194 {offsets = [0, 384], sizes = [15, 128], strides = [1, 1]} : vector<15x1024xf32> to vector<15x128xf32>
    %278 = vector.extract_strided_slice %202 {offsets = [0, 384], sizes = [15, 128], strides = [1, 1]} : vector<15x1024xf32> to vector<15x128xf32>
    %279 = arith.truncf %276 : vector<8x128xf32> to vector<8x128xbf16>
    %280 = arith.truncf %277 : vector<15x128xf32> to vector<15x128xbf16>
    %cst_155 = arith.constant dense<0.000000e+00> : vector<8x15xf32>
    %281 = tpu.matmul %279, %280, %cst_155 {dimension_numbers = #tpu.dot_dimension_numbers<[1], [1], [0], [0], [0, 0, 1, 0], [], []>} : vector<8x128xbf16>, vector<15x128xbf16>, vector<8x15xf32> -> vector<8x15xf32>
    %cst_156 = arith.constant dense<0xFF800000> : vector<8xf32>
    %282 = vector.multi_reduction <maximumf>, %281, %cst_156 [1] : vector<8x15xf32> to vector<8xf32>
    %283 = vector.shape_cast %282 : vector<8xf32> to vector<8x1xf32>
    %284 = vector.broadcast %283 : vector<8x1xf32> to vector<8x15xf32>
    %285 = arith.subf %281, %284 : vector<8x15xf32>
    %286 = math.exp %285 : vector<8x15xf32>
    %cst_157 = arith.constant dense<0.000000e+00> : vector<8xf32>
    %287 = vector.multi_reduction <add>, %286, %cst_157 [1] : vector<8x15xf32> to vector<8xf32>
    %288 = vector.shape_cast %287 : vector<8xf32> to vector<8x1xf32>
    %289 = tpu.reciprocal %288 {approx = true} : vector<8x1xf32> -> vector<8x1xf32>
    %290 = vector.broadcast %289 : vector<8x1xf32> to vector<8x15xf32>
    %291 = arith.mulf %286, %290 : vector<8x15xf32>
    %292 = arith.truncf %291 : vector<8x15xf32> to vector<8x15xbf16>
    %293 = arith.truncf %278 : vector<15x128xf32> to vector<15x128xbf16>
    %cst_158 = arith.constant dense<0.000000e+00> : vector<8x128xf32>
    %294 = tpu.matmul %292, %293, %cst_158 {dimension_numbers = #tpu.dot_dimension_numbers<[1], [0], [0], [1], [0, 0, 1, 1], [], []>} : vector<8x15xbf16>, vector<15x128xbf16>, vector<8x128xf32> -> vector<8x128xf32>
    %295 = arith.truncf %294 : vector<8x128xf32> to vector<8x128xbf16>
    %c0_159 = arith.constant 0 : index
    %c3_160 = arith.constant 3 : index
    %c0_161 = arith.constant 0 : index
    %c0_162 = arith.constant 0 : index
    %296 = vector.load %arg20[%c0_159, %c3_160, %c0_161, %c0_162] : memref<2x8x128x64xbf16, #tpu.memory_space<vmem>>, vector<1x1x128x64xbf16>
    %297 = vector.shape_cast %296 : vector<1x1x128x64xbf16> to vector<128x64xbf16>
    %cst_163 = arith.constant dense<0.000000e+00> : vector<8x64xf32>
    %298 = tpu.matmul %295, %297, %cst_163 {dimension_numbers = #tpu.dot_dimension_numbers<[1], [0], [0], [1], [0, 0, 1, 1], [], []>} : vector<8x128xbf16>, vector<128x64xbf16>, vector<8x64xf32> -> vector<8x64xf32>
    %299 = arith.addf %275, %298 : vector<8x64xf32>
    %300 = vector.extract_strided_slice %186 {offsets = [0, 512], sizes = [8, 128], strides = [1, 1]} : vector<8x1024xf32> to vector<8x128xf32>
    %301 = vector.extract_strided_slice %194 {offsets = [0, 512], sizes = [15, 128], strides = [1, 1]} : vector<15x1024xf32> to vector<15x128xf32>
    %302 = vector.extract_strided_slice %202 {offsets = [0, 512], sizes = [15, 128], strides = [1, 1]} : vector<15x1024xf32> to vector<15x128xf32>
    %303 = arith.truncf %300 : vector<8x128xf32> to vector<8x128xbf16>
    %304 = arith.truncf %301 : vector<15x128xf32> to vector<15x128xbf16>
    %cst_164 = arith.constant dense<0.000000e+00> : vector<8x15xf32>
    %305 = tpu.matmul %303, %304, %cst_164 {dimension_numbers = #tpu.dot_dimension_numbers<[1], [1], [0], [0], [0, 0, 1, 0], [], []>} : vector<8x128xbf16>, vector<15x128xbf16>, vector<8x15xf32> -> vector<8x15xf32>
    %cst_165 = arith.constant dense<0xFF800000> : vector<8xf32>
    %306 = vector.multi_reduction <maximumf>, %305, %cst_165 [1] : vector<8x15xf32> to vector<8xf32>
    %307 = vector.shape_cast %306 : vector<8xf32> to vector<8x1xf32>
    %308 = vector.broadcast %307 : vector<8x1xf32> to vector<8x15xf32>
    %309 = arith.subf %305, %308 : vector<8x15xf32>
    %310 = math.exp %309 : vector<8x15xf32>
    %cst_166 = arith.constant dense<0.000000e+00> : vector<8xf32>
    %311 = vector.multi_reduction <add>, %310, %cst_166 [1] : vector<8x15xf32> to vector<8xf32>
    %312 = vector.shape_cast %311 : vector<8xf32> to vector<8x1xf32>
    %313 = tpu.reciprocal %312 {approx = true} : vector<8x1xf32> -> vector<8x1xf32>
    %314 = vector.broadcast %313 : vector<8x1xf32> to vector<8x15xf32>
    %315 = arith.mulf %310, %314 : vector<8x15xf32>
    %316 = arith.truncf %315 : vector<8x15xf32> to vector<8x15xbf16>
    %317 = arith.truncf %302 : vector<15x128xf32> to vector<15x128xbf16>
    %cst_167 = arith.constant dense<0.000000e+00> : vector<8x128xf32>
    %318 = tpu.matmul %316, %317, %cst_167 {dimension_numbers = #tpu.dot_dimension_numbers<[1], [0], [0], [1], [0, 0, 1, 1], [], []>} : vector<8x15xbf16>, vector<15x128xbf16>, vector<8x128xf32> -> vector<8x128xf32>
    %319 = arith.truncf %318 : vector<8x128xf32> to vector<8x128xbf16>
    %c0_168 = arith.constant 0 : index
    %c4 = arith.constant 4 : index
    %c0_169 = arith.constant 0 : index
    %c0_170 = arith.constant 0 : index
    %320 = vector.load %arg20[%c0_168, %c4, %c0_169, %c0_170] : memref<2x8x128x64xbf16, #tpu.memory_space<vmem>>, vector<1x1x128x64xbf16>
    %321 = vector.shape_cast %320 : vector<1x1x128x64xbf16> to vector<128x64xbf16>
    %cst_171 = arith.constant dense<0.000000e+00> : vector<8x64xf32>
    %322 = tpu.matmul %319, %321, %cst_171 {dimension_numbers = #tpu.dot_dimension_numbers<[1], [0], [0], [1], [0, 0, 1, 1], [], []>} : vector<8x128xbf16>, vector<128x64xbf16>, vector<8x64xf32> -> vector<8x64xf32>
    %323 = arith.addf %299, %322 : vector<8x64xf32>
    %324 = vector.extract_strided_slice %186 {offsets = [0, 640], sizes = [8, 128], strides = [1, 1]} : vector<8x1024xf32> to vector<8x128xf32>
    %325 = vector.extract_strided_slice %194 {offsets = [0, 640], sizes = [15, 128], strides = [1, 1]} : vector<15x1024xf32> to vector<15x128xf32>
    %326 = vector.extract_strided_slice %202 {offsets = [0, 640], sizes = [15, 128], strides = [1, 1]} : vector<15x1024xf32> to vector<15x128xf32>
    %327 = arith.truncf %324 : vector<8x128xf32> to vector<8x128xbf16>
    %328 = arith.truncf %325 : vector<15x128xf32> to vector<15x128xbf16>
    %cst_172 = arith.constant dense<0.000000e+00> : vector<8x15xf32>
    %329 = tpu.matmul %327, %328, %cst_172 {dimension_numbers = #tpu.dot_dimension_numbers<[1], [1], [0], [0], [0, 0, 1, 0], [], []>} : vector<8x128xbf16>, vector<15x128xbf16>, vector<8x15xf32> -> vector<8x15xf32>
    %cst_173 = arith.constant dense<0xFF800000> : vector<8xf32>
    %330 = vector.multi_reduction <maximumf>, %329, %cst_173 [1] : vector<8x15xf32> to vector<8xf32>
    %331 = vector.shape_cast %330 : vector<8xf32> to vector<8x1xf32>
    %332 = vector.broadcast %331 : vector<8x1xf32> to vector<8x15xf32>
    %333 = arith.subf %329, %332 : vector<8x15xf32>
    %334 = math.exp %333 : vector<8x15xf32>
    %cst_174 = arith.constant dense<0.000000e+00> : vector<8xf32>
    %335 = vector.multi_reduction <add>, %334, %cst_174 [1] : vector<8x15xf32> to vector<8xf32>
    %336 = vector.shape_cast %335 : vector<8xf32> to vector<8x1xf32>
    %337 = tpu.reciprocal %336 {approx = true} : vector<8x1xf32> -> vector<8x1xf32>
    %338 = vector.broadcast %337 : vector<8x1xf32> to vector<8x15xf32>
    %339 = arith.mulf %334, %338 : vector<8x15xf32>
    %340 = arith.truncf %339 : vector<8x15xf32> to vector<8x15xbf16>
    %341 = arith.truncf %326 : vector<15x128xf32> to vector<15x128xbf16>
    %cst_175 = arith.constant dense<0.000000e+00> : vector<8x128xf32>
    %342 = tpu.matmul %340, %341, %cst_175 {dimension_numbers = #tpu.dot_dimension_numbers<[1], [0], [0], [1], [0, 0, 1, 1], [], []>} : vector<8x15xbf16>, vector<15x128xbf16>, vector<8x128xf32> -> vector<8x128xf32>
    %343 = arith.truncf %342 : vector<8x128xf32> to vector<8x128xbf16>
    %c0_176 = arith.constant 0 : index
    %c5 = arith.constant 5 : index
    %c0_177 = arith.constant 0 : index
    %c0_178 = arith.constant 0 : index
    %344 = vector.load %arg20[%c0_176, %c5, %c0_177, %c0_178] : memref<2x8x128x64xbf16, #tpu.memory_space<vmem>>, vector<1x1x128x64xbf16>
    %345 = vector.shape_cast %344 : vector<1x1x128x64xbf16> to vector<128x64xbf16>
    %cst_179 = arith.constant dense<0.000000e+00> : vector<8x64xf32>
    %346 = tpu.matmul %343, %345, %cst_179 {dimension_numbers = #tpu.dot_dimension_numbers<[1], [0], [0], [1], [0, 0, 1, 1], [], []>} : vector<8x128xbf16>, vector<128x64xbf16>, vector<8x64xf32> -> vector<8x64xf32>
    %347 = arith.addf %323, %346 : vector<8x64xf32>
    %348 = vector.extract_strided_slice %186 {offsets = [0, 768], sizes = [8, 128], strides = [1, 1]} : vector<8x1024xf32> to vector<8x128xf32>
    %349 = vector.extract_strided_slice %194 {offsets = [0, 768], sizes = [15, 128], strides = [1, 1]} : vector<15x1024xf32> to vector<15x128xf32>
    %350 = vector.extract_strided_slice %202 {offsets = [0, 768], sizes = [15, 128], strides = [1, 1]} : vector<15x1024xf32> to vector<15x128xf32>
    %351 = arith.truncf %348 : vector<8x128xf32> to vector<8x128xbf16>
    %352 = arith.truncf %349 : vector<15x128xf32> to vector<15x128xbf16>
    %cst_180 = arith.constant dense<0.000000e+00> : vector<8x15xf32>
    %353 = tpu.matmul %351, %352, %cst_180 {dimension_numbers = #tpu.dot_dimension_numbers<[1], [1], [0], [0], [0, 0, 1, 0], [], []>} : vector<8x128xbf16>, vector<15x128xbf16>, vector<8x15xf32> -> vector<8x15xf32>
    %cst_181 = arith.constant dense<0xFF800000> : vector<8xf32>
    %354 = vector.multi_reduction <maximumf>, %353, %cst_181 [1] : vector<8x15xf32> to vector<8xf32>
    %355 = vector.shape_cast %354 : vector<8xf32> to vector<8x1xf32>
    %356 = vector.broadcast %355 : vector<8x1xf32> to vector<8x15xf32>
    %357 = arith.subf %353, %356 : vector<8x15xf32>
    %358 = math.exp %357 : vector<8x15xf32>
    %cst_182 = arith.constant dense<0.000000e+00> : vector<8xf32>
    %359 = vector.multi_reduction <add>, %358, %cst_182 [1] : vector<8x15xf32> to vector<8xf32>
    %360 = vector.shape_cast %359 : vector<8xf32> to vector<8x1xf32>
    %361 = tpu.reciprocal %360 {approx = true} : vector<8x1xf32> -> vector<8x1xf32>
    %362 = vector.broadcast %361 : vector<8x1xf32> to vector<8x15xf32>
    %363 = arith.mulf %358, %362 : vector<8x15xf32>
    %364 = arith.truncf %363 : vector<8x15xf32> to vector<8x15xbf16>
    %365 = arith.truncf %350 : vector<15x128xf32> to vector<15x128xbf16>
    %cst_183 = arith.constant dense<0.000000e+00> : vector<8x128xf32>
    %366 = tpu.matmul %364, %365, %cst_183 {dimension_numbers = #tpu.dot_dimension_numbers<[1], [0], [0], [1], [0, 0, 1, 1], [], []>} : vector<8x15xbf16>, vector<15x128xbf16>, vector<8x128xf32> -> vector<8x128xf32>
    %367 = arith.truncf %366 : vector<8x128xf32> to vector<8x128xbf16>
    %c0_184 = arith.constant 0 : index
    %c6 = arith.constant 6 : index
    %c0_185 = arith.constant 0 : index
    %c0_186 = arith.constant 0 : index
    %368 = vector.load %arg20[%c0_184, %c6, %c0_185, %c0_186] : memref<2x8x128x64xbf16, #tpu.memory_space<vmem>>, vector<1x1x128x64xbf16>
    %369 = vector.shape_cast %368 : vector<1x1x128x64xbf16> to vector<128x64xbf16>
    %cst_187 = arith.constant dense<0.000000e+00> : vector<8x64xf32>
    %370 = tpu.matmul %367, %369, %cst_187 {dimension_numbers = #tpu.dot_dimension_numbers<[1], [0], [0], [1], [0, 0, 1, 1], [], []>} : vector<8x128xbf16>, vector<128x64xbf16>, vector<8x64xf32> -> vector<8x64xf32>
    %371 = arith.addf %347, %370 : vector<8x64xf32>
    %372 = vector.extract_strided_slice %186 {offsets = [0, 896], sizes = [8, 128], strides = [1, 1]} : vector<8x1024xf32> to vector<8x128xf32>
    %373 = vector.extract_strided_slice %194 {offsets = [0, 896], sizes = [15, 128], strides = [1, 1]} : vector<15x1024xf32> to vector<15x128xf32>
    %374 = vector.extract_strided_slice %202 {offsets = [0, 896], sizes = [15, 128], strides = [1, 1]} : vector<15x1024xf32> to vector<15x128xf32>
    %375 = arith.truncf %372 : vector<8x128xf32> to vector<8x128xbf16>
    %376 = arith.truncf %373 : vector<15x128xf32> to vector<15x128xbf16>
    %cst_188 = arith.constant dense<0.000000e+00> : vector<8x15xf32>
    %377 = tpu.matmul %375, %376, %cst_188 {dimension_numbers = #tpu.dot_dimension_numbers<[1], [1], [0], [0], [0, 0, 1, 0], [], []>} : vector<8x128xbf16>, vector<15x128xbf16>, vector<8x15xf32> -> vector<8x15xf32>
    %cst_189 = arith.constant dense<0xFF800000> : vector<8xf32>
    %378 = vector.multi_reduction <maximumf>, %377, %cst_189 [1] : vector<8x15xf32> to vector<8xf32>
    %379 = vector.shape_cast %378 : vector<8xf32> to vector<8x1xf32>
    %380 = vector.broadcast %379 : vector<8x1xf32> to vector<8x15xf32>
    %381 = arith.subf %377, %380 : vector<8x15xf32>
    %382 = math.exp %381 : vector<8x15xf32>
    %cst_190 = arith.constant dense<0.000000e+00> : vector<8xf32>
    %383 = vector.multi_reduction <add>, %382, %cst_190 [1] : vector<8x15xf32> to vector<8xf32>
    %384 = vector.shape_cast %383 : vector<8xf32> to vector<8x1xf32>
    %385 = tpu.reciprocal %384 {approx = true} : vector<8x1xf32> -> vector<8x1xf32>
    %386 = vector.broadcast %385 : vector<8x1xf32> to vector<8x15xf32>
    %387 = arith.mulf %382, %386 : vector<8x15xf32>
    %388 = arith.truncf %387 : vector<8x15xf32> to vector<8x15xbf16>
    %389 = arith.truncf %374 : vector<15x128xf32> to vector<15x128xbf16>
    %cst_191 = arith.constant dense<0.000000e+00> : vector<8x128xf32>
    %390 = tpu.matmul %388, %389, %cst_191 {dimension_numbers = #tpu.dot_dimension_numbers<[1], [0], [0], [1], [0, 0, 1, 1], [], []>} : vector<8x15xbf16>, vector<15x128xbf16>, vector<8x128xf32> -> vector<8x128xf32>
    %391 = arith.truncf %390 : vector<8x128xf32> to vector<8x128xbf16>
    %c0_192 = arith.constant 0 : index
    %c7 = arith.constant 7 : index
    %c0_193 = arith.constant 0 : index
    %c0_194 = arith.constant 0 : index
    %392 = vector.load %arg20[%c0_192, %c7, %c0_193, %c0_194] : memref<2x8x128x64xbf16, #tpu.memory_space<vmem>>, vector<1x1x128x64xbf16>
    %393 = vector.shape_cast %392 : vector<1x1x128x64xbf16> to vector<128x64xbf16>
    %cst_195 = arith.constant dense<0.000000e+00> : vector<8x64xf32>
    %394 = tpu.matmul %391, %393, %cst_195 {dimension_numbers = #tpu.dot_dimension_numbers<[1], [0], [0], [1], [0, 0, 1, 1], [], []>} : vector<8x128xbf16>, vector<128x64xbf16>, vector<8x64xf32> -> vector<8x64xf32>
    %395 = arith.addf %371, %394 : vector<8x64xf32>
    %396 = arith.addf %125, %395 : vector<8x64xf32>
    %c0_196 = arith.constant 0 : index
    %c0_197 = arith.constant 0 : index
    %c0_198 = arith.constant 0 : index
    %397 = vector.load %arg21[%c0_196, %c0_197, %c0_198] : memref<2x1x64xf32, #tpu.memory_space<vmem>>, vector<1x1x64xf32>
    %398 = vector.shape_cast %397 : vector<1x1x64xf32> to vector<1x64xf32>
    %399 = vector.broadcast %398 : vector<1x64xf32> to vector<8x64xf32>
    %400 = arith.addf %396, %399 : vector<8x64xf32>
    %cst_199 = arith.constant dense<0.000000e+00> : vector<8xf32>
    %401 = vector.multi_reduction <add>, %400, %cst_199 [1] : vector<8x64xf32> to vector<8xf32>
    %402 = vector.shape_cast %401 : vector<8xf32> to vector<8x1xf32>
    %cst_200 = arith.constant 6.400000e+01 : f32
    %403 = vector.broadcast %cst_200 : f32 to vector<8x1xf32>
    %404 = arith.divf %402, %403 : vector<8x1xf32>
    %405 = vector.broadcast %404 : vector<8x1xf32> to vector<8x64xf32>
    %406 = arith.subf %400, %405 : vector<8x64xf32>
    %407 = arith.mulf %406, %406 : vector<8x64xf32>
    %cst_201 = arith.constant dense<0.000000e+00> : vector<8xf32>
    %408 = vector.multi_reduction <add>, %407, %cst_201 [1] : vector<8x64xf32> to vector<8xf32>
    %409 = vector.shape_cast %408 : vector<8xf32> to vector<8x1xf32>
    %cst_202 = arith.constant 6.400000e+01 : f32
    %410 = vector.broadcast %cst_202 : f32 to vector<8x1xf32>
    %411 = arith.divf %409, %410 : vector<8x1xf32>
    %412 = vector.broadcast %404 : vector<8x1xf32> to vector<8x64xf32>
    %413 = arith.subf %400, %412 : vector<8x64xf32>
    %cst_203 = arith.constant 9.99999974E-6 : f32
    %414 = vector.broadcast %cst_203 : f32 to vector<8x1xf32>
    %415 = arith.addf %411, %414 : vector<8x1xf32>
    %416 = math.rsqrt %415 : vector<8x1xf32>
    %417 = vector.broadcast %416 : vector<8x1xf32> to vector<8x64xf32>
    %418 = arith.mulf %413, %417 : vector<8x64xf32>
    %c1_204 = arith.constant 1 : index
    %c0_205 = arith.constant 0 : index
    %c0_206 = arith.constant 0 : index
    %419 = vector.load %arg10[%c1_204, %c0_205, %c0_206] : memref<2x1x64xf32, #tpu.memory_space<vmem>>, vector<1x1x64xf32>
    %420 = vector.shape_cast %419 : vector<1x1x64xf32> to vector<1x64xf32>
    %421 = vector.broadcast %420 : vector<1x64xf32> to vector<8x64xf32>
    %422 = arith.mulf %418, %421 : vector<8x64xf32>
    %c1_207 = arith.constant 1 : index
    %c0_208 = arith.constant 0 : index
    %c0_209 = arith.constant 0 : index
    %423 = vector.load %arg11[%c1_207, %c0_208, %c0_209] : memref<2x1x64xf32, #tpu.memory_space<vmem>>, vector<1x1x64xf32>
    %424 = vector.shape_cast %423 : vector<1x1x64xf32> to vector<1x64xf32>
    %425 = vector.broadcast %424 : vector<1x64xf32> to vector<8x64xf32>
    %426 = arith.addf %422, %425 : vector<8x64xf32>
    %c1_210 = arith.constant 1 : index
    %c0_211 = arith.constant 0 : index
    %c0_212 = arith.constant 0 : index
    %427 = vector.load %arg12[%c1_210, %c0_211, %c0_212] : memref<2x1x64xf32, #tpu.memory_space<vmem>>, vector<1x1x64xf32>
    %428 = vector.shape_cast %427 : vector<1x1x64xf32> to vector<1x64xf32>
    %429 = vector.broadcast %428 : vector<1x64xf32> to vector<15x64xf32>
    %430 = arith.mulf %144, %429 : vector<15x64xf32>
    %c1_213 = arith.constant 1 : index
    %c0_214 = arith.constant 0 : index
    %c0_215 = arith.constant 0 : index
    %431 = vector.load %arg13[%c1_213, %c0_214, %c0_215] : memref<2x1x64xf32, #tpu.memory_space<vmem>>, vector<1x1x64xf32>
    %432 = vector.shape_cast %431 : vector<1x1x64xf32> to vector<1x64xf32>
    %433 = vector.broadcast %432 : vector<1x64xf32> to vector<15x64xf32>
    %434 = arith.addf %430, %433 : vector<15x64xf32>
    %435 = arith.truncf %426 : vector<8x64xf32> to vector<8x64xbf16>
    %c1_216 = arith.constant 1 : index
    %c0_217 = arith.constant 0 : index
    %c0_218 = arith.constant 0 : index
    %436 = vector.load %arg14[%c1_216, %c0_217, %c0_218] : memref<2x64x1024xbf16, #tpu.memory_space<vmem>>, vector<1x64x1024xbf16>
    %437 = vector.shape_cast %436 : vector<1x64x1024xbf16> to vector<64x1024xbf16>
    %cst_219 = arith.constant dense<0.000000e+00> : vector<8x1024xf32>
    %438 = tpu.matmul %435, %437, %cst_219 {dimension_numbers = #tpu.dot_dimension_numbers<[1], [0], [0], [1], [0, 0, 1, 1], [], []>} : vector<8x64xbf16>, vector<64x1024xbf16>, vector<8x1024xf32> -> vector<8x1024xf32>
    %c1_220 = arith.constant 1 : index
    %c0_221 = arith.constant 0 : index
    %c0_222 = arith.constant 0 : index
    %439 = vector.load %arg15[%c1_220, %c0_221, %c0_222] : memref<2x1x1024xf32, #tpu.memory_space<vmem>>, vector<1x1x1024xf32>
    %440 = vector.shape_cast %439 : vector<1x1x1024xf32> to vector<1x1024xf32>
    %441 = vector.broadcast %440 : vector<1x1024xf32> to vector<8x1024xf32>
    %442 = arith.addf %438, %441 : vector<8x1024xf32>
    %443 = arith.truncf %434 : vector<15x64xf32> to vector<15x64xbf16>
    %c1_223 = arith.constant 1 : index
    %c0_224 = arith.constant 0 : index
    %c0_225 = arith.constant 0 : index
    %444 = vector.load %arg16[%c1_223, %c0_224, %c0_225] : memref<2x64x1024xbf16, #tpu.memory_space<vmem>>, vector<1x64x1024xbf16>
    %445 = vector.shape_cast %444 : vector<1x64x1024xbf16> to vector<64x1024xbf16>
    %cst_226 = arith.constant dense<0.000000e+00> : vector<15x1024xf32>
    %446 = tpu.matmul %443, %445, %cst_226 {dimension_numbers = #tpu.dot_dimension_numbers<[1], [0], [0], [1], [0, 0, 1, 1], [], []>} : vector<15x64xbf16>, vector<64x1024xbf16>, vector<15x1024xf32> -> vector<15x1024xf32>
    %c1_227 = arith.constant 1 : index
    %c0_228 = arith.constant 0 : index
    %c0_229 = arith.constant 0 : index
    %447 = vector.load %arg17[%c1_227, %c0_228, %c0_229] : memref<2x1x1024xf32, #tpu.memory_space<vmem>>, vector<1x1x1024xf32>
    %448 = vector.shape_cast %447 : vector<1x1x1024xf32> to vector<1x1024xf32>
    %449 = vector.broadcast %448 : vector<1x1024xf32> to vector<15x1024xf32>
    %450 = arith.addf %446, %449 : vector<15x1024xf32>
    %451 = arith.truncf %434 : vector<15x64xf32> to vector<15x64xbf16>
    %c1_230 = arith.constant 1 : index
    %c0_231 = arith.constant 0 : index
    %c0_232 = arith.constant 0 : index
    %452 = vector.load %arg18[%c1_230, %c0_231, %c0_232] : memref<2x64x1024xbf16, #tpu.memory_space<vmem>>, vector<1x64x1024xbf16>
    %453 = vector.shape_cast %452 : vector<1x64x1024xbf16> to vector<64x1024xbf16>
    %cst_233 = arith.constant dense<0.000000e+00> : vector<15x1024xf32>
    %454 = tpu.matmul %451, %453, %cst_233 {dimension_numbers = #tpu.dot_dimension_numbers<[1], [0], [0], [1], [0, 0, 1, 1], [], []>} : vector<15x64xbf16>, vector<64x1024xbf16>, vector<15x1024xf32> -> vector<15x1024xf32>
    %c1_234 = arith.constant 1 : index
    %c0_235 = arith.constant 0 : index
    %c0_236 = arith.constant 0 : index
    %455 = vector.load %arg19[%c1_234, %c0_235, %c0_236] : memref<2x1x1024xf32, #tpu.memory_space<vmem>>, vector<1x1x1024xf32>
    %456 = vector.shape_cast %455 : vector<1x1x1024xf32> to vector<1x1024xf32>
    %457 = vector.broadcast %456 : vector<1x1024xf32> to vector<15x1024xf32>
    %458 = arith.addf %454, %457 : vector<15x1024xf32>
    %cst_237 = arith.constant 0.000000e+00 : f32
    %459 = vector.broadcast %cst_237 : f32 to vector<8x64xf32>
    %460 = vector.extract_strided_slice %442 {offsets = [0, 0], sizes = [8, 128], strides = [1, 1]} : vector<8x1024xf32> to vector<8x128xf32>
    %461 = vector.extract_strided_slice %450 {offsets = [0, 0], sizes = [15, 128], strides = [1, 1]} : vector<15x1024xf32> to vector<15x128xf32>
    %462 = vector.extract_strided_slice %458 {offsets = [0, 0], sizes = [15, 128], strides = [1, 1]} : vector<15x1024xf32> to vector<15x128xf32>
    %463 = arith.truncf %460 : vector<8x128xf32> to vector<8x128xbf16>
    %464 = arith.truncf %461 : vector<15x128xf32> to vector<15x128xbf16>
    %cst_238 = arith.constant dense<0.000000e+00> : vector<8x15xf32>
    %465 = tpu.matmul %463, %464, %cst_238 {dimension_numbers = #tpu.dot_dimension_numbers<[1], [1], [0], [0], [0, 0, 1, 0], [], []>} : vector<8x128xbf16>, vector<15x128xbf16>, vector<8x15xf32> -> vector<8x15xf32>
    %cst_239 = arith.constant dense<0xFF800000> : vector<8xf32>
    %466 = vector.multi_reduction <maximumf>, %465, %cst_239 [1] : vector<8x15xf32> to vector<8xf32>
    %467 = vector.shape_cast %466 : vector<8xf32> to vector<8x1xf32>
    %468 = vector.broadcast %467 : vector<8x1xf32> to vector<8x15xf32>
    %469 = arith.subf %465, %468 : vector<8x15xf32>
    %470 = math.exp %469 : vector<8x15xf32>
    %cst_240 = arith.constant dense<0.000000e+00> : vector<8xf32>
    %471 = vector.multi_reduction <add>, %470, %cst_240 [1] : vector<8x15xf32> to vector<8xf32>
    %472 = vector.shape_cast %471 : vector<8xf32> to vector<8x1xf32>
    %473 = tpu.reciprocal %472 {approx = true} : vector<8x1xf32> -> vector<8x1xf32>
    %474 = vector.broadcast %473 : vector<8x1xf32> to vector<8x15xf32>
    %475 = arith.mulf %470, %474 : vector<8x15xf32>
    %476 = arith.truncf %475 : vector<8x15xf32> to vector<8x15xbf16>
    %477 = arith.truncf %462 : vector<15x128xf32> to vector<15x128xbf16>
    %cst_241 = arith.constant dense<0.000000e+00> : vector<8x128xf32>
    %478 = tpu.matmul %476, %477, %cst_241 {dimension_numbers = #tpu.dot_dimension_numbers<[1], [0], [0], [1], [0, 0, 1, 1], [], []>} : vector<8x15xbf16>, vector<15x128xbf16>, vector<8x128xf32> -> vector<8x128xf32>
    %479 = arith.truncf %478 : vector<8x128xf32> to vector<8x128xbf16>
    %c1_242 = arith.constant 1 : index
    %c0_243 = arith.constant 0 : index
    %c0_244 = arith.constant 0 : index
    %c0_245 = arith.constant 0 : index
    %480 = vector.load %arg20[%c1_242, %c0_243, %c0_244, %c0_245] : memref<2x8x128x64xbf16, #tpu.memory_space<vmem>>, vector<1x1x128x64xbf16>
    %481 = vector.shape_cast %480 : vector<1x1x128x64xbf16> to vector<128x64xbf16>
    %cst_246 = arith.constant dense<0.000000e+00> : vector<8x64xf32>
    %482 = tpu.matmul %479, %481, %cst_246 {dimension_numbers = #tpu.dot_dimension_numbers<[1], [0], [0], [1], [0, 0, 1, 1], [], []>} : vector<8x128xbf16>, vector<128x64xbf16>, vector<8x64xf32> -> vector<8x64xf32>
    %483 = arith.addf %459, %482 : vector<8x64xf32>
    %484 = vector.extract_strided_slice %442 {offsets = [0, 128], sizes = [8, 128], strides = [1, 1]} : vector<8x1024xf32> to vector<8x128xf32>
    %485 = vector.extract_strided_slice %450 {offsets = [0, 128], sizes = [15, 128], strides = [1, 1]} : vector<15x1024xf32> to vector<15x128xf32>
    %486 = vector.extract_strided_slice %458 {offsets = [0, 128], sizes = [15, 128], strides = [1, 1]} : vector<15x1024xf32> to vector<15x128xf32>
    %487 = arith.truncf %484 : vector<8x128xf32> to vector<8x128xbf16>
    %488 = arith.truncf %485 : vector<15x128xf32> to vector<15x128xbf16>
    %cst_247 = arith.constant dense<0.000000e+00> : vector<8x15xf32>
    %489 = tpu.matmul %487, %488, %cst_247 {dimension_numbers = #tpu.dot_dimension_numbers<[1], [1], [0], [0], [0, 0, 1, 0], [], []>} : vector<8x128xbf16>, vector<15x128xbf16>, vector<8x15xf32> -> vector<8x15xf32>
    %cst_248 = arith.constant dense<0xFF800000> : vector<8xf32>
    %490 = vector.multi_reduction <maximumf>, %489, %cst_248 [1] : vector<8x15xf32> to vector<8xf32>
    %491 = vector.shape_cast %490 : vector<8xf32> to vector<8x1xf32>
    %492 = vector.broadcast %491 : vector<8x1xf32> to vector<8x15xf32>
    %493 = arith.subf %489, %492 : vector<8x15xf32>
    %494 = math.exp %493 : vector<8x15xf32>
    %cst_249 = arith.constant dense<0.000000e+00> : vector<8xf32>
    %495 = vector.multi_reduction <add>, %494, %cst_249 [1] : vector<8x15xf32> to vector<8xf32>
    %496 = vector.shape_cast %495 : vector<8xf32> to vector<8x1xf32>
    %497 = tpu.reciprocal %496 {approx = true} : vector<8x1xf32> -> vector<8x1xf32>
    %498 = vector.broadcast %497 : vector<8x1xf32> to vector<8x15xf32>
    %499 = arith.mulf %494, %498 : vector<8x15xf32>
    %500 = arith.truncf %499 : vector<8x15xf32> to vector<8x15xbf16>
    %501 = arith.truncf %486 : vector<15x128xf32> to vector<15x128xbf16>
    %cst_250 = arith.constant dense<0.000000e+00> : vector<8x128xf32>
    %502 = tpu.matmul %500, %501, %cst_250 {dimension_numbers = #tpu.dot_dimension_numbers<[1], [0], [0], [1], [0, 0, 1, 1], [], []>} : vector<8x15xbf16>, vector<15x128xbf16>, vector<8x128xf32> -> vector<8x128xf32>
    %503 = arith.truncf %502 : vector<8x128xf32> to vector<8x128xbf16>
    %c1_251 = arith.constant 1 : index
    %c1_252 = arith.constant 1 : index
    %c0_253 = arith.constant 0 : index
    %c0_254 = arith.constant 0 : index
    %504 = vector.load %arg20[%c1_251, %c1_252, %c0_253, %c0_254] : memref<2x8x128x64xbf16, #tpu.memory_space<vmem>>, vector<1x1x128x64xbf16>
    %505 = vector.shape_cast %504 : vector<1x1x128x64xbf16> to vector<128x64xbf16>
    %cst_255 = arith.constant dense<0.000000e+00> : vector<8x64xf32>
    %506 = tpu.matmul %503, %505, %cst_255 {dimension_numbers = #tpu.dot_dimension_numbers<[1], [0], [0], [1], [0, 0, 1, 1], [], []>} : vector<8x128xbf16>, vector<128x64xbf16>, vector<8x64xf32> -> vector<8x64xf32>
    %507 = arith.addf %483, %506 : vector<8x64xf32>
    %508 = vector.extract_strided_slice %442 {offsets = [0, 256], sizes = [8, 128], strides = [1, 1]} : vector<8x1024xf32> to vector<8x128xf32>
    %509 = vector.extract_strided_slice %450 {offsets = [0, 256], sizes = [15, 128], strides = [1, 1]} : vector<15x1024xf32> to vector<15x128xf32>
    %510 = vector.extract_strided_slice %458 {offsets = [0, 256], sizes = [15, 128], strides = [1, 1]} : vector<15x1024xf32> to vector<15x128xf32>
    %511 = arith.truncf %508 : vector<8x128xf32> to vector<8x128xbf16>
    %512 = arith.truncf %509 : vector<15x128xf32> to vector<15x128xbf16>
    %cst_256 = arith.constant dense<0.000000e+00> : vector<8x15xf32>
    %513 = tpu.matmul %511, %512, %cst_256 {dimension_numbers = #tpu.dot_dimension_numbers<[1], [1], [0], [0], [0, 0, 1, 0], [], []>} : vector<8x128xbf16>, vector<15x128xbf16>, vector<8x15xf32> -> vector<8x15xf32>
    %cst_257 = arith.constant dense<0xFF800000> : vector<8xf32>
    %514 = vector.multi_reduction <maximumf>, %513, %cst_257 [1] : vector<8x15xf32> to vector<8xf32>
    %515 = vector.shape_cast %514 : vector<8xf32> to vector<8x1xf32>
    %516 = vector.broadcast %515 : vector<8x1xf32> to vector<8x15xf32>
    %517 = arith.subf %513, %516 : vector<8x15xf32>
    %518 = math.exp %517 : vector<8x15xf32>
    %cst_258 = arith.constant dense<0.000000e+00> : vector<8xf32>
    %519 = vector.multi_reduction <add>, %518, %cst_258 [1] : vector<8x15xf32> to vector<8xf32>
    %520 = vector.shape_cast %519 : vector<8xf32> to vector<8x1xf32>
    %521 = tpu.reciprocal %520 {approx = true} : vector<8x1xf32> -> vector<8x1xf32>
    %522 = vector.broadcast %521 : vector<8x1xf32> to vector<8x15xf32>
    %523 = arith.mulf %518, %522 : vector<8x15xf32>
    %524 = arith.truncf %523 : vector<8x15xf32> to vector<8x15xbf16>
    %525 = arith.truncf %510 : vector<15x128xf32> to vector<15x128xbf16>
    %cst_259 = arith.constant dense<0.000000e+00> : vector<8x128xf32>
    %526 = tpu.matmul %524, %525, %cst_259 {dimension_numbers = #tpu.dot_dimension_numbers<[1], [0], [0], [1], [0, 0, 1, 1], [], []>} : vector<8x15xbf16>, vector<15x128xbf16>, vector<8x128xf32> -> vector<8x128xf32>
    %527 = arith.truncf %526 : vector<8x128xf32> to vector<8x128xbf16>
    %c1_260 = arith.constant 1 : index
    %c2_261 = arith.constant 2 : index
    %c0_262 = arith.constant 0 : index
    %c0_263 = arith.constant 0 : index
    %528 = vector.load %arg20[%c1_260, %c2_261, %c0_262, %c0_263] : memref<2x8x128x64xbf16, #tpu.memory_space<vmem>>, vector<1x1x128x64xbf16>
    %529 = vector.shape_cast %528 : vector<1x1x128x64xbf16> to vector<128x64xbf16>
    %cst_264 = arith.constant dense<0.000000e+00> : vector<8x64xf32>
    %530 = tpu.matmul %527, %529, %cst_264 {dimension_numbers = #tpu.dot_dimension_numbers<[1], [0], [0], [1], [0, 0, 1, 1], [], []>} : vector<8x128xbf16>, vector<128x64xbf16>, vector<8x64xf32> -> vector<8x64xf32>
    %531 = arith.addf %507, %530 : vector<8x64xf32>
    %532 = vector.extract_strided_slice %442 {offsets = [0, 384], sizes = [8, 128], strides = [1, 1]} : vector<8x1024xf32> to vector<8x128xf32>
    %533 = vector.extract_strided_slice %450 {offsets = [0, 384], sizes = [15, 128], strides = [1, 1]} : vector<15x1024xf32> to vector<15x128xf32>
    %534 = vector.extract_strided_slice %458 {offsets = [0, 384], sizes = [15, 128], strides = [1, 1]} : vector<15x1024xf32> to vector<15x128xf32>
    %535 = arith.truncf %532 : vector<8x128xf32> to vector<8x128xbf16>
    %536 = arith.truncf %533 : vector<15x128xf32> to vector<15x128xbf16>
    %cst_265 = arith.constant dense<0.000000e+00> : vector<8x15xf32>
    %537 = tpu.matmul %535, %536, %cst_265 {dimension_numbers = #tpu.dot_dimension_numbers<[1], [1], [0], [0], [0, 0, 1, 0], [], []>} : vector<8x128xbf16>, vector<15x128xbf16>, vector<8x15xf32> -> vector<8x15xf32>
    %cst_266 = arith.constant dense<0xFF800000> : vector<8xf32>
    %538 = vector.multi_reduction <maximumf>, %537, %cst_266 [1] : vector<8x15xf32> to vector<8xf32>
    %539 = vector.shape_cast %538 : vector<8xf32> to vector<8x1xf32>
    %540 = vector.broadcast %539 : vector<8x1xf32> to vector<8x15xf32>
    %541 = arith.subf %537, %540 : vector<8x15xf32>
    %542 = math.exp %541 : vector<8x15xf32>
    %cst_267 = arith.constant dense<0.000000e+00> : vector<8xf32>
    %543 = vector.multi_reduction <add>, %542, %cst_267 [1] : vector<8x15xf32> to vector<8xf32>
    %544 = vector.shape_cast %543 : vector<8xf32> to vector<8x1xf32>
    %545 = tpu.reciprocal %544 {approx = true} : vector<8x1xf32> -> vector<8x1xf32>
    %546 = vector.broadcast %545 : vector<8x1xf32> to vector<8x15xf32>
    %547 = arith.mulf %542, %546 : vector<8x15xf32>
    %548 = arith.truncf %547 : vector<8x15xf32> to vector<8x15xbf16>
    %549 = arith.truncf %534 : vector<15x128xf32> to vector<15x128xbf16>
    %cst_268 = arith.constant dense<0.000000e+00> : vector<8x128xf32>
    %550 = tpu.matmul %548, %549, %cst_268 {dimension_numbers = #tpu.dot_dimension_numbers<[1], [0], [0], [1], [0, 0, 1, 1], [], []>} : vector<8x15xbf16>, vector<15x128xbf16>, vector<8x128xf32> -> vector<8x128xf32>
    %551 = arith.truncf %550 : vector<8x128xf32> to vector<8x128xbf16>
    %c1_269 = arith.constant 1 : index
    %c3_270 = arith.constant 3 : index
    %c0_271 = arith.constant 0 : index
    %c0_272 = arith.constant 0 : index
    %552 = vector.load %arg20[%c1_269, %c3_270, %c0_271, %c0_272] : memref<2x8x128x64xbf16, #tpu.memory_space<vmem>>, vector<1x1x128x64xbf16>
    %553 = vector.shape_cast %552 : vector<1x1x128x64xbf16> to vector<128x64xbf16>
    %cst_273 = arith.constant dense<0.000000e+00> : vector<8x64xf32>
    %554 = tpu.matmul %551, %553, %cst_273 {dimension_numbers = #tpu.dot_dimension_numbers<[1], [0], [0], [1], [0, 0, 1, 1], [], []>} : vector<8x128xbf16>, vector<128x64xbf16>, vector<8x64xf32> -> vector<8x64xf32>
    %555 = arith.addf %531, %554 : vector<8x64xf32>
    %556 = vector.extract_strided_slice %442 {offsets = [0, 512], sizes = [8, 128], strides = [1, 1]} : vector<8x1024xf32> to vector<8x128xf32>
    %557 = vector.extract_strided_slice %450 {offsets = [0, 512], sizes = [15, 128], strides = [1, 1]} : vector<15x1024xf32> to vector<15x128xf32>
    %558 = vector.extract_strided_slice %458 {offsets = [0, 512], sizes = [15, 128], strides = [1, 1]} : vector<15x1024xf32> to vector<15x128xf32>
    %559 = arith.truncf %556 : vector<8x128xf32> to vector<8x128xbf16>
    %560 = arith.truncf %557 : vector<15x128xf32> to vector<15x128xbf16>
    %cst_274 = arith.constant dense<0.000000e+00> : vector<8x15xf32>
    %561 = tpu.matmul %559, %560, %cst_274 {dimension_numbers = #tpu.dot_dimension_numbers<[1], [1], [0], [0], [0, 0, 1, 0], [], []>} : vector<8x128xbf16>, vector<15x128xbf16>, vector<8x15xf32> -> vector<8x15xf32>
    %cst_275 = arith.constant dense<0xFF800000> : vector<8xf32>
    %562 = vector.multi_reduction <maximumf>, %561, %cst_275 [1] : vector<8x15xf32> to vector<8xf32>
    %563 = vector.shape_cast %562 : vector<8xf32> to vector<8x1xf32>
    %564 = vector.broadcast %563 : vector<8x1xf32> to vector<8x15xf32>
    %565 = arith.subf %561, %564 : vector<8x15xf32>
    %566 = math.exp %565 : vector<8x15xf32>
    %cst_276 = arith.constant dense<0.000000e+00> : vector<8xf32>
    %567 = vector.multi_reduction <add>, %566, %cst_276 [1] : vector<8x15xf32> to vector<8xf32>
    %568 = vector.shape_cast %567 : vector<8xf32> to vector<8x1xf32>
    %569 = tpu.reciprocal %568 {approx = true} : vector<8x1xf32> -> vector<8x1xf32>
    %570 = vector.broadcast %569 : vector<8x1xf32> to vector<8x15xf32>
    %571 = arith.mulf %566, %570 : vector<8x15xf32>
    %572 = arith.truncf %571 : vector<8x15xf32> to vector<8x15xbf16>
    %573 = arith.truncf %558 : vector<15x128xf32> to vector<15x128xbf16>
    %cst_277 = arith.constant dense<0.000000e+00> : vector<8x128xf32>
    %574 = tpu.matmul %572, %573, %cst_277 {dimension_numbers = #tpu.dot_dimension_numbers<[1], [0], [0], [1], [0, 0, 1, 1], [], []>} : vector<8x15xbf16>, vector<15x128xbf16>, vector<8x128xf32> -> vector<8x128xf32>
    %575 = arith.truncf %574 : vector<8x128xf32> to vector<8x128xbf16>
    %c1_278 = arith.constant 1 : index
    %c4_279 = arith.constant 4 : index
    %c0_280 = arith.constant 0 : index
    %c0_281 = arith.constant 0 : index
    %576 = vector.load %arg20[%c1_278, %c4_279, %c0_280, %c0_281] : memref<2x8x128x64xbf16, #tpu.memory_space<vmem>>, vector<1x1x128x64xbf16>
    %577 = vector.shape_cast %576 : vector<1x1x128x64xbf16> to vector<128x64xbf16>
    %cst_282 = arith.constant dense<0.000000e+00> : vector<8x64xf32>
    %578 = tpu.matmul %575, %577, %cst_282 {dimension_numbers = #tpu.dot_dimension_numbers<[1], [0], [0], [1], [0, 0, 1, 1], [], []>} : vector<8x128xbf16>, vector<128x64xbf16>, vector<8x64xf32> -> vector<8x64xf32>
    %579 = arith.addf %555, %578 : vector<8x64xf32>
    %580 = vector.extract_strided_slice %442 {offsets = [0, 640], sizes = [8, 128], strides = [1, 1]} : vector<8x1024xf32> to vector<8x128xf32>
    %581 = vector.extract_strided_slice %450 {offsets = [0, 640], sizes = [15, 128], strides = [1, 1]} : vector<15x1024xf32> to vector<15x128xf32>
    %582 = vector.extract_strided_slice %458 {offsets = [0, 640], sizes = [15, 128], strides = [1, 1]} : vector<15x1024xf32> to vector<15x128xf32>
    %583 = arith.truncf %580 : vector<8x128xf32> to vector<8x128xbf16>
    %584 = arith.truncf %581 : vector<15x128xf32> to vector<15x128xbf16>
    %cst_283 = arith.constant dense<0.000000e+00> : vector<8x15xf32>
    %585 = tpu.matmul %583, %584, %cst_283 {dimension_numbers = #tpu.dot_dimension_numbers<[1], [1], [0], [0], [0, 0, 1, 0], [], []>} : vector<8x128xbf16>, vector<15x128xbf16>, vector<8x15xf32> -> vector<8x15xf32>
    %cst_284 = arith.constant dense<0xFF800000> : vector<8xf32>
    %586 = vector.multi_reduction <maximumf>, %585, %cst_284 [1] : vector<8x15xf32> to vector<8xf32>
    %587 = vector.shape_cast %586 : vector<8xf32> to vector<8x1xf32>
    %588 = vector.broadcast %587 : vector<8x1xf32> to vector<8x15xf32>
    %589 = arith.subf %585, %588 : vector<8x15xf32>
    %590 = math.exp %589 : vector<8x15xf32>
    %cst_285 = arith.constant dense<0.000000e+00> : vector<8xf32>
    %591 = vector.multi_reduction <add>, %590, %cst_285 [1] : vector<8x15xf32> to vector<8xf32>
    %592 = vector.shape_cast %591 : vector<8xf32> to vector<8x1xf32>
    %593 = tpu.reciprocal %592 {approx = true} : vector<8x1xf32> -> vector<8x1xf32>
    %594 = vector.broadcast %593 : vector<8x1xf32> to vector<8x15xf32>
    %595 = arith.mulf %590, %594 : vector<8x15xf32>
    %596 = arith.truncf %595 : vector<8x15xf32> to vector<8x15xbf16>
    %597 = arith.truncf %582 : vector<15x128xf32> to vector<15x128xbf16>
    %cst_286 = arith.constant dense<0.000000e+00> : vector<8x128xf32>
    %598 = tpu.matmul %596, %597, %cst_286 {dimension_numbers = #tpu.dot_dimension_numbers<[1], [0], [0], [1], [0, 0, 1, 1], [], []>} : vector<8x15xbf16>, vector<15x128xbf16>, vector<8x128xf32> -> vector<8x128xf32>
    %599 = arith.truncf %598 : vector<8x128xf32> to vector<8x128xbf16>
    %c1_287 = arith.constant 1 : index
    %c5_288 = arith.constant 5 : index
    %c0_289 = arith.constant 0 : index
    %c0_290 = arith.constant 0 : index
    %600 = vector.load %arg20[%c1_287, %c5_288, %c0_289, %c0_290] : memref<2x8x128x64xbf16, #tpu.memory_space<vmem>>, vector<1x1x128x64xbf16>
    %601 = vector.shape_cast %600 : vector<1x1x128x64xbf16> to vector<128x64xbf16>
    %cst_291 = arith.constant dense<0.000000e+00> : vector<8x64xf32>
    %602 = tpu.matmul %599, %601, %cst_291 {dimension_numbers = #tpu.dot_dimension_numbers<[1], [0], [0], [1], [0, 0, 1, 1], [], []>} : vector<8x128xbf16>, vector<128x64xbf16>, vector<8x64xf32> -> vector<8x64xf32>
    %603 = arith.addf %579, %602 : vector<8x64xf32>
    %604 = vector.extract_strided_slice %442 {offsets = [0, 768], sizes = [8, 128], strides = [1, 1]} : vector<8x1024xf32> to vector<8x128xf32>
    %605 = vector.extract_strided_slice %450 {offsets = [0, 768], sizes = [15, 128], strides = [1, 1]} : vector<15x1024xf32> to vector<15x128xf32>
    %606 = vector.extract_strided_slice %458 {offsets = [0, 768], sizes = [15, 128], strides = [1, 1]} : vector<15x1024xf32> to vector<15x128xf32>
    %607 = arith.truncf %604 : vector<8x128xf32> to vector<8x128xbf16>
    %608 = arith.truncf %605 : vector<15x128xf32> to vector<15x128xbf16>
    %cst_292 = arith.constant dense<0.000000e+00> : vector<8x15xf32>
    %609 = tpu.matmul %607, %608, %cst_292 {dimension_numbers = #tpu.dot_dimension_numbers<[1], [1], [0], [0], [0, 0, 1, 0], [], []>} : vector<8x128xbf16>, vector<15x128xbf16>, vector<8x15xf32> -> vector<8x15xf32>
    %cst_293 = arith.constant dense<0xFF800000> : vector<8xf32>
    %610 = vector.multi_reduction <maximumf>, %609, %cst_293 [1] : vector<8x15xf32> to vector<8xf32>
    %611 = vector.shape_cast %610 : vector<8xf32> to vector<8x1xf32>
    %612 = vector.broadcast %611 : vector<8x1xf32> to vector<8x15xf32>
    %613 = arith.subf %609, %612 : vector<8x15xf32>
    %614 = math.exp %613 : vector<8x15xf32>
    %cst_294 = arith.constant dense<0.000000e+00> : vector<8xf32>
    %615 = vector.multi_reduction <add>, %614, %cst_294 [1] : vector<8x15xf32> to vector<8xf32>
    %616 = vector.shape_cast %615 : vector<8xf32> to vector<8x1xf32>
    %617 = tpu.reciprocal %616 {approx = true} : vector<8x1xf32> -> vector<8x1xf32>
    %618 = vector.broadcast %617 : vector<8x1xf32> to vector<8x15xf32>
    %619 = arith.mulf %614, %618 : vector<8x15xf32>
    %620 = arith.truncf %619 : vector<8x15xf32> to vector<8x15xbf16>
    %621 = arith.truncf %606 : vector<15x128xf32> to vector<15x128xbf16>
    %cst_295 = arith.constant dense<0.000000e+00> : vector<8x128xf32>
    %622 = tpu.matmul %620, %621, %cst_295 {dimension_numbers = #tpu.dot_dimension_numbers<[1], [0], [0], [1], [0, 0, 1, 1], [], []>} : vector<8x15xbf16>, vector<15x128xbf16>, vector<8x128xf32> -> vector<8x128xf32>
    %623 = arith.truncf %622 : vector<8x128xf32> to vector<8x128xbf16>
    %c1_296 = arith.constant 1 : index
    %c6_297 = arith.constant 6 : index
    %c0_298 = arith.constant 0 : index
    %c0_299 = arith.constant 0 : index
    %624 = vector.load %arg20[%c1_296, %c6_297, %c0_298, %c0_299] : memref<2x8x128x64xbf16, #tpu.memory_space<vmem>>, vector<1x1x128x64xbf16>
    %625 = vector.shape_cast %624 : vector<1x1x128x64xbf16> to vector<128x64xbf16>
    %cst_300 = arith.constant dense<0.000000e+00> : vector<8x64xf32>
    %626 = tpu.matmul %623, %625, %cst_300 {dimension_numbers = #tpu.dot_dimension_numbers<[1], [0], [0], [1], [0, 0, 1, 1], [], []>} : vector<8x128xbf16>, vector<128x64xbf16>, vector<8x64xf32> -> vector<8x64xf32>
    %627 = arith.addf %603, %626 : vector<8x64xf32>
    %628 = vector.extract_strided_slice %442 {offsets = [0, 896], sizes = [8, 128], strides = [1, 1]} : vector<8x1024xf32> to vector<8x128xf32>
    %629 = vector.extract_strided_slice %450 {offsets = [0, 896], sizes = [15, 128], strides = [1, 1]} : vector<15x1024xf32> to vector<15x128xf32>
    %630 = vector.extract_strided_slice %458 {offsets = [0, 896], sizes = [15, 128], strides = [1, 1]} : vector<15x1024xf32> to vector<15x128xf32>
    %631 = arith.truncf %628 : vector<8x128xf32> to vector<8x128xbf16>
    %632 = arith.truncf %629 : vector<15x128xf32> to vector<15x128xbf16>
    %cst_301 = arith.constant dense<0.000000e+00> : vector<8x15xf32>
    %633 = tpu.matmul %631, %632, %cst_301 {dimension_numbers = #tpu.dot_dimension_numbers<[1], [1], [0], [0], [0, 0, 1, 0], [], []>} : vector<8x128xbf16>, vector<15x128xbf16>, vector<8x15xf32> -> vector<8x15xf32>
    %cst_302 = arith.constant dense<0xFF800000> : vector<8xf32>
    %634 = vector.multi_reduction <maximumf>, %633, %cst_302 [1] : vector<8x15xf32> to vector<8xf32>
    %635 = vector.shape_cast %634 : vector<8xf32> to vector<8x1xf32>
    %636 = vector.broadcast %635 : vector<8x1xf32> to vector<8x15xf32>
    %637 = arith.subf %633, %636 : vector<8x15xf32>
    %638 = math.exp %637 : vector<8x15xf32>
    %cst_303 = arith.constant dense<0.000000e+00> : vector<8xf32>
    %639 = vector.multi_reduction <add>, %638, %cst_303 [1] : vector<8x15xf32> to vector<8xf32>
    %640 = vector.shape_cast %639 : vector<8xf32> to vector<8x1xf32>
    %641 = tpu.reciprocal %640 {approx = true} : vector<8x1xf32> -> vector<8x1xf32>
    %642 = vector.broadcast %641 : vector<8x1xf32> to vector<8x15xf32>
    %643 = arith.mulf %638, %642 : vector<8x15xf32>
    %644 = arith.truncf %643 : vector<8x15xf32> to vector<8x15xbf16>
    %645 = arith.truncf %630 : vector<15x128xf32> to vector<15x128xbf16>
    %cst_304 = arith.constant dense<0.000000e+00> : vector<8x128xf32>
    %646 = tpu.matmul %644, %645, %cst_304 {dimension_numbers = #tpu.dot_dimension_numbers<[1], [0], [0], [1], [0, 0, 1, 1], [], []>} : vector<8x15xbf16>, vector<15x128xbf16>, vector<8x128xf32> -> vector<8x128xf32>
    %647 = arith.truncf %646 : vector<8x128xf32> to vector<8x128xbf16>
    %c1_305 = arith.constant 1 : index
    %c7_306 = arith.constant 7 : index
    %c0_307 = arith.constant 0 : index
    %c0_308 = arith.constant 0 : index
    %648 = vector.load %arg20[%c1_305, %c7_306, %c0_307, %c0_308] : memref<2x8x128x64xbf16, #tpu.memory_space<vmem>>, vector<1x1x128x64xbf16>
    %649 = vector.shape_cast %648 : vector<1x1x128x64xbf16> to vector<128x64xbf16>
    %cst_309 = arith.constant dense<0.000000e+00> : vector<8x64xf32>
    %650 = tpu.matmul %647, %649, %cst_309 {dimension_numbers = #tpu.dot_dimension_numbers<[1], [0], [0], [1], [0, 0, 1, 1], [], []>} : vector<8x128xbf16>, vector<128x64xbf16>, vector<8x64xf32> -> vector<8x64xf32>
    %651 = arith.addf %627, %650 : vector<8x64xf32>
    %652 = arith.addf %400, %651 : vector<8x64xf32>
    %c1_310 = arith.constant 1 : index
    %c0_311 = arith.constant 0 : index
    %c0_312 = arith.constant 0 : index
    %653 = vector.load %arg21[%c1_310, %c0_311, %c0_312] : memref<2x1x64xf32, #tpu.memory_space<vmem>>, vector<1x1x64xf32>
    %654 = vector.shape_cast %653 : vector<1x1x64xf32> to vector<1x64xf32>
    %655 = vector.broadcast %654 : vector<1x64xf32> to vector<8x64xf32>
    %656 = arith.addf %652, %655 : vector<8x64xf32>
    %c0_313 = arith.constant 0 : index
    %c0_314 = arith.constant 0 : index
    %657 = vector.load %arg22[%c0_313, %c0_314] : memref<8x64xf32, #tpu.memory_space<vmem>>, vector<8x64xf32>
    tpu.vector_store %arg22[%c0_313, %c0_314], %656 {strides = array<i32>} : memref<8x64xf32, #tpu.memory_space<vmem>>, vector<8x64xf32>,
    return
  }
}

</mosaic_0001>

<bundles_post_ra>
// kernel: aggregator_forward.1
= control target key start
LH: loop header
LB: loop body
LE: loop exit
PB: predicated region body
PF: predicated region fallthrough
CT: control target
= control target key end

     0   :  { %vm73_vm0 = vcmask 261120   ;;  %v7093_v2 = vmov 32.0   ;;  %v7094_v5 = vmov 0   ;;  %vm314_vm5 = vcmask 523264   ;;  %s9523_s0 = inlined_call_operand.vmem [shape: f32[8,32], index: 0, kind: input, shape index: {}]   ;;  %s9524_s4 = inlined_call_operand.vmem [shape: f32[4,8,1], index: 4, kind: input, shape index: {}]   ;;  %s9525_s8 = inlined_call_operand.vmem [shape: bf16[4,32,64], index: 8, kind: input, shape index: {}]   ;;  %s9526_s5 = inlined_call_operand.vmem [shape: bf16[4,32,64], index: 5, kind: input, shape index: {}]   ;;  %s9527_s2 = inlined_call_operand.vmem [shape: f32[8,32], index: 2, kind: input, shape index: {}]   ;;  %s9528_s3 = inlined_call_operand.vmem [shape: f32[8,32], index: 3, kind: input, shape index: {}]   ;;  %s9529_s7 = inlined_call_operand.vmem [shape: bf16[4,64,64], index: 7, kind: input, shape index: {}]   ;;  %s9530_s6 = inlined_call_operand.vmem [shape: f32[8,64], index: 6, kind: input, shape index: {}]   ;;  %s9531_s1 = inlined_call_operand.vmem [shape: f32[15,64], index: 1, kind: input, shape index: {}]   ;;  %s9532_s9 = inlined_call_operand.vmem [shape: f32[8,64], index: 9, kind: input, shape index: {}]   ;;  %s9533_s10 = inlined_call_operand.vmem [shape: f32[2,1,64], index: 10, kind: input, shape index: {}]   ;;  %s9534_s11 = inlined_call_operand.vmem [shape: f32[2,1,64], index: 11, kind: input, shape index: {}]   ;;  %s9535_s12 = inlined_call_operand.vmem [shape: f32[2,1,64], index: 12, kind: input, shape index: {}]   ;;  %s9536_s13 = inlined_call_operand.vmem [shape: f32[2,1,64], index: 13, kind: input, shape index: {}]   ;;  %s9537_s14 = inlined_call_operand.vmem [shape: bf16[2,64,1024], index: 14, kind: input, shape index: {}]   ;;  %s9538_s16 = inlined_call_operand.vmem [shape: bf16[2,64,1024], index: 16, kind: input, shape index: {}]   ;;  %s9539_s18 = inlined_call_operand.vmem [shape: bf16[2,64,1024], index: 18, kind: input, shape index: {}]   ;;  %s9540_s17 = inlined_call_operand.vmem [shape: f32[2,1,1024], index: 17, kind: input, shape index: {}]   ;;  %s9541_s15 = inlined_call_operand.vmem [shape: f32[2,1,1024], index: 15, kind: input, shape index: {}]   ;;  %s9542_s20 = inlined_call_operand.vmem [shape: bf16[2,8,128,64], index: 20, kind: input, shape index: {}]   ;;  %s9543_s19 = inlined_call_operand.vmem [shape: f32[2,1,1024], index: 19, kind: input, shape index: {}]   ;;  %s9544_s21 = inlined_call_operand.vmem [shape: f32[2,1,64], index: 21, kind: input, shape index: {}]   ;;  %s9545_s22 = inlined_call_operand.vmem [shape: f32[8,64], index: 22, kind: output, shape index: {}]  }
   0x1   :  { %9550 = sst [smem:[#allocation2_spill]] %s9523_s0  ;;  %7013 = vrcp.f32 %v7093_v2  ;;  %7000 = vset.pattern.permute.xlu1 %v7094_v5  ;;  %7001 = vset.pattern.permute.xlu2 %v7094_v5  ;;  %vm636_vm6 = vcmask 522240  }
   0x2   :  { %9551 = sst [smem:[#allocation3_spill]] %s9524_s4  ;;  %7002 = vset.pattern.permute.xlu0 %v7094_v5 }
   0x3   :  { %9552 = sst [smem:[#allocation4_spill]] %s9525_s8 }
   0x4   :  { %9553 = sst [smem:[#allocation5_spill]] %s9526_s5 }
   0x5   :  { %9554 = sst [smem:[#allocation6_spill]] %s9527_s2 }
   0x6   :  { %9555 = sst [smem:[#allocation7_spill]] %s9528_s3 }
   0x7   :  { %9556 = sst [smem:[#allocation8_spill]] %s9529_s7  ;;  %v7014_v6 = vpop.eup %7013 }
   0x8   :  { %s9557_s29 = sld [smem:[#allocation2_spill]]  ;;  %v78_v7 = vmul.f32 32.0, %v7014_v6  ;;  %vm82_vm1 = vweird.f32 %v7014_v6 }
   0x9   :  { %s9558_s0 = sld [smem:[#allocation3_spill]] }
   0xa   :  { %v79_v10 = vsub.f32 1.0, %v78_v7  ;;  %s9559_s27 = sld [smem:[#allocation4_spill]] }
   0xb   :  { %s9560_s4 = sld [smem:[#allocation5_spill]] }
   0xc   :  { %v80_v11 = vmul.f32 %v7014_v6, %v79_v10  ;;  %s9561_s26 = sld [smem:[#allocation6_spill]] }
   0xd   :  { %s9563_s25 = sld [smem:[#allocation8_spill]] }
   0xe   :  { %v7215_v0 = vld [vmem:[%s9557_s29] sm:$0xff]  ;;  %v81_v12 = vadd.f32 %v7014_v6, %v80_v11 }
   0xf   :  { %v74_v1 = vsel %vm73_vm0, %v7215_v0, 0.0  ;;  %v4774_v3 = vld [vmem:[%s9558_s0 + $0x8] sm:$0xff]  ;;  %v108_v4 = vld [vmem:[%s9558_s0] sm:$0xff]  ;;  %v4788_v8 = vld [vmem:[%s9558_s0 + $0x10] sm:$0xff] }
  0x10   :  { %75 = vadd.xlane.f32.xlu0 %v74_v1  ;;  %153 = vperm.xlu1 %7000, %v4774_v3   ;;  %v4802_v9 = vld [vmem:[%s9558_s0 + $0x18] sm:$0xff]  ;;  %v83_v13 = vsel %vm82_vm1, %v7014_v6, %v81_v12  ;;  %v6657_v19 = vld [vmem:[%s9559_s27 + $0x8] sm:$0xff]  ;;  %v6656_v21 = vld [vmem:[%s9559_s27] sm:$0xff]  ;;  %vm1727_vm1 = vcmask 1046528  }
  0x11   :  { %111 = vperm.xlu2 %7001, %v108_v4   ;;  %359 = vmatpush.bf16.msra.mxu1 %v6657_v19  ;;  %v6669_v25 = vld [vmem:[%s9559_s27 + $0x28] sm:$0xff]  ;;  %v6668_v27 = vld [vmem:[%s9559_s27 + $0x20] sm:$0xff]  ;;  %v6647_v31 = vld [vmem:[%s9560_s4 + $0x18] sm:$0xff] }
  0x12   :  { %v6645_v30 = vld [vmem:[%s9560_s4 + $0x8] sm:$0xff]  ;;  %184 = vmatpush.bf16.msra.mxu3 %v6647_v31  ;;  %v6644_v33 = vld [vmem:[%s9560_s4] sm:$0xff]  ;;  %v6646_v34 = vld [vmem:[%s9560_s4 + $0x10] sm:$0xff] }
  0x13   :  { %v6649_v32 = vld [vmem:[%s9560_s4 + $0x28] sm:$0xff]  ;;  %141 = vmatpush.bf16.msra.mxu0 %v6645_v30  ;;  %v6648_v35 = vld [vmem:[%s9560_s4 + $0x20] sm:$0xff]  ;;  %v6651_v38 = vld [vmem:[%s9560_s4 + $0x38] sm:$0xff] }
  0x14   :  { %227 = vmatpush.bf16.msra.mxu2 %v6649_v32  ;;  %v6650_v40 = vld [vmem:[%s9560_s4 + $0x30] sm:$0xff]  ;;  %v103_v47 = vld [vmem:[%s9561_s26] sm:$0xff]  ;;  %s9562_s4 = sld [smem:[#allocation7_spill]]  ;;  %v6663_v56 = vld [vmem:[%s9559_s27 + $0x18] sm:$0xff] }
  0x15   :  { %360 = vmatpush.bf16.msra.mxu1 %v6656_v21  ;;  %v6662_v60 = vld [vmem:[%s9559_s27 + $0x10] sm:$0xff]  ;;  %v6675_v63 = vld [vmem:[%s9559_s27 + $0x38] sm:$0xff]  ;;  %v6671_v30 = vld [vmem:[%s9563_s25 + $0x68] sm:$0xff] }
  0x16   :  { %185 = vmatpush.bf16.msra.mxu3 %v6646_v34  ;;  %v6674_v2 = vld [vmem:[%s9559_s27 + $0x30] sm:$0xff]  ;;  %v6655_v11 = vld [vmem:[%s9563_s25 + $0x18] sm:$0xff]  ;;  %v107_v31 = vld [vmem:[%s9530_s6] sm:$0xff] }
  0x17   :  { %142 = vmatpush.bf16.msra.mxu0 %v6644_v33  ;;  %v6661_v12 = vld [vmem:[%s9563_s25 + $0x38] sm:$0xff]  ;;  %v6664_v33 = vld [vmem:[%s9563_s25 + $0x40] sm:$0xff] }
  0x18   :  { %196 = vperm.xlu1 %7000, %v4788_v8   ;;  %228 = vmatpush.bf16.msra.mxu2 %v6648_v35  ;;  %v6667_v19 = vld [vmem:[%s9563_s25 + $0x58] sm:$0xff]  ;;  %v6670_v34 = vld [vmem:[%s9563_s25 + $0x60] sm:$0xff] }
  0x19   :  { %239 = vperm.xlu2 %7001, %v4802_v9   ;;  %535 = vmatpush.bf16.msrb.mxu1 %v6669_v25  ;;  %v6673_v21 = vld [vmem:[%s9563_s25 + $0x78] sm:$0xff]  ;;  %v6672_v25 = vld [vmem:[%s9563_s25 + $0x70] sm:$0xff] }
  0x1a   :  { %270 = vmatpush.bf16.msrb.mxu3 %v6651_v38  ;;  %v105_v50 = vld [vmem:[%s9562_s4] sm:$0xff] }
  0x1b   :  { %322 = vmatpush.bf16.msrb.mxu0 %v6655_v11 }
  0x1c   :  { %409 = vmatpush.bf16.msrb.mxu2 %v6661_v12 }
  0x1d   :  { %536 = vmatpush.bf16.msrb.mxu1 %v6668_v27 }
  0x1e   :  { %271 = vmatpush.bf16.msrb.mxu3 %v6650_v40 }
  0x6b   :  { %v7236_v20 = vpop.permute.xlu2 %111 }
  0x6c   :  { %v332_v22 = vmul.f32 %v7236_v20, %v7215_v0 }
  0x6e   :  { %v333_v23 = vpack.c.bf16 %v332_v22, %v332_v22 }
  0x70   :  { %4841 = vmatmul.msk.bf16.vlgmr.msra.gmra.mxu1 %vm73_vm0, %v333_v23  ;;  %v6666_v23 = vld [vmem:[%s9563_s25 + $0x50] sm:$0xff] }
  0x73   :  { %v7299_v61 = vpop.permute.xlu2 %239 }
  0x74   :  { %v595_v5 = vmul.f32 %v7299_v61, %v7215_v0 }
  0x76   :  { %v596_v6 = vpack.c.bf16 %v595_v5, %v595_v5 }
  0x82   :  { %v7244_v24 = vpop.permute.xlu1 %153 }
  0x83   :  { %v76_v14 = vpop.xlane.xlu0 %75  ;;  %v419_v3 = vmul.f32 %v7244_v24, %v7215_v0 }
  0x84   :  { %v84_v15 = vmul.f32 %v83_v13, %v76_v14  ;;  %v6653_v14 = vld [vmem:[%s9563_s25 + $0x8] sm:$0xff] }
  0x85   :  { %v420_v4 = vpack.c.bf16 %v419_v3, %v419_v3 }
  0x86   :  { %v85_v16 = vsub.f32 %v7215_v0, %v84_v15  ;;  %v6659_v15 = vld [vmem:[%s9563_s25 + $0x28] sm:$0xff] }
  0x88   :  { %v86_v17 = vmul.f32 %v85_v16, %v85_v16 }
  0x8a   :  { %v87_v18 = vsel %vm73_vm0, %v86_v17, 0.0  ;;  %v7249_v26 = vpop.permute.xlu1 %196  ;;  %v6658_v17 = vld [vmem:[%s9563_s25 + $0x20] sm:$0xff] }
  0x8b   :  { %88 = vadd.xlane.f32.xlu0 %v87_v18  ;;  %v507_v28 = vmul.f32 %v7249_v26, %v7215_v0  ;;  %v6654_v0 = vld [vmem:[%s9563_s25 + $0x10] sm:$0xff] }
  0x8c   :  { %323 = vmatpush.bf16.msrb.mxu0 %v6654_v0  ;;  %v7095_v0 = vmov 64.0  }
  0x8d   :  { %v508_v29 = vpack.c.bf16 %v507_v28, %v507_v28 }
  0x8f   :  { %4917 = vmatmul.msk.bf16.vlgmr.msrb.gmra.mxu1 %vm73_vm0, %v508_v29  ;;  %v6665_v29 = vld [vmem:[%s9563_s25 + $0x48] sm:$0xff] }
  0x90   :  { %324 = vmatpush.bf16.msrb.mxu0 %v6653_v14 }
  0xed   :  { %v7315_v7 = vpop.f32.mrf.mxu1 }
  0xf5   :  { %v364_v8 = vpop.f32.mrf.mxu1 }
  0xfe   :  { %v89_v36 = vpop.xlane.xlu0 %88 }
  0xff   :  { %v90_v37 = vmul.f32 %v89_v36, %v83_v13  ;;  %v6660_v13 = vld [vmem:[%s9563_s25 + $0x30] sm:$0xff] }
 0x100   :  { %410 = vmatpush.bf16.msrb.mxu2 %v6660_v13 }
 0x101   :  { %v91_v39 = vadd.f32 1e-05, %v90_v37 }
 0x103   :  { %7015 = vrsqrt.f32 %v91_v39  ;;  %vm98_vm3 = vweird.f32 %v91_v39 }
 0x104   :  { %411 = vmatpush.bf16.msrb.mxu2 %v6659_v15 }
 0x108   :  { %412 = vmatpush.bf16.msrb.mxu2 %v6658_v17 }
 0x109   :  { %v7016_v41 = vpop.eup %7015 }
 0x10a   :  { %v93_v42 = vmul.f32 %v7016_v41, %v91_v39  ;;  %vm99_vm2 = vweird.f32 %v7016_v41 }
 0x10b   :  { %vm100_vm4 = vmor %vm98_vm3, %vm99_vm2  ;;  %vm1728_vm2 = vcmask 1047552   ;;  %vm1710_vm3 = vcmask 121856  }
 0x10c   :  { %v94_v43 = vmul.f32 %v7016_v41, %v93_v42  ;;  %v7317_v9 = vpop.f32.mrf.mxu1 }
 0x10e   :  { %v95_v44 = vmul.f32 0.5, %v94_v43 }
 0x110   :  { %v96_v45 = vsub.f32 1.5, %v95_v44 }
 0x112   :  { %v97_v46 = vmul.f32 %v7016_v41, %v96_v45 }
 0x114   :  { %v101_v48 = vsel %vm100_vm4, %v7016_v41, %v97_v46  ;;  %v540_v10 = vpop.f32.mrf.mxu1 }
 0x115   :  { %v102_v49 = vmul.f32 %v101_v48, %v85_v16  ;;  %v6652_v16 = vld [vmem:[%s9563_s25] sm:$0xff] }
 0x116   :  { %325 = vmatpush.bf16.msrb.mxu0 %v6652_v16 }
 0x117   :  { %v104_v51 = vmul.f32 %v103_v47, %v102_v49 }
 0x119   :  { %v106_v52 = vadd.f32 %v105_v50, %v104_v51 }
 0x11b   :  { %v114_v53 = vmul.f32 %v7236_v20, %v106_v52  ;;  %v156_v54 = vmul.f32 %v7244_v24, %v106_v52  ;;  %v199_v55 = vmul.f32 %v7249_v26, %v106_v52  ;;  %v242_v62 = vmul.f32 %v7299_v61, %v106_v52 }
 0x11d   :  { %v115_v57 = vpack.c.bf16 %v114_v53, %v114_v53  ;;  %v157_v58 = vpack.c.bf16 %v156_v54, %v156_v54  ;;  %v200_v59 = vpack.c.bf16 %v199_v55, %v199_v55  ;;  %v243_v1 = vpack.c.bf16 %v242_v62, %v242_v62  ;;  %v631_v53 = vld [vmem:[%s9531_s1] sm:$0xff]  ;;  %v632_v54 = vld [vmem:[%s9531_s1 + $0x8] sm:$0x7f] }
 0x11e   :  { %v637_v55 = vsel %vm636_vm6, %v632_v54, 0.0 }
 0x11f   :  { %4773 = vmatmul.msk.bf16.vlgmr.msra.gmra.mxu0 %vm73_vm0, %v115_v57  ;;  %4787 = vmatmul.msk.bf16.vlgmr.msra.gmra.mxu3 %vm73_vm0, %v157_v58  ;;  %v279_v57 = vld [vmem:[%s9532_s9] sm:$0xff] }
 0x120   :  { %4801 = vmatmul.msk.bf16.vlgmr.msra.gmra.mxu2 %vm73_vm0, %v200_v59  ;;  %447 = vmatpush.bf16.msra.mxu3 %v6663_v56 }
 0x121   :  { %497 = vmatpush.bf16.msra.mxu0 %v6667_v19  ;;  %585 = vmatpush.bf16.msra.mxu2 %v6673_v21 }
 0x122   :  { %638 = vadd.xlane.f32.xlu2 %v637_v55 }
 0x124   :  { %448 = vmatpush.bf16.msra.mxu3 %v6662_v60 }
 0x125   :  { %498 = vmatpush.bf16.msra.mxu0 %v6666_v23  ;;  %586 = vmatpush.bf16.msra.mxu2 %v6672_v25 }
 0x129   :  { %499 = vmatpush.bf16.msra.mxu0 %v6665_v29  ;;  %587 = vmatpush.bf16.msra.mxu2 %v6671_v30 }
 0x12d   :  { %500 = vmatpush.bf16.msra.mxu0 %v6664_v33  ;;  %588 = vmatpush.bf16.msra.mxu2 %v6670_v34 }
 0x12f   :  { %4815 = vmatmul.msk.bf16.vlgmr.msrb.gmra.mxu3 %vm73_vm0, %v243_v1 }
 0x130   :  { %623 = vmatpush.bf16.msrb.mxu3 %v6675_v63 }
 0x134   :  { %624 = vmatpush.bf16.msrb.mxu3 %v6674_v2 }
 0x13f   :  { %4879 = vmatmul.msk.bf16.vlgmr.msra.gmra.mxu3 %vm73_vm0, %v420_v4 }
 0x14f   :  { %4955 = vmatmul.msk.bf16.vlgmr.msrb.gmra.mxu3 %vm73_vm0, %v596_v6 }
 0x19c   :  { %v144_v18 = vpop.f32.mrf.mxu0 }
 0x19d   :  { %v148_v35 = vadd.f32 %v144_v18, %v107_v31 }
 0x1a2   :  { %v187_v22 = vpop.f32.mrf.mxu3 }
 0x1a3   :  { %v230_v27 = vpop.f32.mrf.mxu2  ;;  %v191_v37 = vadd.f32 %v187_v22, %v148_v35  ;;  %v5054_v35 = vld [vmem:[%s9537_s14 + $0xc0] sm:$0xf] }
 0x1a4   :  { %v146_v28 = vpop.f32.mrf.mxu0 }
 0x1a5   :  { %v234_v38 = vadd.f32 %v230_v27, %v191_v37  ;;  %v639_v27 = vpop.xlane.xlu2 %638  ;;  %v6700_v37 = vld [vmem:[%s9537_s14 + $0xc4] sm:$0xf] }
 0x1aa   :  { %v189_v32 = vpop.f32.mrf.mxu3 }
 0x1ab   :  { %v232_v36 = vpop.f32.mrf.mxu2 }
 0x1ac   :  { %v6704_v36 = vld [vmem:[%s9537_s14 + $0xdc] sm:$0xf0] }
 0x1b2   :  { %v273_v39 = vpop.f32.mrf.mxu3 }
 0x1b3   :  { %v277_v40 = vadd.f32 %v273_v39, %v234_v38  ;;  %v5055_v38 = vor.u32 %v6704_v36, %v5054_v35  ;;  %v5056_v39 = vld [vmem:[%s9537_s14 + $0xe0] sm:$0xf0] }
 0x1b5   :  { %7017 = vtanh.f32 %v277_v40  ;;  %v5062_v40 = vld [vmem:[%s9537_s14 + $0xc8] sm:$0xf] }
 0x1b6   :  { %7019 = vrcp.f32 %v7095_v0  ;;  %v4966_v0 = vld [vmem:[%s9537_s14 + $0x8] sm:$0xf] }
 0x1ba   :  { %v275_v41 = vpop.f32.mrf.mxu3 }
 0x1bb   :  { %v7018_v42 = vpop.eup %7017  ;;  %v6705_v41 = vld [vmem:[%s9537_s14 + $0xe4] sm:$0xf0] }
 0x1bc   :  { %v280_v43 = vmul.f32 %v7018_v42, %v7236_v20  ;;  %v367_v44 = vmul.f32 %v7018_v42, %v7244_v24  ;;  %v455_v49 = vmul.f32 %v7018_v42, %v7249_v26  ;;  %v543_v50 = vmul.f32 %v7018_v42, %v7299_v61 }
 0x1bd   :  { %v633_v26 = vsel %vm314_vm5, %v631_v53, 0.0  ;;  %v5059_v42 = vor.u32 %v6700_v37, %v5056_v39  ;;  %v6698_v39 = vld [vmem:[%s9537_s14 + $0xac] sm:$0xf0] }
 0x1be   :  { %v281_v45 = vpack.c.bf16 %v280_v43, %v280_v43  ;;  %v368_v46 = vpack.c.bf16 %v367_v44, %v367_v44  ;;  %v456_v51 = vpack.c.bf16 %v455_v49, %v455_v49  ;;  %v544_v52 = vpack.c.bf16 %v543_v50, %v543_v50  ;;  %634 = vadd.xlane.f32.xlu1 %v633_v26  ;;  %v6701_v44 = vld [vmem:[%s9537_s14 + $0xcc] sm:$0xf]  ;;  %v6692_v49 = vld [vmem:[%s9537_s14 + $0x84] sm:$0xf] }
 0x1bf   :  { %v5063_v43 = vor.u32 %v6705_v41, %v5062_v40  ;;  %960 = vmatpush.bf16.msra.mxu1 %v5059_v42  ;;  %v5032_v26 = vld [vmem:[%s9537_s14 + $0xa8] sm:$0xf0]  ;;  %v6694_v40 = vld [vmem:[%s9537_s14 + $0x94] sm:$0xf] }
 0x1c0   :  { %4832 = vmatmul.msk.bf16.vlgmr.msrb.gmra.mxu0 %vm314_vm5, %v281_v45  ;;  %4866 = vmatmul.msk.bf16.vlgmr.msrb.gmra.mxu2 %vm314_vm5, %v368_v46  ;;  %v5064_v45 = vld [vmem:[%s9537_s14 + $0xe8] sm:$0xf0] }
 0x1c1   :  { %947 = vmatpush.bf16.msrb.mxu0 %v5055_v38  ;;  %v5067_v46 = vor.u32 %v6701_v44, %v5064_v45  ;;  %973 = vmatpush.bf16.msrb.mxu2 %v5063_v43  ;;  %v5038_v38 = vld [vmem:[%s9537_s14 + $0x90] sm:$0xf]  ;;  %v5040_v43 = vld [vmem:[%s9537_s14 + $0xb0] sm:$0xf0]  ;;  %v5046_v44 = vld [vmem:[%s9537_s14 + $0x98] sm:$0xf] }
 0x1c2   :  { %v450_v47 = vpop.f32.mrf.mxu3  ;;  %v5039_v42 = vor.u32 %v6698_v39, %v5038_v38  ;;  %v5043_v45 = vor.u32 %v6694_v40, %v5040_v43  ;;  %v6736_v38 = vld [vmem:[%s9538_s16 + $0xdc] sm:$0xf0]  ;;  %v6732_v39 = vld [vmem:[%s9538_s16 + $0xc4] sm:$0xf] }
 0x1c3   :  { %986 = vmatpush.bf16.msra.mxu3 %v5067_v46  ;;  %v6699_v46 = vld [vmem:[%s9537_s14 + $0xb4] sm:$0xf0] }
 0x1ca   :  { %v452_v48 = vpop.f32.mrf.mxu3 }
 0x1cb   :  { %v6696_v48 = vld [vmem:[%s9537_s14 + $0x9c] sm:$0xf0] }
 0x1d0   :  { %4904 = vmatmul.msk.bf16.vlgmr.msra.gmra.mxu0 %vm314_vm5, %v456_v51  ;;  %4942 = vmatmul.msk.bf16.vlgmr.msra.gmra.mxu2 %vm314_vm5, %v544_v52  ;;  %v5024_v51 = vld [vmem:[%s9537_s14 + $0xa0] sm:$0xf0]  ;;  %v5030_v52 = vld [vmem:[%s9537_s14 + $0x88] sm:$0xf] }
 0x1d2   :  { %v626_v20 = vpop.f32.mrf.mxu3 }
 0x1da   :  { %v628_v24 = vpop.f32.mrf.mxu3 }
 0x1db   :  { %v5027_v24 = vor.u32 %v6692_v49, %v5024_v51  ;;  %v5047_v49 = vor.u32 %v6699_v46, %v5046_v44  ;;  %v5006_v51 = vld [vmem:[%s9537_s14 + $0x50] sm:$0xf]  ;;  %v6737_v44 = vld [vmem:[%s9538_s16 + $0xe4] sm:$0xf0]  ;;  %v5200_v46 = vld [vmem:[%s9538_s16 + $0xe8] sm:$0xf0] }
 0x1dd   :  { %961 = vmatpush.bf16.msra.mxu1 %v5027_v24 }
 0x23d   :  { %v327_v56 = vpop.f32.mrf.mxu0 }
 0x23e   :  { %v331_v58 = vadd.f32 %v327_v56, %v279_v57  ;;  %v4990_v56 = vld [vmem:[%s9537_s14 + $0x40] sm:$0xf] }
 0x23f   :  { %v6688_v57 = vld [vmem:[%s9537_s14 + $0x5c] sm:$0xf0] }
 0x240   :  { %v366_v61 = vadd.f32 %v7315_v7, %v331_v58  ;;  %v7020_v7 = vpop.eup %7019  ;;  %v6684_v58 = vld [vmem:[%s9537_s14 + $0x44] sm:$0xf] }
 0x241   :  { %v641_v13 = vmul.f32 64.0, %v7020_v7  ;;  %vm645_vm7 = vweird.f32 %v7020_v7 }
 0x243   :  { %v414_v59 = vpop.f32.mrf.mxu2  ;;  %v642_v14 = vsub.f32 1.0, %v641_v13 }
 0x244   :  { %v418_v62 = vadd.f32 %v414_v59, %v366_v61  ;;  %v4991_v59 = vor.u32 %v6688_v57, %v4990_v56  ;;  %v4998_v61 = vld [vmem:[%s9537_s14 + $0x48] sm:$0xf] }
 0x245   :  { %v329_v60 = vpop.f32.mrf.mxu0  ;;  %v643_v15 = vmul.f32 %v7020_v7, %v642_v14 }
 0x246   :  { %v454_v1 = vadd.f32 %v450_v47, %v418_v62  ;;  %v5022_v47 = vld [vmem:[%s9537_s14 + $0x80] sm:$0xf]  ;;  %v4992_v60 = vld [vmem:[%s9537_s14 + $0x60] sm:$0xf0]  ;;  %v6689_v62 = vld [vmem:[%s9537_s14 + $0x64] sm:$0xf0] }
 0x247   :  { %v644_v16 = vadd.f32 %v7020_v7, %v643_v15  ;;  %v5023_v50 = vor.u32 %v6696_v48, %v5022_v47  ;;  %v6677_v15 = vld [vmem:[%s9537_s14 + $0xc] sm:$0xf]  ;;  %v6695_v47 = vld [vmem:[%s9537_s14 + $0x9c] sm:$0xf] }
 0x248   :  { %v5048_v48 = vld [vmem:[%s9537_s14 + $0xb8] sm:$0xf0] }
 0x249   :  { %v7395_v17 = vsel %vm645_vm7, %v7020_v7, %v644_v16  ;;  %948 = vmatpush.bf16.msrb.mxu0 %v5023_v50  ;;  %v6681_v7 = vld [vmem:[%s9537_s14 + $0x24] sm:$0xf0]  ;;  %v4968_v16 = vld [vmem:[%s9537_s14 + $0x28] sm:$0xf0]  ;;  %v5051_v50 = vor.u32 %v6695_v47, %v5048_v48 }
 0x24a   :  { %v648_v29 = vmul.f32 %v7395_v17, %v639_v27  ;;  %v4967_v14 = vor.u32 %v6681_v7, %v4966_v0  ;;  %v5072_v27 = vld [vmem:[%s9537_s14 + $0xf0] sm:$0xf0]  ;;  %v6679_v0 = vld [vmem:[%s9537_s14 + $0x1c] sm:$0xf] }
 0x24b   :  { %v416_v63 = vpop.f32.mrf.mxu2  ;;  %v4984_v7 = vld [vmem:[%s9537_s14 + $0x38] sm:$0xf0] }
 0x24c   :  { %v7410_v31 = vsub.f32 %v632_v54, %v648_v29  ;;  %v6693_v54 = vld [vmem:[%s9537_s14 + $0x8c] sm:$0xf]  ;;  %v4995_v63 = vor.u32 %v6684_v58, %v4992_v60  ;;  %v6687_v58 = vld [vmem:[%s9537_s14 + $0x5c] sm:$0xf] }
 0x24d   :  { %v502_v2 = vpop.f32.mrf.mxu0  ;;  %v5035_v55 = vor.u32 %v6693_v54, %v5032_v26  ;;  %949 = vmatpush.bf16.msrb.mxu0 %v4991_v59  ;;  %v5014_v54 = vld [vmem:[%s9537_s14 + $0x58] sm:$0xf]  ;;  %v5016_v59 = vld [vmem:[%s9537_s14 + $0x78] sm:$0xf0] }
 0x24e   :  { %v506_v3 = vadd.f32 %v502_v2, %v454_v1  ;;  %v652_v33 = vmul.f32 %v7410_v31, %v7410_v31  ;;  %v4999_v1 = vor.u32 %v6689_v62, %v4998_v61  ;;  %v6685_v2 = vld [vmem:[%s9537_s14 + $0x4c] sm:$0xf]  ;;  %962 = vmatpush.bf16.msra.mxu1 %v4995_v63  ;;  %v6691_v26 = vld [vmem:[%s9537_s14 + $0x74] sm:$0xf0]  ;;  %v5019_v61 = vor.u32 %v6687_v58, %v5016_v59  ;;  %v4974_v62 = vld [vmem:[%s9537_s14 + $0x10] sm:$0xf] }
 0x24f   :  { %987 = vmatpush.bf16.msra.mxu3 %v5035_v55  ;;  %v5015_v57 = vor.u32 %v6691_v26, %v5014_v54  ;;  %v6682_v63 = vld [vmem:[%s9537_s14 + $0x2c] sm:$0xf0]  ;;  %v6729_v58 = vld [vmem:[%s9538_s16 + $0xa4] sm:$0xf0]  ;;  %v6725_v59 = vld [vmem:[%s9538_s16 + $0x8c] sm:$0xf] }
 0x250   :  { %v542_v4 = vadd.f32 %v7317_v9, %v506_v3  ;;  %v635_v9 = vpop.xlane.xlu1 %634  ;;  %v656_v34 = vsel %vm636_vm6, %v652_v33, 0.0  ;;  %v5000_v3 = vld [vmem:[%s9537_s14 + $0x68] sm:$0xf0]  ;;  %v6703_v33 = vld [vmem:[%s9537_s14 + $0xdc] sm:$0xf] }
 0x251   :  { %v647_v21 = vmul.f32 %v7395_v17, %v635_v9  ;;  %v4971_v9 = vor.u32 %v6677_v15, %v4968_v16 }
 0x253   :  { %v590_v5 = vpop.f32.mrf.mxu2  ;;  %v7402_v23 = vsub.f32 %v631_v53, %v647_v21 }
 0x254   :  { %v594_v6 = vadd.f32 %v590_v5, %v542_v4  ;;  %v5003_v4 = vor.u32 %v6685_v2, %v5000_v3  ;;  %v4958_v5 = vld [vmem:[%s9537_s14] sm:$0xf] }
 0x255   :  { %v504_v8 = vpop.f32.mrf.mxu0  ;;  %v651_v30 = vmul.f32 %v7402_v23, %v7402_v23 }
 0x256   :  { %v7391_v10 = vadd.f32 %v626_v20, %v594_v6  ;;  %v6697_v20 = vld [vmem:[%s9537_s14 + $0xa4] sm:$0xf0]  ;;  %v6680_v6 = vld [vmem:[%s9537_s14 + $0x1c] sm:$0xf0]  ;;  %v6676_v8 = vld [vmem:[%s9537_s14 + $0x4] sm:$0xf]  ;;  %988 = vmatpush.bf16.msra.mxu3 %v5003_v4  ;;  %v4975_v4 = vor.u32 %v6682_v63, %v4974_v62 }
 0x257   :  { %v653_v32 = vsel %vm314_vm5, %v651_v30, 0.0  ;;  %v5031_v53 = vor.u32 %v6697_v20, %v5030_v52  ;;  %v6690_v52 = vld [vmem:[%s9537_s14 + $0x6c] sm:$0xf0]  ;;  %v6686_v20 = vld [vmem:[%s9537_s14 + $0x54] sm:$0xf] }
 0x258   :  { %v685_v11 = vsel %vm314_vm5, %v7391_v10, 0.0  ;;  %v5007_v24 = vor.u32 %v6690_v52, %v5006_v51  ;;  %v5126_v63 = vld [vmem:[%s9538_s16 + $0x40] sm:$0xf] }
 0x259   :  { %686 = vadd.xlane.f32.xlu0 %v685_v11  ;;  %974 = vmatpush.bf16.msrb.mxu2 %v5031_v53  ;;  %v4959_v11 = vor.u32 %v6680_v6, %v4958_v5  ;;  %v5008_v53 = vld [vmem:[%s9537_s14 + $0x70] sm:$0xf0]  ;;  %v4982_v6 = vld [vmem:[%s9537_s14 + $0x18] sm:$0xf] }
 0x25a   :  { %989 = vmatpush.bf16.msra.mxu3 %v4971_v9  ;;  %v5011_v56 = vor.u32 %v6686_v20, %v5008_v53  ;;  %v4976_v5 = vld [vmem:[%s9537_s14 + $0x30] sm:$0xf0]  ;;  %v5158_v20 = vld [vmem:[%s9538_s16 + $0x80] sm:$0xf] }
 0x25b   :  { %v592_v12 = vpop.f32.mrf.mxu2  ;;  %950 = vmatpush.bf16.msrb.mxu0 %v4959_v11 }
 0x25c   :  { %v4960_v12 = vld [vmem:[%s9537_s14 + $0x20] sm:$0xf0] }
 0x25d   :  { %975 = vmatpush.bf16.msrb.mxu2 %v4999_v1  ;;  %v4963_v13 = vor.u32 %v6676_v8, %v4960_v12  ;;  %v6678_v1 = vld [vmem:[%s9537_s14 + $0x14] sm:$0xf]  ;;  %v6683_v12 = vld [vmem:[%s9537_s14 + $0x34] sm:$0xf0] }
 0x25e   :  { %v4979_v11 = vor.u32 %v6678_v1, %v4976_v5  ;;  %v7007_v1 = vld [vmem:[%s9535_s12 + $0x1] ss:$0 sm:$0xff]  ;;  %v6716_v5 = vld [vmem:[%s9538_s16 + $0x44] sm:$0xf] }
 0x25f   :  { %963 = vmatpush.bf16.msra.mxu1 %v4963_v13  ;;  %v4983_v13 = vor.u32 %v6683_v12, %v4982_v6  ;;  %v5128_v6 = vld [vmem:[%s9538_s16 + $0x60] sm:$0xf0] }
 0x261   :  { %976 = vmatpush.bf16.msrb.mxu2 %v4967_v14  ;;  %v4987_v14 = vor.u32 %v6679_v0, %v4984_v7  ;;  %v5134_v0 = vld [vmem:[%s9538_s16 + $0x48] sm:$0xf] }
 0x262   :  { %v6721_v7 = vld [vmem:[%s9538_s16 + $0x64] sm:$0xf0] }
 0x2cc   :  { %v687_v18 = vpop.xlane.xlu0 %686 }
 0x2cd   :  { %v688_v19 = vmul.f32 %v687_v18, %v7395_v17  ;;  %v5070_v18 = vld [vmem:[%s9537_s14 + $0xd0] sm:$0xf] }
 0x2cf   :  { %v7400_v22 = vsub.f32 %v7391_v10, %v688_v19  ;;  %v6706_v19 = vld [vmem:[%s9537_s14 + $0xec] sm:$0xf0] }
 0x2d0   :  { %v5071_v21 = vor.u32 %v6706_v19, %v5070_v18 }
 0x2d1   :  { %v690_v25 = vmul.f32 %v7400_v22, %v7400_v22 }
 0x2d2   :  { %999 = vmatpush.bf16.msra.mxu0 %v5071_v21 }
 0x2d3   :  { %v691_v28 = vsel %vm314_vm5, %v690_v25, 0.0  ;;  %v6702_v25 = vld [vmem:[%s9537_s14 + $0xd4] sm:$0xf] }
 0x2d4   :  { %692 = vadd.xlane.f32.xlu0 %v691_v28  ;;  %v5078_v28 = vld [vmem:[%s9537_s14 + $0xd8] sm:$0xf]  ;;  %v5075_v30 = vor.u32 %v6702_v25, %v5072_v27 }
 0x2d6   :  { %1012 = vmatpush.bf16.msrb.mxu1 %v5075_v30  ;;  %1000 = vmatpush.bf16.msra.mxu0 %v5039_v42 }
 0x2da   :  { %1013 = vmatpush.bf16.msrb.mxu1 %v5043_v45  ;;  %1001 = vmatpush.bf16.msra.mxu0 %v5007_v24  ;;  %v6733_v45 = vld [vmem:[%s9538_s16 + $0xcc] sm:$0xf]  ;;  %v6728_v24 = vld [vmem:[%s9538_s16 + $0x9c] sm:$0xf0] }
 0x2db   :  { %v5203_v26 = vor.u32 %v6733_v45, %v5200_v46  ;;  %v5208_v45 = vld [vmem:[%s9538_s16 + $0xf0] sm:$0xf0]  ;;  %v5214_v46 = vld [vmem:[%s9538_s16 + $0xd8] sm:$0xf] }
 0x2dc   :  { %654 = vadd.xlane.f32.xlu0 %v653_v32  ;;  %v6707_v32 = vld [vmem:[%s9537_s14 + $0xf4] sm:$0xf0] }
 0x2dd   :  { %v5079_v36 = vor.u32 %v6707_v32, %v5078_v28 }
 0x2de   :  { %1014 = vmatpush.bf16.msrb.mxu1 %v5011_v56  ;;  %1002 = vmatpush.bf16.msra.mxu0 %v4975_v4  ;;  %v5160_v56 = vld [vmem:[%s9538_s16 + $0xa0] sm:$0xf0]  ;;  %v6720_v4 = vld [vmem:[%s9538_s16 + $0x5c] sm:$0xf0] }
 0x2df   :  { %1025 = vmatpush.bf16.msra.mxu2 %v5079_v36 }
 0x2e2   :  { %1015 = vmatpush.bf16.msrb.mxu1 %v4979_v11 }
 0x2e3   :  { %1026 = vmatpush.bf16.msra.mxu2 %v5047_v49 }
 0x2e4   :  { %657 = vadd.xlane.f32.xlu0 %v656_v34  ;;  %v5080_v34 = vld [vmem:[%s9537_s14 + $0xf8] sm:$0xf0] }
 0x2e5   :  { %v5083_v37 = vor.u32 %v6703_v33, %v5080_v34  ;;  %v7004_v33 = vld [vmem:[%s9534_s11] ss:$0 sm:$0xff] }
 0x2e7   :  { %1038 = vmatpush.bf16.msrb.mxu3 %v5083_v37  ;;  %1027 = vmatpush.bf16.msra.mxu2 %v5015_v57  ;;  %v5190_v37 = vld [vmem:[%s9538_s16 + $0xc0] sm:$0xf]  ;;  %v5166_v57 = vld [vmem:[%s9538_s16 + $0x88] sm:$0xf] }
 0x2e8   :  { %v5191_v51 = vor.u32 %v6736_v38, %v5190_v37  ;;  %v5167_v11 = vor.u32 %v6729_v58, %v5166_v57  ;;  %v6709_v37 = vld [vmem:[%s9538_s16 + $0xc] sm:$0xf]  ;;  %v6726_v57 = vld [vmem:[%s9538_s16 + $0x94] sm:$0xf] }
 0x2e9   :  { %v5104_v38 = vld [vmem:[%s9538_s16 + $0x28] sm:$0xf0]  ;;  %v5176_v58 = vld [vmem:[%s9538_s16 + $0xb0] sm:$0xf0] }
 0x2eb   :  { %1039 = vmatpush.bf16.msrb.mxu3 %v5051_v50  ;;  %1028 = vmatpush.bf16.msra.mxu2 %v4983_v13  ;;  %v6739_v50 = vld [vmem:[%s9538_s16 + $0xf4] sm:$0xf0] }
 0x2ef   :  { %1040 = vmatpush.bf16.msrb.mxu3 %v5019_v61 }
 0x2f3   :  { %1041 = vmatpush.bf16.msrb.mxu3 %v4987_v14  ;;  %v7006_v14 = vld [vmem:[%s9536_s13] ss:$0 sm:$0xff] }
 0x347   :  { %v693_v29 = vpop.xlane.xlu0 %692 }
 0x348   :  { %v694_v35 = vmul.f32 %v693_v29, %v7395_v17  ;;  %v7003_v29 = vld [vmem:[%s9533_s10] ss:$0 sm:$0xff] }
 0x34a   :  { %v7546_v41 = vadd.f32 1e-05, %v694_v35 }
 0x34c   :  { %7021 = vrsqrt.f32 %v7546_v41  ;;  %vm702_vm9 = vweird.f32 %v7546_v41 }
 0x34f   :  { %v655_v55 = vpop.xlane.xlu0 %654 }
 0x350   :  { %v659_v60 = vmul.f32 %v655_v55, %v7395_v17  ;;  %v6724_v55 = vld [vmem:[%s9538_s16 + $0x84] sm:$0xf] }
 0x352   :  { %v7022_v2 = vpop.eup %7021  ;;  %v661_v3 = vadd.f32 1e-05, %v659_v60  ;;  %v5168_v60 = vld [vmem:[%s9538_s16 + $0xa8] sm:$0xf0] }
 0x353   :  { %v697_v8 = vmul.f32 %v7022_v2, %v7546_v41  ;;  %vm703_vm8 = vweird.f32 %v7022_v2  ;;  %v5198_v41 = vld [vmem:[%s9538_s16 + $0xc8] sm:$0xf]  ;;  %v5171_v12 = vor.u32 %v6725_v59, %v5168_v60  ;;  %v5182_v59 = vld [vmem:[%s9538_s16 + $0x98] sm:$0xf] }
 0x354   :  { %7023 = vrsqrt.f32 %v661_v3  ;;  %vm704_vm10 = vmor %vm702_vm9, %vm703_vm8  ;;  %vm669_vm11 = vweird.f32 %v661_v3  ;;  %v5199_v54 = vor.u32 %v6737_v44, %v5198_v41  ;;  %v6738_v41 = vld [vmem:[%s9538_s16 + $0xec] sm:$0xf0]  ;;  %v6734_v44 = vld [vmem:[%s9538_s16 + $0xd4] sm:$0xf] }
 0x355   :  { %v698_v15 = vmul.f32 %v7022_v2, %v697_v8  ;;  %v6731_v60 = vld [vmem:[%s9538_s16 + $0xb4] sm:$0xf0] }
 0x357   :  { %v699_v16 = vmul.f32 0.5, %v698_v15  ;;  %v658_v9 = vpop.xlane.xlu0 %657  ;;  %v6717_v15 = vld [vmem:[%s9538_s16 + $0x4c] sm:$0xf] }
 0x358   :  { %v660_v18 = vmul.f32 %v658_v9, %v7395_v17 }
 0x359   :  { %v700_v19 = vsub.f32 1.5, %v699_v16  ;;  %v5136_v16 = vld [vmem:[%s9538_s16 + $0x68] sm:$0xf0] }
 0x35a   :  { %v7615_v21 = vpop.eup %7023  ;;  %v7617_v25 = vadd.f32 1e-05, %v660_v18  ;;  %v5127_v18 = vor.u32 %v6720_v4, %v5126_v63  ;;  %v7005_v63 = vld [vmem:[%s9535_s12] ss:$0 sm:$0xff]  ;;  %v6722_v4 = vld [vmem:[%s9538_s16 + $0x6c] sm:$0xf0] }
 0x35b   :  { %v701_v27 = vmul.f32 %v7022_v2, %v700_v19  ;;  %v664_v28 = vmul.f32 %v7615_v21, %v661_v3  ;;  %vm670_vm12 = vweird.f32 %v7615_v21  ;;  %v5163_v3 = vor.u32 %v6724_v55, %v5160_v56 }
 0x35c   :  { %7025 = vrsqrt.f32 %v7617_v25  ;;  %vm7662_vm13 = vmor %vm669_vm11, %vm670_vm12  ;;  %vm679_vm14 = vweird.f32 %v7617_v25  ;;  %v5131_v19 = vor.u32 %v6716_v5, %v5128_v6  ;;  %v5215_v55 = vor.u32 %v6739_v50, %v5214_v46  ;;  %v6718_v6 = vld [vmem:[%s9538_s16 + $0x54] sm:$0xf]  ;;  %v6760_v50 = vld [vmem:[%s9539_s18 + $0x9c] sm:$0xf0] }
 0x35d   :  { %v705_v30 = vsel %vm704_vm10, %v7022_v2, %v701_v27  ;;  %v665_v32 = vmul.f32 %v7615_v21, %v664_v28  ;;  %v5159_v2 = vor.u32 %v6728_v24, %v5158_v20  ;;  %v5135_v28 = vor.u32 %v6721_v7, %v5134_v0  ;;  %v6719_v0 = vld [vmem:[%s9538_s16 + $0x5c] sm:$0xf] }
 0x35e   :  { %v706_v34 = vmul.f32 %v705_v30, %v7400_v22  ;;  %v5192_v22 = vld [vmem:[%s9538_s16 + $0xe0] sm:$0xf0]  ;;  %v5183_v5 = vor.u32 %v6731_v60, %v5182_v59  ;;  %v5152_v7 = vld [vmem:[%s9538_s16 + $0x78] sm:$0xf0]  ;;  %v5262_v59 = vld [vmem:[%s9539_s18 + $0x40] sm:$0xf] }
 0x35f   :  { %v666_v35 = vmul.f32 0.5, %v665_v32  ;;  %v5195_v52 = vor.u32 %v6732_v39, %v5192_v22  ;;  %v6708_v30 = vld [vmem:[%s9538_s16 + $0x4] sm:$0xf]  ;;  %v6752_v60 = vld [vmem:[%s9539_s18 + $0x5c] sm:$0xf0] }
 0x360   :  { %v711_v36 = vmul.f32 %v7003_v29, %v706_v34  ;;  %v5139_v29 = vor.u32 %v6717_v15, %v5136_v16  ;;  %v5096_v32 = vld [vmem:[%s9538_s16 + $0x20] sm:$0xf0] }
 0x361   :  { %v667_v40 = vsub.f32 1.5, %v666_v35  ;;  %v5099_v22 = vor.u32 %v6708_v30, %v5096_v32  ;;  %v6715_v30 = vld [vmem:[%s9538_s16 + $0x34] sm:$0xf0]  ;;  %v6711_v32 = vld [vmem:[%s9538_s16 + $0x1c] sm:$0xf] }
 0x362   :  { %v7646_v42 = vpop.eup %7025  ;;  %v716_v43 = vadd.f32 %v7004_v33, %v711_v36  ;;  %v5102_v33 = vld [vmem:[%s9538_s16 + $0x8] sm:$0xf] }
 0x363   :  { %v668_v47 = vmul.f32 %v7615_v21, %v667_v40  ;;  %v674_v48 = vmul.f32 %v7646_v42, %v7617_v25  ;;  %vm680_vm15 = vweird.f32 %v7646_v42  ;;  %v6712_v25 = vld [vmem:[%s9538_s16 + $0x1c] sm:$0xf0]  ;;  %v6713_v36 = vld [vmem:[%s9538_s16 + $0x24] sm:$0xf0] }
 0x364   :  { %v7660_v49 = vpack.c.bf16 %v716_v43, %v716_v43  ;;  %vm7732_vm0 = vmor %vm679_vm14, %vm680_vm15  ;;  %v5107_v43 = vor.u32 %v6709_v37, %v5104_v38  ;;  %v6768_v37 = vld [vmem:[%s9539_s18 + $0xdc] sm:$0xf0] }
 0x365   :  { %v675_v53 = vmul.f32 %v7646_v42, %v674_v48  ;;  %v672_v61 = vsel %vm7662_vm13, %v7615_v21, %v668_v47  ;;  %v5094_v21 = vld [vmem:[%s9538_s16] sm:$0xf] }
 0x366   :  { %5084 = vmatmul.msk.bf16.vlgmr.msrb.gmra.mxu0 %vm314_vm5, %v7660_v49  ;;  %5085 = vmatmul.msk.bf16.vlgmr.msra.gmra.mxu1 %vm314_vm5, %v7660_v49  ;;  %v7726_v13 = vmul.f32 %v672_v61, %v7402_v23  ;;  %v7008_v23 = vld [vmem:[%s9536_s13 + $0x1] ss:$0 sm:$0xff]  ;;  %v5095_v40 = vor.u32 %v6712_v25, %v5094_v21  ;;  %v6727_v61 = vld [vmem:[%s9538_s16 + $0x9c] sm:$0xf]  ;;  %v5155_v21 = vor.u32 %v6719_v0, %v5152_v7  ;;  %v6710_v25 = vld [vmem:[%s9538_s16 + $0x14] sm:$0xf] }
 0x367   :  { %v676_v62 = vmul.f32 0.5, %v675_v53  ;;  %5086 = vmatmul.msk.bf16.vlgmr.msrb.gmra.mxu2 %vm314_vm5, %v7660_v49  ;;  %5087 = vmatmul.msk.bf16.vlgmr.msra.gmra.mxu3 %vm314_vm5, %v7660_v49  ;;  %v5211_v53 = vor.u32 %v6734_v44, %v5208_v45  ;;  %v5336_v44 = vld [vmem:[%s9539_s18 + $0xe8] sm:$0xf0]  ;;  %v6740_v7 = vld [vmem:[%s9539_s18 + $0x4] sm:$0xf] }
 0x368   :  { %1265 = vmatpush.bf16.msrb.mxu0 %v5191_v51  ;;  %1279 = vmatpush.bf16.msra.mxu1 %v5195_v52  ;;  %v2758_v34 = vmul.f32 %v7007_v1, %v7726_v13  ;;  %v6735_v51 = vld [vmem:[%s9538_s16 + $0xdc] sm:$0xf] }
 0x369   :  { %v677_v8 = vsub.f32 1.5, %v676_v62  ;;  %1293 = vmatpush.bf16.msrb.mxu2 %v5199_v54  ;;  %1307 = vmatpush.bf16.msra.mxu3 %v5203_v26  ;;  %v5216_v52 = vld [vmem:[%s9538_s16 + $0xf8] sm:$0xf0]  ;;  %v5174_v54 = vld [vmem:[%s9538_s16 + $0x90] sm:$0xf] }
 0x36a   :  { %v2765_v47 = vadd.f32 %v7008_v23, %v2758_v34  ;;  %v6730_v26 = vld [vmem:[%s9538_s16 + $0xac] sm:$0xf0]  ;;  %v5219_v56 = vor.u32 %v6735_v51, %v5216_v52  ;;  %v5184_v62 = vld [vmem:[%s9538_s16 + $0xb8] sm:$0xf0] }
 0x36b   :  { %v678_v9 = vmul.f32 %v7646_v42, %v677_v8  ;;  %v5144_v8 = vld [vmem:[%s9538_s16 + $0x70] sm:$0xf0] }
 0x36c   :  { %1266 = vmatpush.bf16.msrb.mxu0 %v5159_v2  ;;  %1280 = vmatpush.bf16.msra.mxu1 %v5163_v3  ;;  %v5179_v2 = vor.u32 %v6726_v57, %v5176_v58  ;;  %v5142_v3 = vld [vmem:[%s9538_s16 + $0x50] sm:$0xf] }
 0x36d   :  { %v682_v27 = vsel %vm7732_vm0, %v7646_v42, %v678_v9  ;;  %1294 = vmatpush.bf16.msrb.mxu2 %v5167_v11  ;;  %1308 = vmatpush.bf16.msra.mxu3 %v5171_v12  ;;  %v5103_v42 = vor.u32 %v6713_v36, %v5102_v33  ;;  %v5150_v11 = vld [vmem:[%s9538_s16 + $0x58] sm:$0xf]  ;;  %v5143_v16 = vor.u32 %v6722_v4, %v5142_v3  ;;  %v5120_v33 = vld [vmem:[%s9538_s16 + $0x38] sm:$0xf0]  ;;  %v6753_v3 = vld [vmem:[%s9539_s18 + $0x64] sm:$0xf0] }
 0x36e   :  { %v684_v35 = vmul.f32 %v682_v27, %v7410_v31  ;;  %v5206_v31 = vld [vmem:[%s9538_s16 + $0xd0] sm:$0xf]  ;;  %v6723_v12 = vld [vmem:[%s9538_s16 + $0x74] sm:$0xf0]  ;;  %v5147_v9 = vor.u32 %v6718_v6, %v5144_v8  ;;  %v5112_v27 = vld [vmem:[%s9538_s16 + $0x30] sm:$0xf0] }
 0x36f   :  { %v5207_v24 = vor.u32 %v6738_v41, %v5206_v31  ;;  %v5115_v36 = vor.u32 %v6710_v25, %v5112_v27  ;;  %v5334_v31 = vld [vmem:[%s9539_s18 + $0xc8] sm:$0xf]  ;;  %v6749_v4 = vld [vmem:[%s9539_s18 + $0x4c] sm:$0xf]  ;;  %v5230_v8 = vld [vmem:[%s9539_s18] sm:$0xf] }
 0x370   :  { %v2759_v39 = vmul.f32 %v7007_v1, %v684_v35  ;;  %1267 = vmatpush.bf16.msrb.mxu0 %v5127_v18  ;;  %1281 = vmatpush.bf16.msra.mxu1 %v5131_v19  ;;  %v5175_v1 = vor.u32 %v6730_v26, %v5174_v54  ;;  %v722_v15 = vmul.f32 %v7005_v63, %v684_v35  ;;  %v6714_v18 = vld [vmem:[%s9538_s16 + $0x2c] sm:$0xf0]  ;;  %v5302_v54 = vld [vmem:[%s9539_s18 + $0x88] sm:$0xf] }
 0x371   :  { %1295 = vmatpush.bf16.msrb.mxu2 %v5135_v28  ;;  %1309 = vmatpush.bf16.msra.mxu3 %v5139_v29  ;;  %v5151_v19 = vor.u32 %v6723_v12, %v5150_v11  ;;  %v5118_v28 = vld [vmem:[%s9538_s16 + $0x18] sm:$0xf]  ;;  %v721_v29 = vmul.f32 %v7005_v63, %v7726_v13  ;;  %v5326_v13 = vld [vmem:[%s9539_s18 + $0xc0] sm:$0xf]  ;;  %v6761_v26 = vld [vmem:[%s9539_s18 + $0xa4] sm:$0xf0] }
 0x372   :  { %v2766_v48 = vadd.f32 %v7008_v23, %v2759_v39  ;;  %v5110_v23 = vld [vmem:[%s9538_s16 + $0x10] sm:$0xf]  ;;  %v728_v34 = vadd.f32 %v7006_v14, %v722_v15  ;;  %v5119_v38 = vor.u32 %v6715_v30, %v5118_v28  ;;  %v5123_v39 = vor.u32 %v6711_v32, %v5120_v33  ;;  %v6748_v63 = vld [vmem:[%s9539_s18 + $0x44] sm:$0xf]  ;;  %v6744_v11 = vld [vmem:[%s9539_s18 + $0x1c] sm:$0xf0] }
 0x373   :  { %v5111_v35 = vor.u32 %v6714_v18, %v5110_v23  ;;  %v727_v41 = vadd.f32 %v7006_v14, %v721_v29  ;;  %v5327_v46 = vor.u32 %v6768_v37, %v5326_v13  ;;  %v5232_v14 = vld [vmem:[%s9539_s18 + $0x20] sm:$0xf0]  ;;  %v5238_v15 = vld [vmem:[%s9539_s18 + $0x8] sm:$0xf]  ;;  %v5240_v23 = vld [vmem:[%s9539_s18 + $0x28] sm:$0xf0]  ;;  %v5231_v18 = vor.u32 %v6744_v11, %v5230_v8 }
 0x374   :  { %v7799_v20 = vpack.c.bf16 %v2766_v48, %v2765_v47  ;;  %1268 = vmatpush.bf16.msrb.mxu0 %v5095_v40  ;;  %1282 = vmatpush.bf16.msra.mxu1 %v5099_v22  ;;  %v6764_v40 = vld [vmem:[%s9539_s18 + $0xc4] sm:$0xf]  ;;  %v5294_v48 = vld [vmem:[%s9539_s18 + $0x80] sm:$0xf]  ;;  %v6770_v25 = vld [vmem:[%s9539_s18 + $0xec] sm:$0xf0] }
 0x375   :  { %1296 = vmatpush.bf16.msrb.mxu2 %v5103_v42  ;;  %1310 = vmatpush.bf16.msra.mxu3 %v5107_v43  ;;  %v5328_v22 = vld [vmem:[%s9539_s18 + $0xe0] sm:$0xf0]  ;;  %v6769_v42 = vld [vmem:[%s9539_s18 + $0xe4] sm:$0xf0]  ;;  %v6765_v43 = vld [vmem:[%s9539_s18 + $0xcc] sm:$0xf]  ;;  %v7912_v45 = vpack.c.bf16 %v728_v34, %v727_v41  ;;  %v5295_v57 = vor.u32 %v6760_v50, %v5294_v48 }
 0x376   :  { %5088 = vmatmul.msk.bf16.vlgmr.msra.gmra.mxu0 %vm314_vm5, %v7660_v49  ;;  %5089 = vmatmul.msk.bf16.vlgmr.msrb.gmra.mxu1 %vm314_vm5, %v7660_v49  ;;  %v5331_v47 = vor.u32 %v6764_v40, %v5328_v22  ;;  %v5335_v51 = vor.u32 %v6769_v42, %v5334_v31  ;;  %v5339_v52 = vor.u32 %v6765_v43, %v5336_v44  ;;  %v6766_v29 = vld [vmem:[%s9539_s18 + $0xd4] sm:$0xf]  ;;  %v5350_v32 = vld [vmem:[%s9539_s18 + $0xd8] sm:$0xf]  ;;  %v6767_v34 = vld [vmem:[%s9539_s18 + $0xdc] sm:$0xf] }
 0x377   :  { %5090 = vmatmul.msk.bf16.vlgmr.msra.gmra.mxu2 %vm314_vm5, %v7660_v49  ;;  %5091 = vmatmul.msk.bf16.vlgmr.msrb.gmra.mxu3 %vm314_vm5, %v7660_v49  ;;  %v5187_v49 = vor.u32 %v6727_v61, %v5184_v62  ;;  %v5303_v61 = vor.u32 %v6761_v26, %v5302_v54  ;;  %v5344_v30 = vld [vmem:[%s9539_s18 + $0xf0] sm:$0xf0]  ;;  %v6771_v33 = vld [vmem:[%s9539_s18 + $0xf4] sm:$0xf0]  ;;  %v5310_v37 = vld [vmem:[%s9539_s18 + $0x90] sm:$0xf] }
 0x378   :  { %1321 = vmatpush.bf16.msra.mxu0 %v5207_v24  ;;  %1335 = vmatpush.bf16.msrb.mxu1 %v5211_v53  ;;  %v6756_v24 = vld [vmem:[%s9539_s18 + $0x84] sm:$0xf]  ;;  %v5347_v13 = vor.u32 %v6766_v29, %v5344_v30  ;;  %v6758_v22 = vld [vmem:[%s9539_s18 + $0x94] sm:$0xf]  ;;  %v5318_v41 = vld [vmem:[%s9539_s18 + $0x98] sm:$0xf] }
 0x379   :  { %1349 = vmatpush.bf16.msra.mxu2 %v5215_v55  ;;  %1363 = vmatpush.bf16.msrb.mxu3 %v5219_v56  ;;  %v5296_v53 = vld [vmem:[%s9539_s18 + $0xa0] sm:$0xf0]  ;;  %v6757_v55 = vld [vmem:[%s9539_s18 + $0x8c] sm:$0xf]  ;;  %v5312_v31 = vld [vmem:[%s9539_s18 + $0xb0] sm:$0xf0] }
 0x37a   :  { %v5304_v56 = vld [vmem:[%s9539_s18 + $0xa8] sm:$0xf0]  ;;  %v5299_v58 = vor.u32 %v6756_v24, %v5296_v53  ;;  %v6763_v42 = vld [vmem:[%s9539_s18 + $0xb4] sm:$0xf0]  ;;  %v6759_v43 = vld [vmem:[%s9539_s18 + $0x9c] sm:$0xf] }
 0x37b   :  { %v5307_v62 = vor.u32 %v6757_v55, %v5304_v56  ;;  %v5320_v44 = vld [vmem:[%s9539_s18 + $0xb8] sm:$0xf0]  ;;  %v5278_v48 = vld [vmem:[%s9539_s18 + $0x50] sm:$0xf]  ;;  %v6750_v24 = vld [vmem:[%s9539_s18 + $0x54] sm:$0xf] }
 0x37c   :  { %1322 = vmatpush.bf16.msra.mxu0 %v5175_v1  ;;  %1336 = vmatpush.bf16.msrb.mxu1 %v5179_v2  ;;  %v5264_v1 = vld [vmem:[%s9539_s18 + $0x60] sm:$0xf0]  ;;  %v5270_v2 = vld [vmem:[%s9539_s18 + $0x48] sm:$0xf]  ;;  %v6754_v50 = vld [vmem:[%s9539_s18 + $0x6c] sm:$0xf0] }
 0x37d   :  { %1350 = vmatpush.bf16.msra.mxu2 %v5183_v5  ;;  %1364 = vmatpush.bf16.msrb.mxu3 %v5187_v49  ;;  %v5272_v5 = vld [vmem:[%s9539_s18 + $0x68] sm:$0xf0]  ;;  %v5263_v49 = vor.u32 %v6752_v60, %v5262_v59  ;;  %v5267_v6 = vor.u32 %v6748_v63, %v5264_v1  ;;  %v5271_v12 = vor.u32 %v6753_v3, %v5270_v2  ;;  %v5280_v53 = vld [vmem:[%s9539_s18 + $0x70] sm:$0xf0]  ;;  %v5286_v54 = vld [vmem:[%s9539_s18 + $0x58] sm:$0xf] }
 0x37e   :  { %v5275_v0 = vor.u32 %v6749_v4, %v5272_v5  ;;  %v6755_v26 = vld [vmem:[%s9539_s18 + $0x74] sm:$0xf0]  ;;  %v6751_v55 = vld [vmem:[%s9539_s18 + $0x5c] sm:$0xf]  ;;  %v5246_v59 = vld [vmem:[%s9539_s18 + $0x10] sm:$0xf] }
 0x37f   :  { %v5288_v56 = vld [vmem:[%s9539_s18 + $0x78] sm:$0xf0]  ;;  %v6746_v60 = vld [vmem:[%s9539_s18 + $0x2c] sm:$0xf0]  ;;  %v6742_v63 = vld [vmem:[%s9539_s18 + $0x14] sm:$0xf] }
 0x380   :  { %1323 = vmatpush.bf16.msra.mxu0 %v5143_v16  ;;  %1337 = vmatpush.bf16.msrb.mxu1 %v5147_v9  ;;  %v6745_v16 = vld [vmem:[%s9539_s18 + $0x24] sm:$0xf0]  ;;  %v6741_v9 = vld [vmem:[%s9539_s18 + $0xc] sm:$0xf]  ;;  %v5248_v1 = vld [vmem:[%s9539_s18 + $0x30] sm:$0xf0] }
 0x381   :  { %1351 = vmatpush.bf16.msra.mxu2 %v5151_v19  ;;  %1365 = vmatpush.bf16.msrb.mxu3 %v5155_v21  ;;  %v5235_v19 = vor.u32 %v6740_v7, %v5232_v14  ;;  %v5342_v21 = vld [vmem:[%s9539_s18 + $0xd0] sm:$0xf]  ;;  %v5239_v27 = vor.u32 %v6745_v16, %v5238_v15  ;;  %v5243_v28 = vor.u32 %v6741_v9, %v5240_v23  ;;  %v5254_v2 = vld [vmem:[%s9539_s18 + $0x18] sm:$0xf]  ;;  %v6743_v4 = vld [vmem:[%s9539_s18 + $0x1c] sm:$0xf] }
 0x382   :  { %v6747_v3 = vld [vmem:[%s9539_s18 + $0x34] sm:$0xf0]  ;;  %v5256_v5 = vld [vmem:[%s9539_s18 + $0x38] sm:$0xf0] }
 0x383   :  { %v5255_v8 = vor.u32 %v6747_v3, %v5254_v2  ;;  %v5259_v11 = vor.u32 %v6743_v4, %v5256_v5  ;;  %v6785_v4 = vld [vmem:[%s9542_s20 + $0x68] sm:$0xff] }
 0x384   :  { %1324 = vmatpush.bf16.msra.mxu0 %v5111_v35  ;;  %1338 = vmatpush.bf16.msrb.mxu1 %v5115_v36  ;;  %v5352_v35 = vld [vmem:[%s9539_s18 + $0xf8] sm:$0xf0]  ;;  %v5343_v36 = vor.u32 %v6770_v25, %v5342_v21 }
 0x385   :  { %1352 = vmatpush.bf16.msra.mxu2 %v5119_v38  ;;  %1366 = vmatpush.bf16.msrb.mxu3 %v5123_v39  ;;  %v6762_v38 = vld [vmem:[%s9539_s18 + $0xac] sm:$0xf0]  ;;  %v5351_v39 = vor.u32 %v6771_v33, %v5350_v32  ;;  %v5355_v40 = vor.u32 %v6767_v34, %v5352_v35  ;;  %v8129_v33 = vld [vmem:[%s9540_s17] sm:$0xff] }
 0x386   :  { %5220 = vmatmul.msk.bf16.vlgmr.msrb.gmra.mxu0 %vm314_vm5, %v7912_v45  ;;  %5221 = vmatmul.msk.bf16.vlgmr.msra.gmra.mxu1 %vm314_vm5, %v7912_v45  ;;  %v1085_v34 = vperm.slane %v8129_v33, 3  ;;  %v1082_v35 = vperm.slane %v8129_v33, 0 }
 0x387   :  { %5222 = vmatmul.msk.bf16.vlgmr.msrb.gmra.mxu2 %vm314_vm5, %v7912_v45  ;;  %5223 = vmatmul.msk.bf16.vlgmr.msra.gmra.mxu3 %vm314_vm5, %v7912_v45 }
 0x388   :  { %1587 = vmatpush.bf16.msrb.mxu0 %v5327_v46  ;;  %1601 = vmatpush.bf16.msra.mxu1 %v5331_v47  ;;  %v5311_v46 = vor.u32 %v6762_v38, %v5310_v37  ;;  %v5315_v47 = vor.u32 %v6758_v22, %v5312_v31 }
 0x389   :  { %1615 = vmatpush.bf16.msrb.mxu2 %v5335_v51  ;;  %1629 = vmatpush.bf16.msra.mxu3 %v5339_v52  ;;  %v5319_v51 = vor.u32 %v6763_v42, %v5318_v41  ;;  %v5323_v52 = vor.u32 %v6759_v43, %v5320_v44 }
 0x38c   :  { %1588 = vmatpush.bf16.msrb.mxu0 %v5295_v57  ;;  %1602 = vmatpush.bf16.msra.mxu1 %v5299_v58  ;;  %v5279_v57 = vor.u32 %v6754_v50, %v5278_v48  ;;  %v5283_v58 = vor.u32 %v6750_v24, %v5280_v53  ;;  %v1087_v24 = vperm.slane %v8129_v33, 5 }
 0x38d   :  { %1616 = vmatpush.bf16.msrb.mxu2 %v5303_v61  ;;  %1630 = vmatpush.bf16.msra.mxu3 %v5307_v62  ;;  %v5287_v61 = vor.u32 %v6755_v26, %v5286_v54  ;;  %v5291_v62 = vor.u32 %v6751_v55, %v5288_v56  ;;  %v6786_v54 = vld [vmem:[%s9542_s20 + $0x70] sm:$0xff] }
 0x390   :  { %1589 = vmatpush.bf16.msrb.mxu0 %v5263_v49  ;;  %1603 = vmatpush.bf16.msra.mxu1 %v5267_v6  ;;  %v5247_v49 = vor.u32 %v6746_v60, %v5246_v59  ;;  %v5251_v6 = vor.u32 %v6742_v63, %v5248_v1 }
 0x391   :  { %1617 = vmatpush.bf16.msrb.mxu2 %v5271_v12  ;;  %1631 = vmatpush.bf16.msra.mxu3 %v5275_v0 }
 0x394   :  { %1590 = vmatpush.bf16.msrb.mxu0 %v5231_v18  ;;  %1604 = vmatpush.bf16.msra.mxu1 %v5235_v19 }
 0x395   :  { %1618 = vmatpush.bf16.msrb.mxu2 %v5239_v27  ;;  %1632 = vmatpush.bf16.msra.mxu3 %v5243_v28 }
 0x396   :  { %5224 = vmatmul.msk.bf16.vlgmr.msra.gmra.mxu0 %vm314_vm5, %v7912_v45  ;;  %5225 = vmatmul.msk.bf16.vlgmr.msrb.gmra.mxu1 %vm314_vm5, %v7912_v45 }
 0x397   :  { %5226 = vmatmul.msk.bf16.vlgmr.msra.gmra.mxu2 %vm314_vm5, %v7912_v45  ;;  %5227 = vmatmul.msk.bf16.vlgmr.msrb.gmra.mxu3 %vm314_vm5, %v7912_v45 }
 0x398   :  { %1643 = vmatpush.bf16.msra.mxu0 %v5343_v36  ;;  %1657 = vmatpush.bf16.msrb.mxu1 %v5347_v13  ;;  %v1083_v36 = vperm.slane %v8129_v33, 1  ;;  %v8137_v13 = vld [vmem:[%s9541_s15] sm:$0xff] }
 0x399   :  { %1671 = vmatpush.bf16.msra.mxu2 %v5351_v39  ;;  %1685 = vmatpush.bf16.msrb.mxu3 %v5355_v40  ;;  %v764_v44 = vperm.slane %v8137_v13, 0 }
 0x39c   :  { %1644 = vmatpush.bf16.msra.mxu0 %v5311_v46  ;;  %1658 = vmatpush.bf16.msrb.mxu1 %v5315_v47  ;;  %v6787_v46 = vld [vmem:[%s9542_s20 + $0x78] sm:$0xff]  ;;  %v765_v47 = vperm.slane %v8137_v13, 1 }
 0x39d   :  { %1672 = vmatpush.bf16.msra.mxu2 %v5319_v51  ;;  %1686 = vmatpush.bf16.msrb.mxu3 %v5323_v52  ;;  %v1084_v51 = vperm.slane %v8129_v33, 2  ;;  %v1086_v52 = vperm.slane %v8129_v33, 4 }
 0x3a0   :  { %1645 = vmatpush.bf16.msra.mxu0 %v5279_v57  ;;  %1659 = vmatpush.bf16.msrb.mxu1 %v5283_v58 }
 0x3a1   :  { %1673 = vmatpush.bf16.msra.mxu2 %v5287_v61  ;;  %1687 = vmatpush.bf16.msrb.mxu3 %v5291_v62 }
 0x3a4   :  { %1646 = vmatpush.bf16.msra.mxu0 %v5247_v49  ;;  %1660 = vmatpush.bf16.msrb.mxu1 %v5251_v6  ;;  %v1088_v49 = vperm.slane %v8129_v33, 6  ;;  %v1089_v6 = vperm.slane %v8129_v33, 7 }
 0x3a5   :  { %1674 = vmatpush.bf16.msra.mxu2 %v5255_v8  ;;  %1688 = vmatpush.bf16.msrb.mxu3 %v5259_v11  ;;  %v6784_v8 = vld [vmem:[%s9542_s20 + $0x60] sm:$0xff] }
 0x3a6   :  { %5356 = vmatmul.msk.bf16.vlgmr.msrb.gmra.mxu0 %vm314_vm5, %v7912_v45  ;;  %5357 = vmatmul.msk.bf16.vlgmr.msra.gmra.mxu1 %vm314_vm5, %v7912_v45 }
 0x3a7   :  { %5358 = vmatmul.msk.bf16.vlgmr.msrb.gmra.mxu2 %vm314_vm5, %v7912_v45  ;;  %5359 = vmatmul.msk.bf16.vlgmr.msra.gmra.mxu3 %vm314_vm5, %v7912_v45 }
 0x3b6   :  { %5360 = vmatmul.msk.bf16.vlgmr.msra.gmra.mxu0 %vm314_vm5, %v7912_v45  ;;  %5361 = vmatmul.msk.bf16.vlgmr.msrb.gmra.mxu1 %vm314_vm5, %v7912_v45 }
 0x3b7   :  { %5362 = vmatmul.msk.bf16.vlgmr.msra.gmra.mxu2 %vm314_vm5, %v7912_v45  ;;  %5363 = vmatmul.msk.bf16.vlgmr.msrb.gmra.mxu3 %vm314_vm5, %v7912_v45 }
 0x3e3   :  { %v952_v12 = vpop.f32.mrf.mxu0  ;;  %v965_v0 = vpop.f32.mrf.mxu1 }
 0x3e4   :  { %v953_v53 = vadd.f32 %v952_v12, %v764_v44  ;;  %v966_v26 = vadd.f32 %v965_v0, %v765_v47 }
 0x3e6   :  { %v1695_v1 = vpack.c.bf16 %v953_v53, %v953_v53  ;;  %v1764_v5 = vpack.c.bf16 %v966_v26, %v966_v26 }
 0x3ea   :  { %v8114_v7 = vpop.f32.mrf.mxu2  ;;  %v8116_v14 = vpop.f32.mrf.mxu3 }
 0x3eb   :  { %v954_v15 = vpop.f32.mrf.mxu0  ;;  %v967_v16 = vpop.f32.mrf.mxu1 }
 0x3f2   :  { %v980_v9 = vpop.f32.mrf.mxu2  ;;  %v993_v23 = vpop.f32.mrf.mxu3 }
 0x3f3   :  { %v8118_v18 = vpop.f32.mrf.mxu0  ;;  %v8120_v19 = vpop.f32.mrf.mxu1 }
 0x3fa   :  { %v8122_v21 = vpop.f32.mrf.mxu2  ;;  %v8124_v25 = vpop.f32.mrf.mxu3 }
 0x3fb   :  { %v1006_v27 = vpop.f32.mrf.mxu0  ;;  %v1019_v45 = vpop.f32.mrf.mxu1 }
 0x3fc   :  { %v6783_v45 = vld [vmem:[%s9542_s20 + $0x58] sm:$0xff] }
 0x402   :  { %v1032_v28 = vpop.f32.mrf.mxu2  ;;  %v1045_v29 = vpop.f32.mrf.mxu3 }
 0x403   :  { %v1270_v30 = vpop.f32.mrf.mxu0  ;;  %v1284_v32 = vpop.f32.mrf.mxu1  ;;  %v766_v28 = vperm.slane %v8137_v13, 2 }
 0x404   :  { %v1271_v31 = vadd.f32 %v1270_v30, %v1082_v35  ;;  %v1285_v41 = vadd.f32 %v1284_v32, %v1083_v36  ;;  %v6782_v32 = vld [vmem:[%s9542_s20 + $0x50] sm:$0xff] }
 0x405   :  { %v979_v33 = vadd.f32 %v8114_v7, %v766_v28  ;;  %v6781_v7 = vld [vmem:[%s9542_s20 + $0x48] sm:$0xff] }
 0x40a   :  { %v1298_v37 = vpop.f32.mrf.mxu2  ;;  %v1312_v38 = vpop.f32.mrf.mxu3 }
 0x40b   :  { %v8139_v39 = vadd.f32 %v1312_v38, %v1085_v34  ;;  %v1272_v40 = vpop.f32.mrf.mxu0  ;;  %v1286_v22 = vpop.f32.mrf.mxu1  ;;  %v1299_v57 = vadd.f32 %v1298_v37, %v1084_v51 }
 0x40c   :  { %v1273_v42 = vadd.f32 %v1272_v40, %v1082_v35  ;;  %v1287_v43 = vadd.f32 %v1286_v22, %v1083_v36 }
 0x40e   :  { %v1696_v48 = vpack.c.bf16 %v1273_v42, %v1271_v31  ;;  %v1765_v50 = vpack.c.bf16 %v1287_v43, %v1285_v41  ;;  %v8199_v41 = vld [vmem:[%s9543_s19] sm:$0xff]  ;;  %v1951_v42 = vpack.c.bf16 %v979_v33, %v979_v33 }
 0x40f   :  { %v1407_v43 = vperm.slane %v8199_v41, 0  ;;  %v1408_v44 = vperm.slane %v8199_v41, 1 }
 0x410   :  { %1704 = vmatpush.bf16.xpose.msrb.mxu0 %v1696_v48  ;;  %1773 = vmatpush.bf16.xpose.msrb.mxu2 %v1765_v50  ;;  %v7096_v50 = vmov 65535  }
 0x412   :  { %v1300_v55 = vpop.f32.mrf.mxu2  ;;  %v1314_v56 = vpop.f32.mrf.mxu3 }
 0x413   :  { %v1301_v58 = vadd.f32 %v1300_v55, %v1084_v51  ;;  %v8152_v59 = vadd.f32 %v1314_v56, %v1085_v34  ;;  %v1326_v60 = vpop.f32.mrf.mxu0  ;;  %v1340_v61 = vpop.f32.mrf.mxu1  ;;  %v1729_v51 = vsel %vm1727_vm1, 4294967295, %v7096_v50 }
 0x414   :  { %v8154_v62 = vadd.f32 %v1326_v60, %v1086_v52  ;;  %v8156_v63 = vadd.f32 %v1340_v61, %v1087_v24  ;;  %v8209_v56 = vsel %vm1728_vm2, %v1729_v51, 0  ;;  %v1409_v60 = vperm.slane %v8199_v41, 2 }
 0x415   :  { %v1952_v2 = vpack.c.bf16 %v1301_v58, %v1299_v57  ;;  %v2079_v3 = vpack.c.bf16 %v8152_v59, %v8139_v39  ;;  %v1410_v61 = vperm.slane %v8199_v41, 3  ;;  %v768_v39 = vperm.slane %v8137_v13, 4 }
 0x417   :  { %1705 = vmatmul.bf16.vlgmr.msrb.gmra.mxu0 %v1695_v1  ;;  %1774 = vmatmul.bf16.vlgmr.msrb.gmra.mxu2 %v1764_v5  ;;  %v1005_v59 = vadd.f32 %v8118_v18, %v768_v39  ;;  %v6794_v18 = vld [vmem:[%s9542_s20 + $0xb0] sm:$0xff] }
 0x418   :  { %1877 = vmatpush.bf16.msra.mxu0 %v6787_v46  ;;  %1960 = vmatpush.bf16.xpose.msra.mxu2 %v1952_v2  ;;  %v6780_v46 = vld [vmem:[%s9542_s20 + $0x40] sm:$0xff] }
 0x41a   :  { %v1354_v11 = vpop.f32.mrf.mxu2  ;;  %v1368_v12 = vpop.f32.mrf.mxu3 }
 0x41b   :  { %v8168_v0 = vadd.f32 %v1354_v11, %v1088_v49  ;;  %v8170_v15 = vadd.f32 %v1368_v12, %v1089_v6  ;;  %v1328_v16 = vpop.f32.mrf.mxu0  ;;  %v1342_v9 = vpop.f32.mrf.mxu1 }
 0x41c   :  { %1878 = vmatpush.bf16.msra.mxu0 %v6786_v54  ;;  %v8172_v23 = vadd.f32 %v1328_v16, %v1086_v52  ;;  %v8174_v27 = vadd.f32 %v1342_v9, %v1087_v24 }
 0x41e   :  { %v2206_v29 = vpack.c.bf16 %v8172_v23, %v8154_v62  ;;  %v2333_v30 = vpack.c.bf16 %v8174_v27, %v8156_v63  ;;  %v769_v62 = vperm.slane %v8137_v13, 5  ;;  %v6795_v63 = vld [vmem:[%s9542_s20 + $0xb8] sm:$0xff] }
 0x420   :  { %1879 = vmatpush.bf16.msra.mxu0 %v6785_v4  ;;  %v1411_v4 = vperm.slane %v8199_v41, 4  ;;  %2064 = vmatpush.bf16.msrb.mxu2 %v6795_v63 }
 0x422   :  { %v1356_v34 = vpop.f32.mrf.mxu2  ;;  %v1370_v35 = vpop.f32.mrf.mxu3 }
 0x423   :  { %v8188_v36 = vadd.f32 %v1356_v34, %v1088_v49  ;;  %v8190_v37 = vadd.f32 %v1370_v35, %v1089_v6  ;;  %v1592_v38 = vpop.f32.mrf.mxu0  ;;  %v1606_v40 = vpop.f32.mrf.mxu1  ;;  %v1413_v34 = vperm.slane %v8199_v41, 6  ;;  %v1414_v35 = vperm.slane %v8199_v41, 7 }
 0x424   :  { %1880 = vmatpush.bf16.msra.mxu0 %v6784_v8  ;;  %v1593_v53 = vadd.f32 %v1592_v38, %v1407_v43  ;;  %v1607_v54 = vadd.f32 %v1606_v40, %v1408_v44  ;;  %2065 = vmatpush.bf16.msrb.mxu2 %v6794_v18 }
 0x425   :  { %v2460_v22 = vpack.c.bf16 %v8188_v36, %v8168_v0  ;;  %v2587_v31 = vpack.c.bf16 %v8190_v37, %v8170_v15  ;;  %v770_v0 = vperm.slane %v8137_v13, 6  ;;  %v771_v15 = vperm.slane %v8137_v13, 7  ;;  %v6792_v37 = vld [vmem:[%s9542_s20 + $0xa0] sm:$0xff] }
 0x427   :  { %1961 = vmatmul.bf16.vlgmr.msra.gmra.mxu2 %v1951_v42  ;;  %v1031_v27 = vadd.f32 %v8122_v21, %v770_v0  ;;  %v6790_v21 = vld [vmem:[%s9542_s20 + $0x90] sm:$0xff] }
 0x428   :  { %1881 = vmatpush.bf16.msra.mxu0 %v6783_v45 }
 0x42a   :  { %v1620_v47 = vpop.f32.mrf.mxu2  ;;  %v1634_v48 = vpop.f32.mrf.mxu3 }
 0x42b   :  { %v1594_v52 = vpop.f32.mrf.mxu0  ;;  %v1608_v24 = vpop.f32.mrf.mxu1  ;;  %v1621_v6 = vadd.f32 %v1620_v47, %v1409_v60  ;;  %v1635_v8 = vadd.f32 %v1634_v48, %v1410_v61 }
 0x42c   :  { %1882 = vmatpush.bf16.msra.mxu0 %v6782_v32  ;;  %v1595_v26 = vadd.f32 %v1594_v52, %v1407_v43  ;;  %v1609_v55 = vadd.f32 %v1608_v24, %v1408_v44 }
 0x42e   :  { %v1723_v57 = vpack.c.bf16 %v1595_v26, %v1593_v53  ;;  %v1791_v58 = vpack.c.bf16 %v1609_v55, %v1607_v54 }
 0x430   :  { %1883 = vmatpush.bf16.msra.mxu0 %v6781_v7  ;;  %v1732_v1 = vand.u32 %v8209_v56, %v1723_v57  ;;  %v1796_v2 = vand.u32 %v1791_v58, %v8209_v56 }
 0x432   :  { %v1622_v5 = vpop.f32.mrf.mxu2  ;;  %v1636_v49 = vpop.f32.mrf.mxu3  ;;  %1741 = vmatpush.bf16.msra.mxu1 %v1732_v1  ;;  %1805 = vmatpush.bf16.msra.mxu3 %v1796_v2 }
 0x433   :  { %v1623_v11 = vadd.f32 %v1622_v5, %v1409_v60  ;;  %v1637_v12 = vadd.f32 %v1636_v49, %v1410_v61  ;;  %v1648_v16 = vpop.f32.mrf.mxu0 }
 0x434   :  { %1884 = vmatpush.bf16.msra.mxu0 %v6780_v46  ;;  %v8216_v9 = vadd.f32 %v1648_v16, %v1411_v4 }
 0x435   :  { %v1978_v45 = vpack.c.bf16 %v1623_v11, %v1621_v6  ;;  %v2105_v28 = vpack.c.bf16 %v1637_v12, %v1635_v8 }
 0x437   :  { %v1983_v32 = vand.u32 %v1978_v45, %v8209_v56  ;;  %v2110_v33 = vand.u32 %v2105_v28, %v8209_v56 }
 0x439   :  { %1992 = vmatpush.bf16.msrb.mxu3 %v1983_v32  ;;  %2119 = vmatpush.bf16.msrb.mxu0 %v2110_v33 }
 0x43a   :  { %v1676_v38 = vpop.f32.mrf.mxu2  ;;  %v1690_v40 = vpop.f32.mrf.mxu3 }
 0x43b   :  { %v8222_v7 = vadd.f32 %v1676_v38, %v1413_v34  ;;  %v8224_v42 = vadd.f32 %v1690_v40, %v1414_v35  ;;  %v1650_v43 = vpop.f32.mrf.mxu0 }
 0x43c   :  { %v8226_v44 = vadd.f32 %v1650_v43, %v1411_v4 }
 0x43e   :  { %v2232_v46 = vpack.c.bf16 %v8226_v44, %v8216_v9 }
 0x442   :  { %v1678_v47 = vpop.f32.mrf.mxu2  ;;  %v1692_v48 = vpop.f32.mrf.mxu3 }
 0x443   :  { %v8230_v50 = vadd.f32 %v1678_v47, %v1413_v34  ;;  %v8232_v51 = vadd.f32 %v1692_v48, %v1414_v35  ;;  %v767_v47 = vperm.slane %v8137_v13, 3  ;;  %v6788_v13 = vld [vmem:[%s9542_s20 + $0x80] sm:$0xff] }
 0x445   :  { %v2486_v52 = vpack.c.bf16 %v8230_v50, %v8222_v7  ;;  %v2613_v24 = vpack.c.bf16 %v8232_v51, %v8224_v42  ;;  %v992_v48 = vadd.f32 %v8116_v14, %v767_v47  ;;  %v1018_v14 = vadd.f32 %v8120_v19, %v769_v62  ;;  %v6793_v19 = vld [vmem:[%s9542_s20 + $0xa8] sm:$0xff]  ;;  %v6810_v42 = vld [vmem:[%s9542_s20 + $0x130] sm:$0xff] }
 0x446   :  { %2066 = vmatpush.bf16.msrb.mxu2 %v6793_v19 }
 0x447   :  { %v2332_v23 = vpack.c.bf16 %v1018_v14, %v1018_v14  ;;  %v2618_v50 = vand.u32 %v2613_v24, %v8209_v56  ;;  %v6801_v24 = vld [vmem:[%s9542_s20 + $0xe8] sm:$0xff] }
 0x44a   :  { %2067 = vmatpush.bf16.msrb.mxu2 %v6792_v37 }
 0x494   :  { %v8238_v53 = vpop.f32.mrf.mxu0 }
 0x495   :  { %v1711_v12 = vsel %vm1710_vm3, %v8238_v53, -inf }
 0x49a   :  { %v1775_v54 = vpop.f32.mrf.mxu2 }
 0x49b   :  { %v1779_v26 = vsel %vm1710_vm3, %v1775_v54, -inf }
 0x49c   :  { %v1708_v55 = vpop.f32.mrf.mxu0  ;;  %1780 = vmax.xlane.f32.xlu0 %v1779_v26 }
 0x49d   :  { %v2237_v55 = vand.u32 %v2232_v46, %v8209_v56 }
 0x4a2   :  { %v1777_v57 = vpop.f32.mrf.mxu2 }
 0x4aa   :  { %v1962_v58 = vpop.f32.mrf.mxu2 }
 0x4ab   :  { %v1966_v60 = vsel %vm1710_vm3, %v1962_v58, -inf }
 0x4ac   :  { %1967 = vmax.xlane.f32.xlu0 %v1966_v60 }
 0x4b2   :  { %v1964_v61 = vpop.f32.mrf.mxu2 }
 0x50f   :  { %v1781_v1 = vpop.xlane.xlu0 %1780 }
 0x510   :  { %v1782_v2 = vsub.f32 %v1775_v54, %v1781_v1  ;;  %v2078_v54 = vpack.c.bf16 %v992_v48, %v992_v48 }
 0x512   :  { %v1783_v4 = vmul.f32 1.442695, %v1782_v2 }
 0x514   :  { %7027 = vpow2.f32 %v1783_v4 }
 0x51a   :  { %v7028_v5 = vpop.eup %7027 }
 0x51b   :  { %v1785_v49 = vsel %vm1710_vm3, %v7028_v5, 0.0 }
 0x51c   :  { %1786 = vadd.xlane.f32.xlu2 %v1785_v49 }
 0x51f   :  { %v1968_v6 = vpop.xlane.xlu0 %1967 }
 0x520   :  { %v1969_v8 = vsub.f32 %v1962_v58, %v1968_v6 }
 0x522   :  { %v1970_v11 = vmul.f32 1.442695, %v1969_v8 }
 0x524   :  { %7029 = vpow2.f32 %v1970_v11  ;;  %1712 = vmax.xlane.f32.xlu2 %v1711_v12 }
 0x52a   :  { %v7030_v16 = vpop.eup %7029 }
 0x52b   :  { %v1972_v45 = vsel %vm1710_vm3, %v7030_v16, 0.0 }
 0x52c   :  { %1973 = vadd.xlane.f32.xlu1 %v1972_v45 }
 0x58f   :  { %v1787_v28 = vpop.xlane.xlu2 %1786 }
 0x590   :  { %7031 = vrcp.f32 %v1787_v28 }
 0x596   :  { %v7032_v32 = vpop.eup %7031 }
 0x597   :  { %v1789_v33 = vmul.f32 %v7032_v32, %v7028_v5  ;;  %v1713_v44 = vpop.xlane.xlu2 %1712 }
 0x598   :  { %v1714_v46 = vsub.f32 %v8238_v53, %v1713_v44 }
 0x599   :  { %v1790_v34 = vpack.c.bf16 %v1789_v33, %v1789_v33 }
 0x59a   :  { %v1715_v12 = vmul.f32 1.442695, %v1714_v46 }
 0x59b   :  { %5365 = vmatmul.msk.bf16.vlgmr.msra.gmra.mxu3 %vm1710_vm3, %v1790_v34 }
 0x59c   :  { %2087 = vmatpush.bf16.xpose.msra.mxu3 %v2079_v3  ;;  %v2205_v3 = vpack.c.bf16 %v1005_v59, %v1005_v59 }
 0x59f   :  { %v1974_v35 = vpop.xlane.xlu1 %1973 }
 0x5a0   :  { %7033 = vrcp.f32 %v1974_v35 }
 0x5a1   :  { %7035 = vpow2.f32 %v1715_v12 }
 0x5a6   :  { %v7034_v38 = vpop.eup %7033 }
 0x5a7   :  { %v1976_v40 = vmul.f32 %v7034_v38, %v7030_v16  ;;  %v7036_v28 = vpop.eup %7035 }
 0x5a8   :  { %v1717_v33 = vsel %vm1710_vm3, %v7036_v28, 0.0 }
 0x5a9   :  { %v1977_v43 = vpack.c.bf16 %v1976_v40, %v1976_v40 }
 0x5ab   :  { %5446 = vmatmul.msk.bf16.vlgmr.msrb.gmra.mxu3 %vm1710_vm3, %v1977_v43 }
 0x5ac   :  { %2214 = vmatpush.bf16.xpose.msrb.mxu3 %v2206_v29  ;;  %v2459_v29 = vpack.c.bf16 %v1031_v27, %v1031_v27 }
 0x5bb   :  { %2088 = vmatmul.bf16.vlgmr.msra.gmra.mxu3 %v2078_v54 }
 0x5bc   :  { %2341 = vmatpush.bf16.xpose.msra.mxu3 %v2333_v30  ;;  %v1044_v30 = vadd.f32 %v8124_v25, %v771_v15  ;;  %v6789_v25 = vld [vmem:[%s9542_s20 + $0x88] sm:$0xff] }
 0x5be   :  { %v2586_v36 = vpack.c.bf16 %v1044_v30, %v1044_v30 }
 0x5cb   :  { %2215 = vmatmul.bf16.vlgmr.msrb.gmra.mxu3 %v2205_v3 }
 0x5cc   :  { %2468 = vmatpush.bf16.xpose.msrb.mxu3 %v2460_v22  ;;  %v6791_v22 = vld [vmem:[%s9542_s20 + $0x98] sm:$0xff] }
 0x5cd   :  { %2068 = vmatpush.bf16.msrb.mxu2 %v6791_v22 }
 0x5d1   :  { %2069 = vmatpush.bf16.msrb.mxu2 %v6790_v21 }
 0x5d5   :  { %2070 = vmatpush.bf16.msrb.mxu2 %v6789_v25 }
 0x5d9   :  { %2071 = vmatpush.bf16.msrb.mxu2 %v6788_v13 }
 0x5db   :  { %2342 = vmatmul.bf16.vlgmr.msra.gmra.mxu3 %v2332_v23 }
 0x5dc   :  { %2595 = vmatpush.bf16.xpose.msra.mxu3 %v2587_v31 }
 0x5eb   :  { %2469 = vmatmul.bf16.vlgmr.msrb.gmra.mxu3 %v2459_v29 }
 0x5fb   :  { %2596 = vmatmul.bf16.vlgmr.msra.gmra.mxu3 %v2586_v36 }
 0x61e   :  { %v1807_v31 = vpop.f32.mrf.mxu3 }
 0x61f   :  { %v1811_v26 = vpack.c.bf16 %v1807_v31, %v1807_v31 }
 0x621   :  { %1885 = vmatmul.bf16.vlgmr.msra.gmra.mxu0 %v1811_v26 }
 0x622   :  { %2246 = vmatpush.bf16.msra.mxu0 %v2237_v55 }
 0x626   :  { %v1809_v57 = vpop.f32.mrf.mxu3 }
 0x62e   :  { %v1994_v58 = vpop.f32.mrf.mxu3 }
 0x62f   :  { %v1998_v60 = vpack.c.bf16 %v1994_v58, %v1994_v58 }
 0x631   :  { %2072 = vmatmul.bf16.vlgmr.msrb.gmra.mxu2 %v1998_v60 }
 0x636   :  { %v1996_v61 = vpop.f32.mrf.mxu3 }
 0x63e   :  { %v2089_v1 = vpop.f32.mrf.mxu3 }
 0x63f   :  { %v2093_v2 = vsel %vm1710_vm3, %v2089_v1, -inf }
 0x640   :  { %2094 = vmax.xlane.f32.xlu0 %v2093_v2 }
 0x646   :  { %v2091_v4 = vpop.f32.mrf.mxu3 }
 0x64e   :  { %v2216_v5 = vpop.f32.mrf.mxu3 }
 0x64f   :  { %v2220_v49 = vsel %vm1710_vm3, %v2216_v5, -inf }
 0x650   :  { %2221 = vmax.xlane.f32.xlu1 %v2220_v49 }
 0x656   :  { %v2218_v6 = vpop.f32.mrf.mxu3 }
 0x657   :  { %v6779_v6 = vld [vmem:[%s9542_s20 + $0x38] sm:$0xff] }
 0x658   :  { %1938 = vmatpush.bf16.msrb.mxu1 %v6779_v6  ;;  %v6826_v6 = vld [vmem:[%s9542_s20 + $0x1b0] sm:$0xff] }
 0x65e   :  { %v2343_v8 = vpop.f32.mrf.mxu3 }
 0x65f   :  { %v2347_v9 = vsel %vm1710_vm3, %v2343_v8, -inf }
 0x660   :  { %2348 = vmax.xlane.f32.xlu0 %v2347_v9 }
 0x666   :  { %v2345_v11 = vpop.f32.mrf.mxu3 }
 0x667   :  { %v6778_v11 = vld [vmem:[%s9542_s20 + $0x30] sm:$0xff] }
 0x668   :  { %1939 = vmatpush.bf16.msrb.mxu1 %v6778_v11 }
 0x66e   :  { %v2470_v16 = vpop.f32.mrf.mxu3 }
 0x66f   :  { %v2474_v45 = vsel %vm1710_vm3, %v2470_v16, -inf }
 0x670   :  { %2475 = vmax.xlane.f32.xlu2 %v2474_v45 }
 0x676   :  { %v2472_v32 = vpop.f32.mrf.mxu3 }
 0x677   :  { %v6775_v32 = vld [vmem:[%s9542_s20 + $0x18] sm:$0xff] }
 0x678   :  { %1718 = vadd.xlane.f32.xlu2 %v1717_v33 }
 0x67e   :  { %v2597_v34 = vpop.f32.mrf.mxu3 }
 0x67f   :  { %v2601_v35 = vsel %vm1710_vm3, %v2597_v34, -inf }
 0x680   :  { %2602 = vmax.xlane.f32.xlu0 %v2601_v35  ;;  %v6774_v35 = vld [vmem:[%s9542_s20 + $0x10] sm:$0xff] }
 0x686   :  { %v2599_v38 = vpop.f32.mrf.mxu3 }
 0x69e   :  { %v8308_v40 = vpop.f32.mrf.mxu0 }
 0x6a6   :  { %v1888_v53 = vpop.f32.mrf.mxu0 }
 0x6a7   :  { %v2491_v53 = vand.u32 %v2486_v52, %v8209_v56  ;;  %v6803_v52 = vld [vmem:[%s9542_s20 + $0xf8] sm:$0xff] }
 0x6b3   :  { %v2095_v43 = vpop.xlane.xlu0 %2094 }
 0x6b4   :  { %v2096_v47 = vsub.f32 %v2089_v1, %v2095_v43  ;;  %v8310_v48 = vpop.f32.mrf.mxu2  ;;  %v1662_v1 = vpop.f32.mrf.mxu1  ;;  %v6773_v43 = vld [vmem:[%s9542_s20 + $0x8] sm:$0xff] }
 0x6b6   :  { %v2097_v54 = vmul.f32 1.442695, %v2096_v47 }
 0x6b8   :  { %7037 = vpow2.f32 %v2097_v54  ;;  %v6772_v54 = vld [vmem:[%s9542_s20] sm:$0xff] }
 0x6bc   :  { %v2075_v39 = vpop.f32.mrf.mxu2  ;;  %v1664_v2 = vpop.f32.mrf.mxu1 }
 0x6be   :  { %v7038_v59 = vpop.eup %7037 }
 0x6bf   :  { %v2099_v3 = vsel %vm1710_vm3, %v7038_v59, 0.0 }
 0x6c0   :  { %2100 = vadd.xlane.f32.xlu1 %v2099_v3  ;;  %v6811_v3 = vld [vmem:[%s9542_s20 + $0x138] sm:$0xff] }
 0x6c1   :  { %2318 = vmatpush.bf16.msra.mxu2 %v6811_v3 }
 0x6c3   :  { %v2222_v62 = vpop.xlane.xlu1 %2221 }
 0x6c4   :  { %v2223_v14 = vsub.f32 %v2216_v5, %v2222_v62  ;;  %v1412_v5 = vperm.slane %v8199_v41, 5  ;;  %v6777_v41 = vld [vmem:[%s9542_s20 + $0x28] sm:$0xff]  ;;  %v6802_v62 = vld [vmem:[%s9542_s20 + $0xf0] sm:$0xff] }
 0x6c5   :  { %1940 = vmatpush.bf16.msrb.mxu1 %v6777_v41  ;;  %2319 = vmatpush.bf16.msra.mxu2 %v6810_v42  ;;  %v6835_v41 = vld [vmem:[%s9542_s20 + $0x1f8] sm:$0xff] }
 0x6c6   :  { %v2224_v23 = vmul.f32 1.442695, %v2223_v14  ;;  %v1665_v49 = vadd.f32 %v1664_v2, %v1412_v5  ;;  %v6809_v14 = vld [vmem:[%s9542_s20 + $0x128] sm:$0xff]  ;;  %v6816_v2 = vld [vmem:[%s9542_s20 + $0x160] sm:$0xff] }
 0x6c8   :  { %7039 = vpow2.f32 %v2224_v23  ;;  %v6800_v23 = vld [vmem:[%s9542_s20 + $0xe0] sm:$0xff] }
 0x6c9   :  { %2320 = vmatpush.bf16.msra.mxu2 %v6809_v14 }
 0x6ce   :  { %v7040_v63 = vpop.eup %7039 }
 0x6cf   :  { %v2226_v18 = vsel %vm1710_vm3, %v7040_v63, 0.0 }
 0x6d0   :  { %2227 = vadd.xlane.f32.xlu1 %v2226_v18 }
 0x6d3   :  { %v2349_v0 = vpop.xlane.xlu0 %2348 }
 0x6d4   :  { %v2350_v19 = vsub.f32 %v2343_v8, %v2349_v0  ;;  %v1663_v8 = vadd.f32 %v1662_v1, %v1412_v5  ;;  %v6804_v1 = vld [vmem:[%s9542_s20 + $0x100] sm:$0xff]  ;;  %v6827_v5 = vld [vmem:[%s9542_s20 + $0x1b8] sm:$0xff] }
 0x6d6   :  { %v2351_v27 = vmul.f32 1.442695, %v2350_v19  ;;  %v2359_v44 = vpack.c.bf16 %v1665_v49, %v1663_v8  ;;  %v6799_v19 = vld [vmem:[%s9542_s20 + $0xd8] sm:$0xff]  ;;  %v6814_v49 = vld [vmem:[%s9542_s20 + $0x150] sm:$0xff]  ;;  %v6813_v8 = vld [vmem:[%s9542_s20 + $0x148] sm:$0xff] }
 0x6d8   :  { %7041 = vpow2.f32 %v2351_v27  ;;  %v6798_v27 = vld [vmem:[%s9542_s20 + $0xd0] sm:$0xff] }
 0x6de   :  { %v8314_v29 = vpop.eup %7041 }
 0x6df   :  { %v2353_v15 = vsel %vm1710_vm3, %v8314_v29, 0.0 }
 0x6e0   :  { %2354 = vadd.xlane.f32.xlu0 %v2353_v15 }
 0x6e3   :  { %v2476_v30 = vpop.xlane.xlu2 %2475 }
 0x6e4   :  { %v2477_v36 = vsub.f32 %v2470_v16, %v2476_v30  ;;  %v2364_v16 = vand.u32 %v2359_v44, %v8209_v56  ;;  %v6812_v44 = vld [vmem:[%s9542_s20 + $0x140] sm:$0xff] }
 0x6e6   :  { %v2478_v37 = vmul.f32 1.442695, %v2477_v36  ;;  %v6797_v36 = vld [vmem:[%s9542_s20 + $0xc8] sm:$0xff] }
 0x6e8   :  { %7043 = vpow2.f32 %v2478_v37 }
 0x6eb   :  { %v1719_v22 = vpop.xlane.xlu2 %1718 }
 0x6ec   :  { %7045 = vrcp.f32 %v1719_v22 }
 0x6ee   :  { %v8318_v21 = vpop.eup %7043 }
 0x6ef   :  { %v2480_v25 = vsel %vm1710_vm3, %v8318_v21, 0.0 }
 0x6f0   :  { %2481 = vadd.xlane.f32.xlu2 %v2480_v25 }
 0x6f2   :  { %v7046_v13 = vpop.eup %7045 }
 0x6f3   :  { %v1721_v31 = vmul.f32 %v7046_v13, %v7036_v28  ;;  %v2603_v26 = vpop.xlane.xlu0 %2602  ;;  %v6776_v28 = vld [vmem:[%s9542_s20 + $0x20] sm:$0xff] }
 0x6f4   :  { %v2604_v55 = vsub.f32 %v2597_v34, %v2603_v26  ;;  %1941 = vmatpush.bf16.msrb.mxu1 %v6776_v28  ;;  %v6796_v13 = vld [vmem:[%s9542_s20 + $0xc0] sm:$0xff]  ;;  %v6807_v26 = vld [vmem:[%s9542_s20 + $0x118] sm:$0xff]  ;;  %v6834_v28 = vld [vmem:[%s9542_s20 + $0x1f0] sm:$0xff] }
 0x6f5   :  { %v1722_v57 = vpack.c.bf16 %v1721_v31, %v1721_v31  ;;  %v6808_v31 = vld [vmem:[%s9542_s20 + $0x120] sm:$0xff] }
 0x6f6   :  { %v2605_v58 = vmul.f32 1.442695, %v2604_v55  ;;  %2321 = vmatpush.bf16.msra.mxu2 %v6808_v31  ;;  %v6819_v55 = vld [vmem:[%s9542_s20 + $0x178] sm:$0xff] }
 0x6f7   :  { %5364 = vmatmul.msk.bf16.vlgmr.msra.gmra.mxu1 %vm1710_vm3, %v1722_v57  ;;  %v6806_v57 = vld [vmem:[%s9542_s20 + $0x110] sm:$0xff] }
 0x6f8   :  { %7047 = vpow2.f32 %v2605_v58  ;;  %1942 = vmatpush.bf16.msrb.mxu1 %v6775_v32  ;;  %v6818_v58 = vld [vmem:[%s9542_s20 + $0x170] sm:$0xff] }
 0x6fa   :  { %2322 = vmatpush.bf16.msra.mxu2 %v6807_v26 }
 0x6fc   :  { %1943 = vmatpush.bf16.msrb.mxu1 %v6774_v35  ;;  %v6820_v35 = vld [vmem:[%s9542_s20 + $0x180] sm:$0xff] }
 0x6fe   :  { %v8323_v60 = vpop.eup %7047  ;;  %2323 = vmatpush.bf16.msra.mxu2 %v6806_v57 }
 0x6ff   :  { %v2607_v61 = vsel %vm1710_vm3, %v8323_v60, 0.0 }
 0x700   :  { %2608 = vadd.xlane.f32.xlu1 %v2607_v61  ;;  %1944 = vmatpush.bf16.msrb.mxu1 %v6773_v43  ;;  %v6817_v61 = vld [vmem:[%s9542_s20 + $0x168] sm:$0xff] }
 0x704   :  { %1945 = vmatpush.bf16.msrb.mxu1 %v6772_v54  ;;  %v6830_v54 = vld [vmem:[%s9542_s20 + $0x1d0] sm:$0xff] }
 0x708   :  { %2191 = vmatpush.bf16.msra.mxu1 %v6803_v52 }
 0x70c   :  { %2192 = vmatpush.bf16.msra.mxu1 %v6802_v62 }
 0x710   :  { %2193 = vmatpush.bf16.msra.mxu1 %v6801_v24 }
 0x714   :  { %2194 = vmatpush.bf16.msra.mxu1 %v6800_v23 }
 0x718   :  { %2195 = vmatpush.bf16.msra.mxu1 %v6799_v19 }
 0x71c   :  { %2196 = vmatpush.bf16.msra.mxu1 %v6798_v27 }
 0x720   :  { %2197 = vmatpush.bf16.msra.mxu1 %v6797_v36 }
 0x724   :  { %2198 = vmatpush.bf16.msra.mxu1 %v6796_v13 }
 0x733   :  { %v2101_v4 = vpop.xlane.xlu1 %2100 }
 0x734   :  { %7049 = vrcp.f32 %v2101_v4  ;;  %v6815_v4 = vld [vmem:[%s9542_s20 + $0x158] sm:$0xff] }
 0x73a   :  { %v7050_v9 = vpop.eup %7049 }
 0x73b   :  { %v2103_v46 = vmul.f32 %v7050_v9, %v7038_v59  ;;  %v6825_v9 = vld [vmem:[%s9542_s20 + $0x1a8] sm:$0xff] }
 0x73d   :  { %v2104_v12 = vpack.c.bf16 %v2103_v46, %v2103_v46  ;;  %v6824_v46 = vld [vmem:[%s9542_s20 + $0x1a0] sm:$0xff] }
 0x73f   :  { %5495 = vmatmul.msk.bf16.vlgmr.msrb.gmra.mxu0 %vm1710_vm3, %v2104_v12 }
 0x740   :  { %2373 = vmatpush.bf16.msrb.mxu0 %v2364_v16  ;;  %v6823_v16 = vld [vmem:[%s9542_s20 + $0x198] sm:$0xff] }
 0x743   :  { %v2228_v45 = vpop.xlane.xlu1 %2227 }
 0x744   :  { %7051 = vrcp.f32 %v2228_v45  ;;  %v6822_v45 = vld [vmem:[%s9542_s20 + $0x190] sm:$0xff] }
 0x74a   :  { %v7052_v33 = vpop.eup %7051 }
 0x74b   :  { %v2230_v34 = vmul.f32 %v7052_v33, %v7040_v63  ;;  %v6821_v33 = vld [vmem:[%s9542_s20 + $0x188] sm:$0xff] }
 0x74d   :  { %v2231_v38 = vpack.c.bf16 %v2230_v34, %v2230_v34  ;;  %v6833_v34 = vld [vmem:[%s9542_s20 + $0x1e8] sm:$0xff] }
 0x74f   :  { %5544 = vmatmul.msk.bf16.vlgmr.msra.gmra.mxu0 %vm1710_vm3, %v2231_v38  ;;  %v6832_v38 = vld [vmem:[%s9542_s20 + $0x1e0] sm:$0xff] }
 0x750   :  { %2500 = vmatpush.bf16.msra.mxu0 %v2491_v53 }
 0x753   :  { %v2355_v47 = vpop.xlane.xlu0 %2354 }
 0x754   :  { %7053 = vrcp.f32 %v2355_v47  ;;  %v6831_v47 = vld [vmem:[%s9542_s20 + $0x1d8] sm:$0xff] }
 0x75a   :  { %v7054_v39 = vpop.eup %7053 }
 0x75b   :  { %v2357_v59 = vmul.f32 %v7054_v39, %v8314_v29 }
 0x75d   :  { %v2358_v7 = vpack.c.bf16 %v2357_v59, %v2357_v59  ;;  %v6829_v59 = vld [vmem:[%s9542_s20 + $0x1c8] sm:$0xff] }
 0x75f   :  { %5593 = vmatmul.msk.bf16.vlgmr.msrb.gmra.mxu0 %vm1710_vm3, %v2358_v7  ;;  %v6828_v7 = vld [vmem:[%s9542_s20 + $0x1c0] sm:$0xff] }
 0x760   :  { %2627 = vmatpush.bf16.msrb.mxu0 %v2618_v50 }
 0x763   :  { %v2482_v51 = vpop.xlane.xlu2 %2481 }
 0x764   :  { %7055 = vrcp.f32 %v2482_v51 }
 0x76a   :  { %v7056_v63 = vpop.eup %7055 }
 0x76b   :  { %v2484_v18 = vmul.f32 %v7056_v63, %v8318_v21 }
 0x76d   :  { %v2485_v0 = vpack.c.bf16 %v2484_v18, %v2484_v18 }
 0x76f   :  { %5642 = vmatmul.msk.bf16.vlgmr.msra.gmra.mxu0 %vm1710_vm3, %v2485_v0 }
 0x773   :  { %v2609_v29 = vpop.xlane.xlu1 %2608 }
 0x774   :  { %7057 = vrcp.f32 %v2609_v29  ;;  %v1743_v15 = vpop.f32.mrf.mxu1 }
 0x775   :  { %v1747_v30 = vpack.c.bf16 %v1743_v15, %v1743_v15 }
 0x777   :  { %1946 = vmatmul.bf16.vlgmr.msrb.gmra.mxu1 %v1747_v30 }
 0x778   :  { %2445 = vmatpush.bf16.msrb.mxu1 %v6819_v55 }
 0x77a   :  { %v7058_v37 = vpop.eup %7057 }
 0x77b   :  { %v2611_v22 = vmul.f32 %v7058_v37, %v8323_v60  ;;  %v6805_v60 = vld [vmem:[%s9542_s20 + $0x108] sm:$0xff] }
 0x77c   :  { %v1745_v21 = vpop.f32.mrf.mxu1  ;;  %2446 = vmatpush.bf16.msrb.mxu1 %v6818_v58  ;;  %2324 = vmatpush.bf16.msra.mxu2 %v6805_v60  ;;  %v7009_v58 = vld [vmem:[%s9544_s21] ss:$0 sm:$0xff] }
 0x77d   :  { %v2612_v25 = vpack.c.bf16 %v2611_v22, %v2611_v22 }
 0x77f   :  { %5691 = vmatmul.msk.bf16.vlgmr.msrb.gmra.mxu0 %vm1710_vm3, %v2612_v25 }
 0x780   :  { %2447 = vmatpush.bf16.msrb.mxu1 %v6817_v61  ;;  %2325 = vmatpush.bf16.msra.mxu2 %v6804_v1 }
 0x784   :  { %2448 = vmatpush.bf16.msrb.mxu1 %v6816_v2  ;;  %2572 = vmatpush.bf16.msrb.mxu2 %v6827_v5 }
 0x788   :  { %2449 = vmatpush.bf16.msrb.mxu1 %v6815_v4  ;;  %2573 = vmatpush.bf16.msrb.mxu2 %v6826_v6  ;;  %v6864_v6 = vld [vmem:[%s9537_s14 + $0x1dc] sm:$0xf0] }
 0x78c   :  { %2450 = vmatpush.bf16.msrb.mxu1 %v6814_v49  ;;  %2574 = vmatpush.bf16.msrb.mxu2 %v6825_v9 }
 0x790   :  { %2451 = vmatpush.bf16.msrb.mxu1 %v6813_v8  ;;  %2575 = vmatpush.bf16.msrb.mxu2 %v6824_v46  ;;  %v6860_v8 = vld [vmem:[%s9537_s14 + $0x1c4] sm:$0xf]  ;;  %v5883_v46 = vld [vmem:[%s9537_s14 + $0x1c8] sm:$0xf] }
 0x794   :  { %2452 = vmatpush.bf16.msrb.mxu1 %v6812_v44  ;;  %2576 = vmatpush.bf16.msrb.mxu2 %v6823_v16  ;;  %v5877_v44 = vld [vmem:[%s9537_s14 + $0x1e0] sm:$0xf0] }
 0x798   :  { %2577 = vmatpush.bf16.msrb.mxu2 %v6822_v45  ;;  %v5893_v45 = vld [vmem:[%s9537_s14 + $0x1f0] sm:$0xf0] }
 0x79c   :  { %2578 = vmatpush.bf16.msrb.mxu2 %v6821_v33  ;;  %v6856_v33 = vld [vmem:[%s9537_s14 + $0x19c] sm:$0xf0] }
 0x7a0   :  { %2579 = vmatpush.bf16.msrb.mxu2 %v6820_v35 }
 0x7bc   :  { %v2121_v11 = vpop.f32.mrf.mxu0 }
 0x7bd   :  { %v2125_v12 = vpack.c.bf16 %v2121_v11, %v2121_v11  ;;  %v6865_v11 = vld [vmem:[%s9537_s14 + $0x1e4] sm:$0xf0] }
 0x7be   :  { %v5884_v16 = vor.u32 %v6865_v11, %v5883_v46  ;;  %v5859_v46 = vld [vmem:[%s9537_s14 + $0x190] sm:$0xf] }
 0x7bf   :  { %2199 = vmatmul.bf16.vlgmr.msra.gmra.mxu1 %v2125_v12  ;;  %v5880_v12 = vor.u32 %v6860_v8, %v5877_v44  ;;  %v5853_v44 = vld [vmem:[%s9537_s14 + $0x1a8] sm:$0xf0]  ;;  %v6858_v11 = vld [vmem:[%s9537_s14 + $0x1ac] sm:$0xf0] }
 0x7c0   :  { %2699 = vmatpush.bf16.msra.mxu1 %v6835_v41  ;;  %v6862_v41 = vld [vmem:[%s9537_s14 + $0x1d4] sm:$0xf] }
 0x7c1   :  { %3000 = vmatpush.bf16.msra.mxu0 %v5880_v12 }
 0x7c4   :  { %v2123_v32 = vpop.f32.mrf.mxu0  ;;  %2700 = vmatpush.bf16.msra.mxu1 %v6834_v28  ;;  %v5896_v28 = vor.u32 %v6862_v41, %v5893_v45  ;;  %v6859_v41 = vld [vmem:[%s9537_s14 + $0x1b4] sm:$0xf0]  ;;  %v6884_v45 = vld [vmem:[%s9538_s16 + $0x184] sm:$0xf] }
 0x7c5   :  { %v5843_v32 = vld [vmem:[%s9537_s14 + $0x180] sm:$0xf] }
 0x7c6   :  { %v5844_v35 = vor.u32 %v6856_v33, %v5843_v32  ;;  %v6014_v33 = vld [vmem:[%s9538_s16 + $0x1a0] sm:$0xf0] }
 0x7c8   :  { %2701 = vmatpush.bf16.msra.mxu1 %v6833_v34  ;;  %v6852_v34 = vld [vmem:[%s9537_s14 + $0x184] sm:$0xf] }
 0x7cc   :  { %v2248_v53 = vpop.f32.mrf.mxu0  ;;  %2702 = vmatpush.bf16.msra.mxu1 %v6832_v38  ;;  %v5845_v38 = vld [vmem:[%s9537_s14 + $0x1a0] sm:$0xf0] }
 0x7cd   :  { %v2252_v43 = vpack.c.bf16 %v2248_v53, %v2248_v53  ;;  %v5851_v53 = vld [vmem:[%s9537_s14 + $0x188] sm:$0xf] }
 0x7cf   :  { %2326 = vmatmul.bf16.vlgmr.msra.gmra.mxu2 %v2252_v43  ;;  %v6857_v43 = vld [vmem:[%s9537_s14 + $0x1a4] sm:$0xf0] }
 0x7d0   :  { %2703 = vmatpush.bf16.msra.mxu1 %v6831_v47  ;;  %3013 = vmatpush.bf16.msra.mxu2 %v5884_v16  ;;  %v5848_v47 = vor.u32 %v6852_v34, %v5845_v38  ;;  %v5860_v16 = vor.u32 %v6858_v11, %v5859_v46  ;;  %v6845_v34 = vld [vmem:[%s9537_s14 + $0x14c] sm:$0xf]  ;;  %v6012_v11 = vld [vmem:[%s9538_s16 + $0x180] sm:$0xf] }
 0x7d1   :  { %v5821_v38 = vld [vmem:[%s9537_s14 + $0x168] sm:$0xf0] }
 0x7d2   :  { %3001 = vmatpush.bf16.msra.mxu0 %v5848_v47  ;;  %v5824_v47 = vor.u32 %v6845_v34, %v5821_v38  ;;  %v5837_v34 = vld [vmem:[%s9537_s14 + $0x178] sm:$0xf0] }
 0x7d4   :  { %v2250_v39 = vpop.f32.mrf.mxu0  ;;  %2704 = vmatpush.bf16.msra.mxu1 %v6830_v54  ;;  %v5852_v54 = vor.u32 %v6857_v43, %v5851_v53  ;;  %v5827_v53 = vld [vmem:[%s9537_s14 + $0x150] sm:$0xf] }
 0x7d5   :  { %v6854_v39 = vld [vmem:[%s9537_s14 + $0x194] sm:$0xf]  ;;  %v6850_v43 = vld [vmem:[%s9537_s14 + $0x16c] sm:$0xf0] }
 0x7d6   :  { %3014 = vmatpush.bf16.msra.mxu2 %v5852_v54  ;;  %v5835_v54 = vld [vmem:[%s9537_s14 + $0x158] sm:$0xf] }
 0x7d8   :  { %2705 = vmatpush.bf16.msra.mxu1 %v6829_v59  ;;  %v5861_v59 = vld [vmem:[%s9537_s14 + $0x1b0] sm:$0xf0] }
 0x7dc   :  { %v2375_v50 = vpop.f32.mrf.mxu0  ;;  %2706 = vmatpush.bf16.msra.mxu1 %v6828_v7  ;;  %v5864_v7 = vor.u32 %v6854_v39, %v5861_v59  ;;  %v6851_v39 = vld [vmem:[%s9537_s14 + $0x174] sm:$0xf0]  ;;  %v6876_v59 = vld [vmem:[%s9538_s16 + $0x144] sm:$0xf] }
 0x7dd   :  { %v2379_v52 = vpack.c.bf16 %v2375_v50, %v2375_v50  ;;  %v5811_v50 = vld [vmem:[%s9537_s14 + $0x140] sm:$0xf] }
 0x7df   :  { %2453 = vmatmul.bf16.vlgmr.msrb.gmra.mxu1 %v2379_v52  ;;  %v6848_v52 = vld [vmem:[%s9537_s14 + $0x15c] sm:$0xf0] }
 0x7e0   :  { %3052 = vmatpush.bf16.msrb.mxu1 %v5896_v28 }
 0x7e4   :  { %v2377_v3 = vpop.f32.mrf.mxu0  ;;  %3053 = vmatpush.bf16.msrb.mxu1 %v5864_v7  ;;  %v5828_v7 = vor.u32 %v6850_v43, %v5827_v53  ;;  %v5980_v53 = vld [vmem:[%s9538_s16 + $0x140] sm:$0xf] }
 0x7e5   :  { %v6844_v3 = vld [vmem:[%s9537_s14 + $0x144] sm:$0xf]  ;;  %v6880_v43 = vld [vmem:[%s9538_s16 + $0x15c] sm:$0xf0] }
 0x7ec   :  { %v2502_v62 = vpop.f32.mrf.mxu0 }
 0x7ed   :  { %v2506_v42 = vpack.c.bf16 %v2502_v62, %v2502_v62  ;;  %v5812_v62 = vor.u32 %v6848_v52, %v5811_v50  ;;  %v5836_v50 = vor.u32 %v6851_v39, %v5835_v54  ;;  %v5982_v52 = vld [vmem:[%s9538_s16 + $0x160] sm:$0xf0]  ;;  %v6881_v54 = vld [vmem:[%s9538_s16 + $0x164] sm:$0xf0]  ;;  %v6878_v39 = vld [vmem:[%s9538_s16 + $0x154] sm:$0xf] }
 0x7ef   :  { %2580 = vmatmul.bf16.vlgmr.msrb.gmra.mxu2 %v2506_v42  ;;  %v5813_v42 = vld [vmem:[%s9537_s14 + $0x160] sm:$0xf0] }
 0x7f4   :  { %v1947_v51 = vpop.f32.mrf.mxu1  ;;  %v2504_v24 = vpop.f32.mrf.mxu0 }
 0x7f5   :  { %v1948_v36 = vadd.f32 %v1947_v51, %v8308_v40  ;;  %v5819_v51 = vld [vmem:[%s9537_s14 + $0x148] sm:$0xf] }
 0x7f6   :  { %v6849_v24 = vld [vmem:[%s9537_s14 + $0x164] sm:$0xf0] }
 0x7f7   :  { %v2077_v22 = vadd.f32 %v8310_v48, %v1948_v36  ;;  %v5787_v36 = vld [vmem:[%s9537_s14 + $0x108] sm:$0xf] }
 0x7fc   :  { %v1949_v14 = vpop.f32.mrf.mxu1  ;;  %v2629_v23 = vpop.f32.mrf.mxu0 }
 0x7fd   :  { %v2633_v63 = vpack.c.bf16 %v2629_v23, %v2629_v23  ;;  %v5816_v14 = vor.u32 %v6844_v3, %v5813_v42  ;;  %v5820_v23 = vor.u32 %v6849_v24, %v5819_v51  ;;  %v6837_v3 = vld [vmem:[%s9537_s14 + $0x10c] sm:$0xf]  ;;  %v5985_v42 = vor.u32 %v6876_v59, %v5982_v52  ;;  %v5795_v51 = vld [vmem:[%s9537_s14 + $0x110] sm:$0xf]  ;;  %v5998_v59 = vld [vmem:[%s9538_s16 + $0x170] sm:$0xf0] }
 0x7fe   :  { %v6842_v24 = vld [vmem:[%s9537_s14 + $0x12c] sm:$0xf0]  ;;  %v6839_v52 = vld [vmem:[%s9537_s14 + $0x11c] sm:$0xf] }
 0x7ff   :  { %2707 = vmatmul.bf16.vlgmr.msra.gmra.mxu1 %v2633_v63  ;;  %v6846_v63 = vld [vmem:[%s9537_s14 + $0x154] sm:$0xf]  ;;  %3002 = vmatpush.bf16.msra.mxu0 %v5816_v14  ;;  %v5803_v14 = vld [vmem:[%s9537_s14 + $0x118] sm:$0xf] }
 0x800   :  { %3015 = vmatpush.bf16.msra.mxu2 %v5820_v23  ;;  %v6843_v23 = vld [vmem:[%s9537_s14 + $0x134] sm:$0xf0] }
 0x804   :  { %v2631_v18 = vpop.f32.mrf.mxu0 }
 0x805   :  { %v5829_v18 = vld [vmem:[%s9537_s14 + $0x170] sm:$0xf0] }
 0x83c   :  { %v2200_v0 = vpop.f32.mrf.mxu1 }
 0x83d   :  { %v2204_v21 = vadd.f32 %v2200_v0, %v2077_v22  ;;  %v5832_v0 = vor.u32 %v6846_v63, %v5829_v18  ;;  %v6868_v63 = vld [vmem:[%s9538_s16 + $0x104] sm:$0xf] }
 0x83e   :  { %v5950_v18 = vld [vmem:[%s9538_s16 + $0x120] sm:$0xf0] }
 0x83f   :  { %3054 = vmatpush.bf16.msrb.mxu1 %v5832_v0 }
 0x844   :  { %v2202_v19 = vpop.f32.mrf.mxu1 }
 0x845   :  { %v5779_v19 = vld [vmem:[%s9537_s14 + $0x100] sm:$0xf] }
 0x852   :  { %v2327_v27 = vpop.f32.mrf.mxu2 }
 0x853   :  { %v2331_v25 = vadd.f32 %v2327_v27, %v2204_v21  ;;  %v6840_v27 = vld [vmem:[%s9537_s14 + $0x11c] sm:$0xf0] }
 0x85a   :  { %v2329_v29 = vpop.f32.mrf.mxu2 }
 0x85b   :  { %v6836_v29 = vld [vmem:[%s9537_s14 + $0x104] sm:$0xf] }
 0x85c   :  { %v2454_v15 = vpop.f32.mrf.mxu1 }
 0x85d   :  { %v2458_v13 = vadd.f32 %v2454_v15, %v2331_v25  ;;  %v5780_v15 = vor.u32 %v6840_v27, %v5779_v19  ;;  %v6838_v25 = vld [vmem:[%s9537_s14 + $0x114] sm:$0xf]  ;;  %v5796_v19 = vor.u32 %v6842_v24, %v5795_v51  ;;  %v5804_v27 = vor.u32 %v6843_v23, %v5803_v14  ;;  %v5948_v51 = vld [vmem:[%s9538_s16 + $0x100] sm:$0xf]  ;;  %v5956_v14 = vld [vmem:[%s9538_s16 + $0x108] sm:$0xf] }
 0x85e   :  { %v6872_v24 = vld [vmem:[%s9538_s16 + $0x11c] sm:$0xf0]  ;;  %v6873_v23 = vld [vmem:[%s9538_s16 + $0x124] sm:$0xf0] }
 0x864   :  { %v2456_v30 = vpop.f32.mrf.mxu1 }
 0x865   :  { %v5781_v30 = vld [vmem:[%s9537_s14 + $0x120] sm:$0xf0] }
 0x866   :  { %v5784_v22 = vor.u32 %v6836_v29, %v5781_v30 }
 0x868   :  { %3003 = vmatpush.bf16.msra.mxu0 %v5784_v22 }
 0x872   :  { %v2581_v37 = vpop.f32.mrf.mxu2 }
 0x873   :  { %v2585_v26 = vadd.f32 %v2581_v37, %v2458_v13  ;;  %v6841_v37 = vld [vmem:[%s9537_s14 + $0x124] sm:$0xf0]  ;;  %v5797_v13 = vld [vmem:[%s9537_s14 + $0x130] sm:$0xf0] }
 0x874   :  { %v5788_v21 = vor.u32 %v6841_v37, %v5787_v36 }
 0x876   :  { %3016 = vmatpush.bf16.msra.mxu2 %v5788_v21 }
 0x87a   :  { %v2583_v31 = vpop.f32.mrf.mxu2 }
 0x87b   :  { %v5800_v31 = vor.u32 %v6838_v25, %v5797_v13  ;;  %v7010_v25 = vld [vmem:[%s9533_s10 + $0x1] ss:$0 sm:$0xff] }
 0x87c   :  { %v2708_v55 = vpop.f32.mrf.mxu1 }
 0x87d   :  { %v2712_v57 = vadd.f32 %v2708_v55, %v2585_v26  ;;  %v6861_v26 = vld [vmem:[%s9537_s14 + $0x1cc] sm:$0xf]  ;;  %3055 = vmatpush.bf16.msrb.mxu1 %v5800_v31  ;;  %v7011_v31 = vld [vmem:[%s9534_s11 + $0x1] ss:$0 sm:$0xff] }
 0x87e   :  { %v5885_v55 = vld [vmem:[%s9537_s14 + $0x1e8] sm:$0xf0] }
 0x87f   :  { %v2713_v60 = vadd.f32 %v2712_v57, %v7391_v10  ;;  %v5875_v10 = vld [vmem:[%s9537_s14 + $0x1c0] sm:$0xf]  ;;  %v5891_v57 = vld [vmem:[%s9537_s14 + $0x1d0] sm:$0xf] }
 0x880   :  { %v5876_v9 = vor.u32 %v6864_v6, %v5875_v10  ;;  %v6046_v10 = vld [vmem:[%s9538_s16 + $0x1e0] sm:$0xf0]  ;;  %v6853_v6 = vld [vmem:[%s9537_s14 + $0x18c] sm:$0xf] }
 0x881   :  { %v8495_v61 = vadd.f32 %v7009_v58, %v2713_v60  ;;  %v5888_v58 = vor.u32 %v6861_v26, %v5885_v55  ;;  %v6866_v60 = vld [vmem:[%s9537_s14 + $0x1ec] sm:$0xf0]  ;;  %v5856_v12 = vor.u32 %v6853_v6, %v5853_v44 }
 0x882   :  { %2987 = vmatpush.bf16.msrb.mxu3 %v5876_v9 }
 0x883   :  { %v2719_v40 = vsel %vm314_vm5, %v8495_v61, 0.0 }
 0x884   :  { %2720 = vadd.xlane.f32.xlu0 %v2719_v40  ;;  %v2710_v48 = vpop.f32.mrf.mxu1  ;;  %v5899_v40 = vld [vmem:[%s9537_s14 + $0x1d8] sm:$0xf] }
 0x885   :  { %v6867_v48 = vld [vmem:[%s9537_s14 + $0x1f4] sm:$0xf0] }
 0x886   :  { %2988 = vmatpush.bf16.msrb.mxu3 %v5844_v35  ;;  %v6017_v35 = vor.u32 %v6884_v45, %v6014_v33  ;;  %v6030_v45 = vld [vmem:[%s9538_s16 + $0x1b0] sm:$0xf0]  ;;  %v6847_v33 = vld [vmem:[%s9537_s14 + $0x15c] sm:$0xf] }
 0x88a   :  { %2989 = vmatpush.bf16.msrb.mxu3 %v5812_v62  ;;  %v5789_v62 = vld [vmem:[%s9537_s14 + $0x128] sm:$0xf0] }
 0x88b   :  { %v5792_v0 = vor.u32 %v6837_v3, %v5789_v62  ;;  %v5805_v3 = vld [vmem:[%s9537_s14 + $0x138] sm:$0xf0] }
 0x88e   :  { %2990 = vmatpush.bf16.msrb.mxu3 %v5780_v15  ;;  %v5953_v15 = vor.u32 %v6868_v63, %v5950_v18  ;;  %v6870_v63 = vld [vmem:[%s9538_s16 + $0x114] sm:$0xf] }
 0x88f   :  { %v5966_v18 = vld [vmem:[%s9538_s16 + $0x130] sm:$0xf0] }
 0x892   :  { %3026 = vmatpush.bf16.msra.mxu3 %v5888_v58  ;;  %v5901_v58 = vld [vmem:[%s9537_s14 + $0x1f8] sm:$0xf0] }
 0x896   :  { %3027 = vmatpush.bf16.msra.mxu3 %v5856_v12  ;;  %v6888_v12 = vld [vmem:[%s9538_s16 + $0x19c] sm:$0xf0] }
 0x89a   :  { %3028 = vmatpush.bf16.msra.mxu3 %v5824_v47  ;;  %v5988_v47 = vld [vmem:[%s9538_s16 + $0x148] sm:$0xf] }
 0x89b   :  { %v5989_v62 = vor.u32 %v6881_v54, %v5988_v47  ;;  %v5972_v47 = vld [vmem:[%s9538_s16 + $0x118] sm:$0xf] }
 0x89c   :  { %v6875_v54 = vld [vmem:[%s9538_s16 + $0x134] sm:$0xf0] }
 0x89e   :  { %3029 = vmatpush.bf16.msra.mxu3 %v5792_v0  ;;  %v5808_v0 = vor.u32 %v6839_v52, %v5805_v3  ;;  %v6895_v52 = vld [vmem:[%s9538_s16 + $0x1dc] sm:$0xf] }
 0x89f   :  { %v6070_v3 = vld [vmem:[%s9538_s16 + $0x1f8] sm:$0xf0] }
 0x8f7   :  { %v2721_v1 = vpop.xlane.xlu0 %2720 }
 0x8f8   :  { %v2722_v2 = vmul.f32 %v2721_v1, %v7395_v17 }
 0x8fa   :  { %v8501_v4 = vsub.f32 %v8495_v61, %v2722_v2  ;;  %v5892_v2 = vor.u32 %v6866_v60, %v5891_v57  ;;  %v6863_v57 = vld [vmem:[%s9537_s14 + $0x1dc] sm:$0xf]  ;;  %v6044_v60 = vld [vmem:[%s9538_s16 + $0x1c0] sm:$0xf] }
 0x8fc   :  { %v2724_v5 = vmul.f32 %v8501_v4, %v8501_v4  ;;  %3039 = vmatpush.bf16.msrb.mxu0 %v5892_v2  ;;  %v6894_v2 = vld [vmem:[%s9538_s16 + $0x1d4] sm:$0xf] }
 0x8fe   :  { %v2725_v49 = vsel %vm314_vm5, %v2724_v5, 0.0  ;;  %v5900_v5 = vor.u32 %v6867_v48, %v5899_v40  ;;  %v6896_v40 = vld [vmem:[%s9538_s16 + $0x1dc] sm:$0xf0] }
 0x8ff   :  { %2726 = vadd.xlane.f32.xlu2 %v2725_v49  ;;  %v6892_v49 = vld [vmem:[%s9538_s16 + $0x1c4] sm:$0xf]  ;;  %v6045_v6 = vor.u32 %v6896_v40, %v6044_v60  ;;  %v6028_v40 = vld [vmem:[%s9538_s16 + $0x190] sm:$0xf] }
 0x900   :  { %v6049_v9 = vor.u32 %v6892_v49, %v6046_v10  ;;  %3065 = vmatpush.bf16.msrb.mxu2 %v5900_v5  ;;  %3040 = vmatpush.bf16.msrb.mxu0 %v5860_v16  ;;  %v6062_v5 = vld [vmem:[%s9538_s16 + $0x1f0] sm:$0xf0]  ;;  %v5904_v10 = vor.u32 %v6863_v57, %v5901_v58  ;;  %v6020_v16 = vld [vmem:[%s9538_s16 + $0x188] sm:$0xf]  ;;  %v6022_v57 = vld [vmem:[%s9538_s16 + $0x1a8] sm:$0xf0] }
 0x901   :  { %v6065_v46 = vor.u32 %v6894_v2, %v6062_v5  ;;  %v6916_v2 = vld [vmem:[%s9539_s18 + $0x184] sm:$0xf] }
 0x902   :  { %3321 = vmatpush.bf16.msra.mxu1 %v6049_v9  ;;  %v5869_v9 = vld [vmem:[%s9537_s14 + $0x1b8] sm:$0xf0]  ;;  %v6183_v5 = vld [vmem:[%s9539_s18 + $0x1a0] sm:$0xf0] }
 0x904   :  { %3041 = vmatpush.bf16.msrb.mxu0 %v5828_v7  ;;  %v5840_v7 = vor.u32 %v6847_v33, %v5837_v34  ;;  %v6869_v33 = vld [vmem:[%s9538_s16 + $0x10c] sm:$0xf] }
 0x905   :  { %v5958_v34 = vld [vmem:[%s9538_s16 + $0x128] sm:$0xf0] }
 0x906   :  { %3322 = vmatpush.bf16.msra.mxu1 %v6017_v35 }
 0x908   :  { %3042 = vmatpush.bf16.msrb.mxu0 %v5796_v19  ;;  %v5949_v19 = vor.u32 %v6872_v24, %v5948_v51  ;;  %v6213_v51 = vld [vmem:[%s9539_s18 + $0x1c0] sm:$0xf] }
 0x909   :  { %v6928_v24 = vld [vmem:[%s9539_s18 + $0x1dc] sm:$0xf0] }
 0x90a   :  { %3323 = vmatpush.bf16.msra.mxu1 %v5985_v42  ;;  %v6001_v42 = vor.u32 %v6878_v39, %v5998_v59  ;;  %v6900_v39 = vld [vmem:[%s9539_s18 + $0x104] sm:$0xf] }
 0x90b   :  { %v6119_v59 = vld [vmem:[%s9539_s18 + $0x120] sm:$0xf0] }
 0x90e   :  { %3324 = vmatpush.bf16.msra.mxu1 %v5953_v15  ;;  %v5957_v15 = vor.u32 %v6873_v23, %v5956_v14  ;;  %v6221_v14 = vld [vmem:[%s9539_s18 + $0x1c8] sm:$0xf] }
 0x90f   :  { %v6929_v23 = vld [vmem:[%s9539_s18 + $0x1e4] sm:$0xf0] }
 0x972   :  { %v2727_v1 = vpop.xlane.xlu2 %2726 }
 0x973   :  { %v2728_v8 = vmul.f32 %v2727_v1, %v7395_v17  ;;  %v5867_v17 = vld [vmem:[%s9537_s14 + $0x198] sm:$0xf]  ;;  %v6897_v1 = vld [vmem:[%s9538_s16 + $0x1e4] sm:$0xf0] }
 0x974   :  { %v5868_v32 = vor.u32 %v6859_v41, %v5867_v17  ;;  %v6889_v17 = vld [vmem:[%s9538_s16 + $0x1a4] sm:$0xf0]  ;;  %v6886_v41 = vld [vmem:[%s9538_s16 + $0x194] sm:$0xf] }
 0x975   :  { %v2729_v28 = vadd.f32 1e-05, %v2728_v8  ;;  %v6855_v8 = vld [vmem:[%s9537_s14 + $0x19c] sm:$0xf]  ;;  %v6021_v35 = vor.u32 %v6889_v17, %v6020_v16  ;;  %v6033_v38 = vor.u32 %v6886_v41, %v6030_v45  ;;  %v6004_v16 = vld [vmem:[%s9538_s16 + $0x158] sm:$0xf] }
 0x976   :  { %3066 = vmatpush.bf16.msrb.mxu2 %v5868_v32  ;;  %v6013_v32 = vor.u32 %v6888_v12, %v6012_v11  ;;  %v5996_v11 = vld [vmem:[%s9538_s16 + $0x150] sm:$0xf]  ;;  %v6883_v17 = vld [vmem:[%s9538_s16 + $0x174] sm:$0xf0]  ;;  %v6908_v41 = vld [vmem:[%s9539_s18 + $0x144] sm:$0xf] }
 0x977   :  { %7059 = vrsqrt.f32 %v2729_v28  ;;  %vm2736_vm6 = vweird.f32 %v2729_v28  ;;  %v6882_v12 = vld [vmem:[%s9538_s16 + $0x16c] sm:$0xf0]  ;;  %v6151_v45 = vld [vmem:[%s9539_s18 + $0x160] sm:$0xf0] }
 0x97a   :  { %3067 = vmatpush.bf16.msrb.mxu2 %v5836_v50  ;;  %v5981_v50 = vor.u32 %v6880_v43, %v5980_v53  ;;  %v5964_v53 = vld [vmem:[%s9538_s16 + $0x110] sm:$0xf] }
 0x97b   :  { %v6874_v43 = vld [vmem:[%s9538_s16 + $0x12c] sm:$0xf0] }
 0x97d   :  { %v7060_v29 = vpop.eup %7059 }
 0x97e   :  { %v2731_v30 = vmul.f32 %v7060_v29, %v2729_v28  ;;  %3068 = vmatpush.bf16.msrb.mxu2 %v5804_v27  ;;  %vm2737_vm4 = vweird.f32 %v7060_v29  ;;  %v5872_v28 = vor.u32 %v6855_v8, %v5869_v9  ;;  %v6893_v27 = vld [vmem:[%s9538_s16 + $0x1cc] sm:$0xf] }
 0x97f   :  { %vm2738_vm7 = vmor %vm2736_vm6, %vm2737_vm4  ;;  %v6877_v8 = vld [vmem:[%s9538_s16 + $0x14c] sm:$0xf] }
 0x980   :  { %v2732_v36 = vmul.f32 %v7060_v29, %v2731_v30  ;;  %v5969_v30 = vor.u32 %v6870_v63, %v5966_v18  ;;  %v5990_v9 = vld [vmem:[%s9538_s16 + $0x168] sm:$0xf0]  ;;  %v6926_v63 = vld [vmem:[%s9539_s18 + $0x1d4] sm:$0xf] }
 0x981   :  { %v6231_v18 = vld [vmem:[%s9539_s18 + $0x1f0] sm:$0xf0] }
 0x982   :  { %v2733_v37 = vmul.f32 0.5, %v2732_v36  ;;  %v6060_v36 = vld [vmem:[%s9538_s16 + $0x1d0] sm:$0xf] }
 0x984   :  { %v2734_v22 = vsub.f32 1.5, %v2733_v37  ;;  %v6898_v37 = vld [vmem:[%s9538_s16 + $0x1ec] sm:$0xf0] }
 0x986   :  { %v2735_v21 = vmul.f32 %v7060_v29, %v2734_v22  ;;  %v6068_v22 = vld [vmem:[%s9538_s16 + $0x1d8] sm:$0xf] }
 0x988   :  { %v2739_v13 = vsel %vm2738_vm7, %v7060_v29, %v2735_v21  ;;  %v6054_v29 = vld [vmem:[%s9538_s16 + $0x1e8] sm:$0xf0]  ;;  %v6899_v21 = vld [vmem:[%s9538_s16 + $0x1f4] sm:$0xf0] }
 0x989   :  { %v2740_v26 = vmul.f32 %v2739_v13, %v8501_v4  ;;  %v6052_v4 = vld [vmem:[%s9538_s16 + $0x1c8] sm:$0xf]  ;;  %v6215_v13 = vld [vmem:[%s9539_s18 + $0x1e0] sm:$0xf0]  ;;  %v6069_v58 = vor.u32 %v6899_v21, %v6068_v22 }
 0x98a   :  { %v6053_v44 = vor.u32 %v6897_v1, %v6052_v4  ;;  %v6890_v4 = vld [vmem:[%s9538_s16 + $0x1ac] sm:$0xf0]  ;;  %v6891_v1 = vld [vmem:[%s9538_s16 + $0x1b4] sm:$0xf0]  ;;  %v6189_v22 = vld [vmem:[%s9539_s18 + $0x188] sm:$0xf] }
 0x98b   :  { %v2746_v55 = vmul.f32 %v7010_v25, %v2740_v26  ;;  %v6924_v25 = vld [vmem:[%s9539_s18 + $0x1c4] sm:$0xf]  ;;  %v6061_v26 = vor.u32 %v6898_v37, %v6060_v36  ;;  %v6181_v36 = vld [vmem:[%s9539_s18 + $0x180] sm:$0xf]  ;;  %v6921_v21 = vld [vmem:[%s9539_s18 + $0x1a4] sm:$0xf0] }
 0x98c   :  { %v6218_v60 = vor.u32 %v6924_v25, %v6215_v13  ;;  %v6920_v37 = vld [vmem:[%s9539_s18 + $0x19c] sm:$0xf0]  ;;  %v6918_v25 = vld [vmem:[%s9539_s18 + $0x194] sm:$0xf] }
 0x98d   :  { %v2752_v48 = vadd.f32 %v7011_v31, %v2746_v55  ;;  %v6057_v31 = vor.u32 %v6893_v27, %v6054_v29  ;;  %v6885_v55 = vld [vmem:[%s9538_s16 + $0x18c] sm:$0xf]  ;;  %v6887_v27 = vld [vmem:[%s9538_s16 + $0x19c] sm:$0xf]  ;;  %v6199_v13 = vld [vmem:[%s9539_s18 + $0x1b0] sm:$0xf0] }
 0x98e   :  { %v6038_v29 = vld [vmem:[%s9538_s16 + $0x1b8] sm:$0xf0] }
 0x98f   :  { %v8730_v49 = vpack.c.bf16 %v2752_v48, %v2752_v48  ;;  %v6036_v48 = vld [vmem:[%s9538_s16 + $0x198] sm:$0xf] }
 0x991   :  { %5905 = vmatmul.msk.bf16.vlgmr.msrb.gmra.mxu3 %vm314_vm5, %v8730_v49  ;;  %5906 = vmatmul.msk.bf16.vlgmr.msra.gmra.mxu0 %vm314_vm5, %v8730_v49 }
 0x992   :  { %5907 = vmatmul.msk.bf16.vlgmr.msra.gmra.mxu2 %vm314_vm5, %v8730_v49  ;;  %5910 = vmatmul.msk.bf16.vlgmr.msrb.gmra.mxu1 %vm314_vm5, %v8730_v49 }
 0x993   :  { %3078 = vmatpush.bf16.msrb.mxu3 %v5904_v10  ;;  %3307 = vmatpush.bf16.msra.mxu0 %v6045_v6  ;;  %v6025_v10 = vor.u32 %v6885_v55, %v6022_v57  ;;  %v6029_v6 = vor.u32 %v6890_v4, %v6028_v40  ;;  %v6006_v55 = vld [vmem:[%s9538_s16 + $0x178] sm:$0xf0]  ;;  %v6190_v57 = vor.u32 %v6921_v21, %v6189_v22  ;;  %v6912_v40 = vld [vmem:[%s9539_s18 + $0x15c] sm:$0xf0]  ;;  %v6157_v4 = vld [vmem:[%s9539_s18 + $0x148] sm:$0xf] }
 0x994   :  { %3335 = vmatpush.bf16.msra.mxu2 %v6053_v44  ;;  %3377 = vmatpush.bf16.msrb.mxu1 %v6065_v46  ;;  %v6037_v44 = vor.u32 %v6891_v1, %v6036_v48  ;;  %v6186_v46 = vor.u32 %v6916_v2, %v6183_v5  ;;  %v6913_v48 = vld [vmem:[%s9539_s18 + $0x164] sm:$0xf0]  ;;  %v6910_v1 = vld [vmem:[%s9539_s18 + $0x154] sm:$0xf]  ;;  %v6133_v22 = vld [vmem:[%s9539_s18 + $0x110] sm:$0xf] }
 0x995   :  { %v6167_v2 = vld [vmem:[%s9539_s18 + $0x170] sm:$0xf0]  ;;  %v6906_v21 = vld [vmem:[%s9539_s18 + $0x12c] sm:$0xf0] }
 0x997   :  { %3079 = vmatpush.bf16.msrb.mxu3 %v5872_v28  ;;  %3308 = vmatpush.bf16.msra.mxu0 %v6013_v32  ;;  %v5993_v28 = vor.u32 %v6877_v8, %v5990_v9  ;;  %v5997_v32 = vor.u32 %v6882_v12, %v5996_v11  ;;  %v5974_v8 = vld [vmem:[%s9538_s16 + $0x138] sm:$0xf0]  ;;  %v6158_v9 = vor.u32 %v6913_v48, %v6157_v4  ;;  %v6904_v11 = vld [vmem:[%s9539_s18 + $0x11c] sm:$0xf0]  ;;  %v6125_v12 = vld [vmem:[%s9539_s18 + $0x108] sm:$0xf] }
 0x998   :  { %3336 = vmatpush.bf16.msra.mxu2 %v6021_v35  ;;  %3378 = vmatpush.bf16.msrb.mxu1 %v6033_v38  ;;  %v6005_v35 = vor.u32 %v6883_v17, %v6004_v16  ;;  %v6154_v38 = vor.u32 %v6908_v41, %v6151_v45  ;;  %v6905_v16 = vld [vmem:[%s9539_s18 + $0x124] sm:$0xf0]  ;;  %v6902_v17 = vld [vmem:[%s9539_s18 + $0x114] sm:$0xf]  ;;  %v6911_v48 = vld [vmem:[%s9539_s18 + $0x15c] sm:$0xf] }
 0x999   :  { %v6135_v41 = vld [vmem:[%s9539_s18 + $0x130] sm:$0xf0] }
 0x99b   :  { %3080 = vmatpush.bf16.msrb.mxu3 %v5840_v7  ;;  %3309 = vmatpush.bf16.msra.mxu0 %v5981_v50  ;;  %v5961_v7 = vor.u32 %v6869_v33, %v5958_v34  ;;  %v5965_v50 = vor.u32 %v6874_v43, %v5964_v53  ;;  %v6126_v33 = vor.u32 %v6905_v16, %v6125_v12  ;;  %v6930_v53 = vld [vmem:[%s9539_s18 + $0x1ec] sm:$0xf0]  ;;  %v6237_v43 = vld [vmem:[%s9539_s18 + $0x1d8] sm:$0xf] }
 0x99c   :  { %3337 = vmatpush.bf16.msra.mxu2 %v5989_v62  ;;  %3379 = vmatpush.bf16.msrb.mxu1 %v6001_v42  ;;  %v5973_v62 = vor.u32 %v6875_v54, %v5972_v47  ;;  %v6122_v42 = vor.u32 %v6900_v39, %v6119_v59  ;;  %v6138_v34 = vor.u32 %v6902_v17, %v6135_v41  ;;  %v6931_v47 = vld [vmem:[%s9539_s18 + $0x1f4] sm:$0xf0]  ;;  %v6917_v59 = vld [vmem:[%s9539_s18 + $0x18c] sm:$0xf] }
 0x99f   :  { %3081 = vmatpush.bf16.msrb.mxu3 %v5808_v0  ;;  %3310 = vmatpush.bf16.msra.mxu0 %v5949_v19  ;;  %v6073_v0 = vor.u32 %v6895_v52, %v6070_v3  ;;  %v6214_v19 = vor.u32 %v6928_v24, %v6213_v51  ;;  %v6197_v52 = vld [vmem:[%s9539_s18 + $0x190] sm:$0xf] }
 0x9a0   :  { %3338 = vmatpush.bf16.msra.mxu2 %v5957_v15  ;;  %3380 = vmatpush.bf16.msrb.mxu1 %v5969_v30  ;;  %v6222_v15 = vor.u32 %v6929_v23, %v6221_v14  ;;  %v6234_v30 = vor.u32 %v6926_v63, %v6231_v18  ;;  %v6922_v3 = vld [vmem:[%s9539_s18 + $0x1ac] sm:$0xf0]  ;;  %v6909_v14 = vld [vmem:[%s9539_s18 + $0x14c] sm:$0xf] }
 0x9a1   :  { %5908 = vmatmul.msk.bf16.vlgmr.msra.gmra.mxu3 %vm314_vm5, %v8730_v49  ;;  %5909 = vmatmul.msk.bf16.vlgmr.msrb.gmra.mxu0 %vm314_vm5, %v8730_v49  ;;  %v6198_v24 = vor.u32 %v6922_v3, %v6197_v52  ;;  %v6159_v63 = vld [vmem:[%s9539_s18 + $0x168] sm:$0xf0]  ;;  %v6165_v18 = vld [vmem:[%s9539_s18 + $0x150] sm:$0xf] }
 0x9a2   :  { %5911 = vmatmul.msk.bf16.vlgmr.msrb.gmra.mxu2 %vm314_vm5, %v8730_v49  ;;  %6075 = vmatmul.msk.bf16.vlgmr.msra.gmra.mxu1 %vm314_vm5, %v7799_v20 }
 0x9a3   :  { %3349 = vmatpush.bf16.msra.mxu3 %v6057_v31  ;;  %3363 = vmatpush.bf16.msrb.mxu0 %v6061_v26  ;;  %v6182_v31 = vor.u32 %v6920_v37, %v6181_v36  ;;  %v6879_v26 = vld [vmem:[%s9538_s16 + $0x15c] sm:$0xf]  ;;  %v6127_v37 = vld [vmem:[%s9539_s18 + $0x128] sm:$0xf0] }
 0x9a4   :  { %3391 = vmatpush.bf16.msrb.mxu2 %v6069_v58  ;;  %3645 = vmatpush.bf16.msra.mxu1 %v6218_v60  ;;  %v6202_v58 = vor.u32 %v6918_v25, %v6199_v13  ;;  %v6149_v60 = vld [vmem:[%s9539_s18 + $0x140] sm:$0xf]  ;;  %v6009_v5 = vor.u32 %v6879_v26, %v6006_v55  ;;  %v6141_v25 = vld [vmem:[%s9539_s18 + $0x118] sm:$0xf]  ;;  %v6927_v55 = vld [vmem:[%s9539_s18 + $0x1dc] sm:$0xf] }
 0x9a5   :  { %v6907_v13 = vld [vmem:[%s9539_s18 + $0x134] sm:$0xf0] }
 0x9a6   :  { %v6142_v26 = vor.u32 %v6907_v13, %v6141_v25  ;;  %v6946_v25 = vld [vmem:[%s9542_s20 + $0x270] sm:$0xff] }
 0x9a7   :  { %3350 = vmatpush.bf16.msra.mxu3 %v6025_v10  ;;  %3364 = vmatpush.bf16.msrb.mxu0 %v6029_v6  ;;  %v6150_v10 = vor.u32 %v6912_v40, %v6149_v60  ;;  %v6871_v6 = vld [vmem:[%s9538_s16 + $0x11c] sm:$0xf] }
 0x9a8   :  { %3392 = vmatpush.bf16.msrb.mxu2 %v6037_v44  ;;  %3646 = vmatpush.bf16.msra.mxu1 %v6186_v46  ;;  %v6170_v44 = vor.u32 %v6910_v1, %v6167_v2  ;;  %v6117_v46 = vld [vmem:[%s9539_s18 + $0x100] sm:$0xf]  ;;  %v5977_v45 = vor.u32 %v6871_v6, %v5974_v8  ;;  %v6919_v60 = vld [vmem:[%s9539_s18 + $0x19c] sm:$0xf] }
 0x9a9   :  { %v6207_v40 = vld [vmem:[%s9539_s18 + $0x1b8] sm:$0xf0] }
 0x9aa   :  { %v6210_v4 = vor.u32 %v6919_v60, %v6207_v40  ;;  %v6175_v1 = vld [vmem:[%s9539_s18 + $0x178] sm:$0xf0] }
 0x9ab   :  { %3351 = vmatpush.bf16.msra.mxu3 %v5993_v28  ;;  %3365 = vmatpush.bf16.msrb.mxu0 %v5997_v32  ;;  %v6118_v28 = vor.u32 %v6904_v11, %v6117_v46  ;;  %v6925_v32 = vld [vmem:[%s9539_s18 + $0x1cc] sm:$0xf]  ;;  %v6178_v2 = vor.u32 %v6911_v48, %v6175_v1 }
 0x9ac   :  { %3393 = vmatpush.bf16.msrb.mxu2 %v6005_v35  ;;  %3647 = vmatpush.bf16.msra.mxu1 %v6154_v38  ;;  %v6223_v35 = vld [vmem:[%s9539_s18 + $0x1e8] sm:$0xf0]  ;;  %v6229_v38 = vld [vmem:[%s9539_s18 + $0x1d0] sm:$0xf] }
 0x9ad   :  { %v6226_v54 = vor.u32 %v6925_v32, %v6223_v35  ;;  %v6230_v39 = vor.u32 %v6930_v53, %v6229_v38  ;;  %v9190_v48 = vld [vmem:[%s9543_s19 + $0x8] sm:$0xff] }
 0x9af   :  { %3352 = vmatpush.bf16.msra.mxu3 %v5961_v7  ;;  %3366 = vmatpush.bf16.msrb.mxu0 %v5965_v50  ;;  %v6238_v7 = vor.u32 %v6931_v47, %v6237_v43  ;;  %v6191_v50 = vld [vmem:[%s9539_s18 + $0x1a8] sm:$0xf0] }
 0x9b0   :  { %3394 = vmatpush.bf16.msrb.mxu2 %v5973_v62  ;;  %3648 = vmatpush.bf16.msra.mxu1 %v6122_v42  ;;  %v6205_v62 = vld [vmem:[%s9539_s18 + $0x198] sm:$0xf]  ;;  %v6194_v51 = vor.u32 %v6917_v59, %v6191_v50 }
 0x9b1   :  { %5912 = vmatmul.msk.bf16.vlgmr.msrb.gmra.mxu3 %vm314_vm5, %v8730_v49  ;;  %6074 = vmatmul.msk.bf16.vlgmr.msra.gmra.mxu0 %vm314_vm5, %v7799_v20  ;;  %v6041_v49 = vor.u32 %v6887_v27, %v6038_v29  ;;  %v6923_v42 = vld [vmem:[%s9539_s18 + $0x1b4] sm:$0xf0]  ;;  %v6162_v29 = vor.u32 %v6909_v14, %v6159_v63 }
 0x9b2   :  { %6076 = vmatmul.msk.bf16.vlgmr.msra.gmra.mxu2 %vm314_vm5, %v7799_v20  ;;  %6079 = vmatmul.msk.bf16.vlgmr.msrb.gmra.mxu1 %vm314_vm5, %v7799_v20  ;;  %v6206_v23 = vor.u32 %v6923_v42, %v6205_v62  ;;  %v6915_v27 = vld [vmem:[%s9539_s18 + $0x174] sm:$0xf0] }
 0x9b3   :  { %3405 = vmatpush.bf16.msrb.mxu3 %v6073_v0  ;;  %3631 = vmatpush.bf16.msra.mxu0 %v6214_v19  ;;  %v6914_v0 = vld [vmem:[%s9539_s18 + $0x16c] sm:$0xf0]  ;;  %v6173_v19 = vld [vmem:[%s9539_s18 + $0x158] sm:$0xf] }
 0x9b4   :  { %3659 = vmatpush.bf16.msra.mxu2 %v6222_v15  ;;  %3701 = vmatpush.bf16.msrb.mxu1 %v6234_v30  ;;  %v6166_v15 = vor.u32 %v6914_v0, %v6165_v18  ;;  %v6901_v30 = vld [vmem:[%s9539_s18 + $0x10c] sm:$0xf]  ;;  %v6174_v36 = vor.u32 %v6915_v27, %v6173_v19 }
 0x9b7   :  { %3406 = vmatpush.bf16.msrb.mxu3 %v6041_v49  ;;  %3632 = vmatpush.bf16.msra.mxu0 %v6182_v31  ;;  %v6130_v49 = vor.u32 %v6901_v30, %v6127_v37  ;;  %v6134_v31 = vor.u32 %v6906_v21, %v6133_v22 }
 0x9b8   :  { %3660 = vmatpush.bf16.msra.mxu2 %v6190_v57  ;;  %3702 = vmatpush.bf16.msrb.mxu1 %v6202_v58  ;;  %v6239_v57 = vld [vmem:[%s9539_s18 + $0x1f8] sm:$0xf0] }
 0x9b9   :  { %v6242_v58 = vor.u32 %v6927_v55, %v6239_v57 }
 0x9bb   :  { %3407 = vmatpush.bf16.msrb.mxu3 %v6009_v5  ;;  %3633 = vmatpush.bf16.msra.mxu0 %v6150_v10  ;;  %v6903_v5 = vld [vmem:[%s9539_s18 + $0x11c] sm:$0xf] }
 0x9bc   :  { %3661 = vmatpush.bf16.msra.mxu2 %v6158_v9  ;;  %3703 = vmatpush.bf16.msrb.mxu1 %v6170_v44  ;;  %v6143_v10 = vld [vmem:[%s9539_s18 + $0x138] sm:$0xf0] }
 0x9bd   :  { %v6146_v6 = vor.u32 %v6903_v5, %v6143_v10  ;;  %v3452_v10 = vperm.slane %v9190_v48, 1 }
 0x9bf   :  { %3408 = vmatpush.bf16.msrb.mxu3 %v5977_v45  ;;  %3634 = vmatpush.bf16.msra.mxu0 %v6118_v28  ;;  %v9149_v28 = vld [vmem:[%s9540_s17 + $0x8] sm:$0xff] }
 0x9c0   :  { %3662 = vmatpush.bf16.msra.mxu2 %v6126_v33  ;;  %3704 = vmatpush.bf16.msrb.mxu1 %v6138_v34  ;;  %v9159_v34 = vld [vmem:[%s9541_s15 + $0x8] sm:$0xff]  ;;  %v3129_v59 = vperm.slane %v9149_v28, 5  ;;  %v3126_v30 = vperm.slane %v9149_v28, 2  ;;  %v3128_v37 = vperm.slane %v9149_v28, 4  ;;  %v3127_v1 = vperm.slane %v9149_v28, 3 }
 0x9c1   :  { %6077 = vmatmul.msk.bf16.vlgmr.msra.gmra.mxu3 %vm314_vm5, %v7799_v20  ;;  %6078 = vmatmul.msk.bf16.vlgmr.msrb.gmra.mxu0 %vm314_vm5, %v7799_v20  ;;  %v2805_v47 = vperm.slane %v9159_v34, 1  ;;  %v2804_v19 = vperm.slane %v9159_v34, 0  ;;  %v2806_v55 = vperm.slane %v9159_v34, 2 }
 0x9c2   :  { %6080 = vmatmul.msk.bf16.vlgmr.msrb.gmra.mxu2 %vm314_vm5, %v7799_v20  ;;  %6244 = vmatmul.msk.bf16.vlgmr.msra.gmra.mxu1 %vm314_vm5, %v7799_v20 }
 0x9c3   :  { %3673 = vmatpush.bf16.msra.mxu3 %v6226_v54  ;;  %3687 = vmatpush.bf16.msrb.mxu0 %v6230_v39 }
 0x9c4   :  { %3715 = vmatpush.bf16.msrb.mxu2 %v6238_v7 }
 0x9c7   :  { %3674 = vmatpush.bf16.msra.mxu3 %v6194_v51  ;;  %3688 = vmatpush.bf16.msrb.mxu0 %v6198_v24  ;;  %v3124_v51 = vperm.slane %v9149_v28, 0 }
 0x9c8   :  { %3716 = vmatpush.bf16.msrb.mxu2 %v6206_v23 }
 0x9cb   :  { %3675 = vmatpush.bf16.msra.mxu3 %v6162_v29  ;;  %3689 = vmatpush.bf16.msrb.mxu0 %v6166_v15  ;;  %v6947_v29 = vld [vmem:[%s9542_s20 + $0x278] sm:$0xff] }
 0x9cc   :  { %3717 = vmatpush.bf16.msrb.mxu2 %v6174_v36 }
 0x9cf   :  { %3676 = vmatpush.bf16.msra.mxu3 %v6130_v49  ;;  %3690 = vmatpush.bf16.msrb.mxu0 %v6134_v31 }
 0x9d0   :  { %3718 = vmatpush.bf16.msrb.mxu2 %v6142_v26 }
 0x9d1   :  { %6081 = vmatmul.msk.bf16.vlgmr.msrb.gmra.mxu3 %vm314_vm5, %v7799_v20  ;;  %6243 = vmatmul.msk.bf16.vlgmr.msra.gmra.mxu0 %vm314_vm5, %v7799_v20 }
 0x9d2   :  { %6245 = vmatmul.msk.bf16.vlgmr.msra.gmra.mxu2 %vm314_vm5, %v7799_v20  ;;  %6248 = vmatmul.msk.bf16.vlgmr.msrb.gmra.mxu1 %vm314_vm5, %v7799_v20 }
 0x9d3   :  { %3729 = vmatpush.bf16.msrb.mxu3 %v6242_v58 }
 0x9d7   :  { %3730 = vmatpush.bf16.msrb.mxu3 %v6210_v4  ;;  %v6945_v4 = vld [vmem:[%s9542_s20 + $0x268] sm:$0xff] }
 0x9db   :  { %3731 = vmatpush.bf16.msrb.mxu3 %v6178_v2  ;;  %v3130_v2 = vperm.slane %v9149_v28, 6 }
 0x9df   :  { %3732 = vmatpush.bf16.msrb.mxu3 %v6146_v6 }
 0x9e1   :  { %6246 = vmatmul.msk.bf16.vlgmr.msra.gmra.mxu3 %vm314_vm5, %v7799_v20  ;;  %6247 = vmatmul.msk.bf16.vlgmr.msrb.gmra.mxu0 %vm314_vm5, %v7799_v20 }
 0x9e2   :  { %6249 = vmatmul.msk.bf16.vlgmr.msrb.gmra.mxu2 %vm314_vm5, %v7799_v20 }
 0x9f1   :  { %6250 = vmatmul.msk.bf16.vlgmr.msrb.gmra.mxu3 %vm314_vm5, %v7799_v20  ;;  %v3125_v20 = vperm.slane %v9149_v28, 1 }
 0xa0e   :  { %v3005_v8 = vpop.f32.mrf.mxu0 }
 0xa0f   :  { %v9140_v9 = vpop.f32.mrf.mxu1  ;;  %v3006_v7 = vadd.f32 %v3005_v8, %v2805_v47  ;;  %v6944_v8 = vld [vmem:[%s9542_s20 + $0x260] sm:$0xff] }
 0xa11   :  { %v3804_v42 = vpack.c.bf16 %v3006_v7, %v3006_v7 }
 0xa14   :  { %v2992_v44 = vpop.f32.mrf.mxu3 }
 0xa15   :  { %v9142_v46 = vpop.f32.mrf.mxu2  ;;  %v2993_v22 = vadd.f32 %v2992_v44, %v2804_v19 }
 0xa16   :  { %v3007_v11 = vpop.f32.mrf.mxu0  ;;  %v3019_v5 = vadd.f32 %v9142_v46, %v2806_v55 }
 0xa17   :  { %v3059_v12 = vpop.f32.mrf.mxu1  ;;  %v3739_v60 = vpack.c.bf16 %v2993_v22, %v2993_v22  ;;  %v3453_v22 = vperm.slane %v9190_v48, 2 }
 0xa1c   :  { %v2994_v16 = vpop.f32.mrf.mxu3 }
 0xa1d   :  { %v3020_v17 = vpop.f32.mrf.mxu2 }
 0xa1e   :  { %v9144_v41 = vpop.f32.mrf.mxu0  ;;  %v3991_v17 = vpack.c.bf16 %v3019_v5, %v3019_v5 }
 0xa1f   :  { %v3326_v45 = vpop.f32.mrf.mxu1 }
 0xa20   :  { %v3327_v53 = vadd.f32 %v3326_v45, %v3125_v20 }
 0xa24   :  { %v9152_v32 = vpop.f32.mrf.mxu3 }
 0xa25   :  { %v9154_v33 = vpop.f32.mrf.mxu2 }
 0xa26   :  { %v3046_v35 = vpop.f32.mrf.mxu0 }
 0xa27   :  { %v3328_v38 = vpop.f32.mrf.mxu1 }
 0xa28   :  { %v3329_v43 = vadd.f32 %v3328_v38, %v3125_v20  ;;  %v6943_v38 = vld [vmem:[%s9542_s20 + $0x258] sm:$0xff] }
 0xa2a   :  { %v3805_v54 = vpack.c.bf16 %v3329_v43, %v3327_v53 }
 0xa2c   :  { %3813 = vmatpush.bf16.xpose.msra.mxu2 %v3805_v54  ;;  %v3033_v39 = vpop.f32.mrf.mxu3 }
 0xa2d   :  { %v3072_v50 = vpop.f32.mrf.mxu2  ;;  %v6942_v39 = vld [vmem:[%s9542_s20 + $0x250] sm:$0xff] }
 0xa2e   :  { %v3312_v52 = vpop.f32.mrf.mxu0 }
 0xa2f   :  { %v3382_v3 = vpop.f32.mrf.mxu1  ;;  %v3313_v63 = vadd.f32 %v3312_v52, %v3124_v51 }
 0xa30   :  { %v9163_v62 = vadd.f32 %v3382_v3, %v3129_v59 }
 0xa33   :  { %3814 = vmatmul.bf16.vlgmr.msra.gmra.mxu2 %v3804_v42 }
 0xa34   :  { %v9166_v24 = vpop.f32.mrf.mxu3 }
 0xa35   :  { %v3340_v14 = vpop.f32.mrf.mxu2 }
 0xa36   :  { %v3314_v23 = vpop.f32.mrf.mxu0  ;;  %v3341_v49 = vadd.f32 %v3340_v14, %v3126_v30  ;;  %v3131_v14 = vperm.slane %v9149_v28, 7 }
 0xa37   :  { %v3315_v18 = vadd.f32 %v3314_v23, %v3124_v51  ;;  %v3384_v0 = vpop.f32.mrf.mxu1  ;;  %v6941_v51 = vld [vmem:[%s9542_s20 + $0x248] sm:$0xff]  ;;  %v3451_v23 = vperm.slane %v9190_v48, 0 }
 0xa38   :  { %v9169_v27 = vadd.f32 %v3384_v0, %v3129_v59 }
 0xa39   :  { %v3740_v15 = vpack.c.bf16 %v3315_v18, %v3313_v63  ;;  %v6940_v18 = vld [vmem:[%s9542_s20 + $0x240] sm:$0xff] }
 0xa3a   :  { %v4373_v36 = vpack.c.bf16 %v9169_v27, %v9163_v62  ;;  %v6955_v62 = vld [vmem:[%s9542_s20 + $0x2b8] sm:$0xff]  ;;  %v2810_v27 = vperm.slane %v9159_v34, 6 }
 0xa3b   :  { %3748 = vmatpush.bf16.xpose.msra.mxu0 %v3740_v15 }
 0xa3c   :  { %v3085_v21 = vpop.f32.mrf.mxu3 }
 0xa3d   :  { %v3342_v13 = vpop.f32.mrf.mxu2  ;;  %v3455_v21 = vperm.slane %v9190_v48, 4 }
 0xa3e   :  { %v3343_v31 = vadd.f32 %v3342_v13, %v3126_v30  ;;  %v3368_v26 = vpop.f32.mrf.mxu0 }
 0xa3f   :  { %v9182_v57 = vadd.f32 %v3368_v26, %v3128_v37  ;;  %v3650_v58 = vpop.f32.mrf.mxu1 }
 0xa40   :  { %v3992_v40 = vpack.c.bf16 %v3343_v31, %v3341_v49  ;;  %v3651_v35 = vadd.f32 %v3650_v58, %v3452_v10 }
 0xa42   :  { %4000 = vmatpush.bf16.xpose.msrb.mxu2 %v3992_v40  ;;  %3749 = vmatmul.bf16.vlgmr.msra.gmra.mxu0 %v3739_v60 }
 0xa43   :  { %3917 = vmatpush.bf16.msrb.mxu0 %v6947_v29 }
 0xa44   :  { %v3354_v6 = vpop.f32.mrf.mxu3 }
 0xa45   :  { %v9199_v44 = vadd.f32 %v3354_v6, %v3127_v1  ;;  %v3396_v11 = vpop.f32.mrf.mxu2 }
 0xa46   :  { %v9201_v12 = vadd.f32 %v3396_v11, %v3130_v2  ;;  %v3370_v16 = vpop.f32.mrf.mxu0  ;;  %v3454_v11 = vperm.slane %v9190_v48, 3 }
 0xa47   :  { %3918 = vmatpush.bf16.msrb.mxu0 %v6946_v25  ;;  %v9203_v45 = vadd.f32 %v3370_v16, %v3128_v37  ;;  %v3652_v20 = vpop.f32.mrf.mxu1 }
 0xa48   :  { %v3653_v46 = vadd.f32 %v3652_v20, %v3452_v10 }
 0xa49   :  { %v4246_v53 = vpack.c.bf16 %v9203_v45, %v9182_v57  ;;  %4001 = vmatmul.bf16.vlgmr.msrb.gmra.mxu2 %v3991_v17  ;;  %v2809_v57 = vperm.slane %v9159_v34, 5 }
 0xa4a   :  { %v3831_v43 = vpack.c.bf16 %v3653_v46, %v3651_v35  ;;  %4104 = vmatpush.bf16.msra.mxu2 %v6955_v62 }
 0xa4b   :  { %3919 = vmatpush.bf16.msrb.mxu0 %v6945_v4 }
 0xa4c   :  { %v3836_v47 = vand.u32 %v3831_v43, %v8209_v56  ;;  %v3356_v54 = vpop.f32.mrf.mxu3 }
 0xa4d   :  { %v9214_v59 = vadd.f32 %v3356_v54, %v3127_v1  ;;  %v3398_v7 = vpop.f32.mrf.mxu2  ;;  %v3457_v1 = vperm.slane %v9190_v48, 6 }
 0xa4e   :  { %v9216_v50 = vadd.f32 %v3398_v7, %v3130_v2  ;;  %3845 = vmatpush.bf16.msra.mxu3 %v3836_v47  ;;  %v3636_v52 = vpop.f32.mrf.mxu0 }
 0xa4f   :  { %3920 = vmatpush.bf16.msrb.mxu0 %v6944_v8  ;;  %v4119_v3 = vpack.c.bf16 %v9214_v59, %v9199_v44  ;;  %v3637_v15 = vadd.f32 %v3636_v52, %v3451_v23  ;;  %v2808_v44 = vperm.slane %v9159_v34, 4 }
 0xa50   :  { %v4500_v42 = vpack.c.bf16 %v9216_v50, %v9201_v12  ;;  %v2811_v12 = vperm.slane %v9159_v34, 7 }
 0xa51   :  { %v3045_v59 = vadd.f32 %v9144_v41, %v2808_v44  ;;  %v6954_v41 = vld [vmem:[%s9542_s20 + $0x2b0] sm:$0xff] }
 0xa52   :  { %4105 = vmatpush.bf16.msra.mxu2 %v6954_v41 }
 0xa53   :  { %3921 = vmatpush.bf16.msrb.mxu0 %v6943_v38 }
 0xa54   :  { %v3410_v63 = vpop.f32.mrf.mxu3 }
 0xa55   :  { %v9230_v0 = vadd.f32 %v3410_v63, %v3131_v14  ;;  %v3664_v19 = vpop.f32.mrf.mxu2 }
 0xa56   :  { %v3638_v29 = vpop.f32.mrf.mxu0  ;;  %v3665_v31 = vadd.f32 %v3664_v19, %v3453_v22 }
 0xa57   :  { %3922 = vmatpush.bf16.msrb.mxu0 %v6942_v39  ;;  %v3639_v30 = vadd.f32 %v3638_v29, %v3451_v23  ;;  %v3458_v39 = vperm.slane %v9190_v48, 7 }
 0xa59   :  { %v3766_v37 = vpack.c.bf16 %v3639_v30, %v3637_v15 }
 0xa5b   :  { %3923 = vmatpush.bf16.msrb.mxu0 %v6941_v51  ;;  %v3771_v28 = vand.u32 %v3766_v37, %v8209_v56 }
 0xa5c   :  { %v3412_v25 = vpop.f32.mrf.mxu3 }
 0xa5d   :  { %v9235_v13 = vadd.f32 %v3412_v25, %v3131_v14  ;;  %v3666_v49 = vpop.f32.mrf.mxu2  ;;  %3780 = vmatpush.bf16.msra.mxu1 %v3771_v28 }
 0xa5e   :  { %v3667_v26 = vadd.f32 %v3666_v49, %v3453_v22  ;;  %v3692_v55 = vpop.f32.mrf.mxu0 }
 0xa5f   :  { %3924 = vmatpush.bf16.msrb.mxu0 %v6940_v18  ;;  %v4627_v58 = vpack.c.bf16 %v9235_v13, %v9230_v0  ;;  %v9239_v60 = vadd.f32 %v3692_v55, %v3455_v21  ;;  %v6952_v0 = vld [vmem:[%s9542_s20 + $0x2a0] sm:$0xff] }
 0xa60   :  { %v4018_v40 = vpack.c.bf16 %v3667_v26, %v3665_v31  ;;  %v6948_v13 = vld [vmem:[%s9542_s20 + $0x280] sm:$0xff] }
 0xa62   :  { %v4023_v4 = vand.u32 %v4018_v40, %v8209_v56 }
 0xa64   :  { %4032 = vmatpush.bf16.msrb.mxu3 %v4023_v4  ;;  %v3678_v2 = vpop.f32.mrf.mxu3 }
 0xa65   :  { %v3720_v5 = vpop.f32.mrf.mxu2  ;;  %v3679_v20 = vadd.f32 %v3678_v2, %v3454_v11 }
 0xa66   :  { %v9243_v10 = vadd.f32 %v3720_v5, %v3457_v1  ;;  %v3694_v6 = vpop.f32.mrf.mxu0 }
 0xa67   :  { %v9245_v8 = vadd.f32 %v3694_v6, %v3455_v21 }
 0xa69   :  { %v4272_v16 = vpack.c.bf16 %v9245_v8, %v9239_v60 }
 0xa6c   :  { %v3680_v17 = vpop.f32.mrf.mxu3 }
 0xa6d   :  { %v3681_v35 = vadd.f32 %v3680_v17, %v3454_v11  ;;  %v3722_v46 = vpop.f32.mrf.mxu2 }
 0xa6e   :  { %v9250_v38 = vadd.f32 %v3722_v46, %v3457_v1 }
 0xa6f   :  { %v4145_v43 = vpack.c.bf16 %v3681_v35, %v3679_v20 }
 0xa70   :  { %v4526_v47 = vpack.c.bf16 %v9250_v38, %v9243_v10 }
 0xa71   :  { %v4150_v54 = vand.u32 %v4145_v43, %v8209_v56 }
 0xa73   :  { %4159 = vmatpush.bf16.msra.mxu0 %v4150_v54  ;;  %v2807_v54 = vperm.slane %v9159_v34, 3  ;;  %v6950_v34 = vld [vmem:[%s9542_s20 + $0x290] sm:$0xff] }
 0xa74   :  { %v3734_v7 = vpop.f32.mrf.mxu3 }
 0xa75   :  { %v9256_v52 = vadd.f32 %v3734_v7, %v3458_v39 }
 0xa7c   :  { %v3736_v51 = vpop.f32.mrf.mxu3 }
 0xa7d   :  { %v9258_v14 = vadd.f32 %v3736_v51, %v3458_v39  ;;  %v3032_v39 = vadd.f32 %v9152_v32, %v2807_v54  ;;  %v3058_v32 = vadd.f32 %v9140_v9, %v2809_v57  ;;  %v3071_v9 = vadd.f32 %v9154_v33, %v2810_v27  ;;  %v6951_v33 = vld [vmem:[%s9542_s20 + $0x298] sm:$0xff] }
 0xa7f   :  { %v4653_v23 = vpack.c.bf16 %v9258_v14, %v9256_v52  ;;  %v4118_v7 = vpack.c.bf16 %v3032_v39, %v3032_v39  ;;  %v4372_v45 = vpack.c.bf16 %v3058_v32, %v3058_v32  ;;  %v6961_v14 = vld [vmem:[%s9542_s20 + $0x2e8] sm:$0xff] }
 0xa81   :  { %v4658_v38 = vand.u32 %v4653_v23, %v8209_v56  ;;  %v6969_v23 = vld [vmem:[%s9542_s20 + $0x328] sm:$0xff] }
 0xab6   :  { %v3815_v63 = vpop.f32.mrf.mxu2 }
 0xab7   :  { %v3819_v18 = vsel %vm1710_vm3, %v3815_v63, -inf }
 0xab8   :  { %3820 = vmax.xlane.f32.xlu1 %v3819_v18 }
 0xabe   :  { %v3817_v19 = vpop.f32.mrf.mxu2 }
 0xabf   :  { %v9263_v29 = vpop.f32.mrf.mxu0 }
 0xac0   :  { %v3754_v26 = vsel %vm1710_vm3, %v9263_v29, -inf }
 0xac7   :  { %v3752_v15 = vpop.f32.mrf.mxu0 }
 0xacc   :  { %v4002_v30 = vpop.f32.mrf.mxu2 }
 0xacd   :  { %v4006_v37 = vsel %vm1710_vm3, %v4002_v30, -inf }
 0xace   :  { %4007 = vmax.xlane.f32.xlu0 %v4006_v37 }
 0xad4   :  { %v4004_v22 = vpop.f32.mrf.mxu2 }
 0xb2b   :  { %v3821_v28 = vpop.xlane.xlu1 %3820 }
 0xb2c   :  { %v3822_v21 = vsub.f32 %v3815_v63, %v3821_v28  ;;  %v4277_v63 = vand.u32 %v4272_v16, %v8209_v56 }
 0xb2e   :  { %v3823_v25 = vmul.f32 1.442695, %v3822_v21 }
 0xb30   :  { %7061 = vpow2.f32 %v3823_v25 }
 0xb36   :  { %v7062_v49 = vpop.eup %7061 }
 0xb37   :  { %v3825_v31 = vsel %vm1710_vm3, %v7062_v49, 0.0 }
 0xb38   :  { %3826 = vadd.xlane.f32.xlu2 %v3825_v31 }
 0xb40   :  { %3755 = vmax.xlane.f32.xlu2 %v3754_v26 }
 0xb41   :  { %v4008_v55 = vpop.xlane.xlu0 %4007 }
 0xb42   :  { %v4009_v40 = vsub.f32 %v4002_v30, %v4008_v55 }
 0xb44   :  { %v4010_v4 = vmul.f32 1.442695, %v4009_v40 }
 0xb46   :  { %7063 = vpow2.f32 %v4010_v4 }
 0xb4c   :  { %v7064_v1 = vpop.eup %7063 }
 0xb4d   :  { %v4012_v2 = vsel %vm1710_vm3, %v7064_v1, 0.0 }
 0xb4e   :  { %4013 = vadd.xlane.f32.xlu1 %v4012_v2 }
 0xbab   :  { %v3827_v5 = vpop.xlane.xlu2 %3826 }
 0xbac   :  { %7065 = vrcp.f32 %v3827_v5 }
 0xbb2   :  { %v7066_v6 = vpop.eup %7065 }
 0xbb3   :  { %v3829_v11 = vmul.f32 %v7066_v6, %v7062_v49  ;;  %v3756_v8 = vpop.xlane.xlu2 %3755 }
 0xbb4   :  { %v3757_v16 = vsub.f32 %v9263_v29, %v3756_v8  ;;  %v6938_v8 = vld [vmem:[%s9542_s20 + $0x230] sm:$0xff] }
 0xbb5   :  { %v3830_v17 = vpack.c.bf16 %v3829_v11, %v3829_v11 }
 0xbb6   :  { %v3758_v55 = vmul.f32 1.442695, %v3757_v16 }
 0xbb7   :  { %6268 = vmatmul.msk.bf16.vlgmr.msra.gmra.mxu3 %vm1710_vm3, %v3830_v17 }
 0xbb8   :  { %4127 = vmatpush.bf16.xpose.msra.mxu3 %v4119_v3  ;;  %v4245_v3 = vpack.c.bf16 %v3045_v59, %v3045_v59 }
 0xbc1   :  { %v4014_v20 = vpop.xlane.xlu1 %4013 }
 0xbc2   :  { %7067 = vrcp.f32 %v4014_v20 }
 0xbc3   :  { %7069 = vpow2.f32 %v3758_v55 }
 0xbc8   :  { %v7068_v35 = vpop.eup %7067 }
 0xbc9   :  { %v4016_v46 = vmul.f32 %v7068_v35, %v7064_v1  ;;  %v7070_v1 = vpop.eup %7069 }
 0xbca   :  { %v3760_v5 = vsel %vm1710_vm3, %v7070_v1, 0.0 }
 0xbcb   :  { %v4017_v43 = vpack.c.bf16 %v4016_v46, %v4016_v46 }
 0xbcd   :  { %6349 = vmatmul.msk.bf16.vlgmr.msrb.gmra.mxu3 %vm1710_vm3, %v4017_v43 }
 0xbce   :  { %4254 = vmatpush.bf16.xpose.msrb.mxu3 %v4246_v53  ;;  %v3084_v53 = vadd.f32 %v9166_v24, %v2811_v12  ;;  %v6949_v24 = vld [vmem:[%s9542_s20 + $0x288] sm:$0xff] }
 0xbd0   :  { %v4626_v50 = vpack.c.bf16 %v3084_v53, %v3084_v53 }
 0xbdd   :  { %4128 = vmatmul.bf16.vlgmr.msra.gmra.mxu3 %v4118_v7 }
 0xbde   :  { %4381 = vmatpush.bf16.xpose.msra.mxu3 %v4373_v36  ;;  %v4499_v36 = vpack.c.bf16 %v3071_v9, %v3071_v9 }
 0xbed   :  { %4255 = vmatmul.bf16.vlgmr.msrb.gmra.mxu3 %v4245_v3 }
 0xbee   :  { %4508 = vmatpush.bf16.xpose.msrb.mxu3 %v4500_v42  ;;  %v6953_v42 = vld [vmem:[%s9542_s20 + $0x2a8] sm:$0xff] }
 0xbef   :  { %4106 = vmatpush.bf16.msra.mxu2 %v6953_v42 }
 0xbf3   :  { %4107 = vmatpush.bf16.msra.mxu2 %v6952_v0 }
 0xbf7   :  { %4108 = vmatpush.bf16.msra.mxu2 %v6951_v33 }
 0xbfb   :  { %4109 = vmatpush.bf16.msra.mxu2 %v6950_v34 }
 0xbfd   :  { %4382 = vmatmul.bf16.vlgmr.msra.gmra.mxu3 %v4372_v45 }
 0xbfe   :  { %4635 = vmatpush.bf16.xpose.msra.mxu3 %v4627_v58 }
 0xbff   :  { %4110 = vmatpush.bf16.msra.mxu2 %v6949_v24 }
 0xc03   :  { %4111 = vmatpush.bf16.msra.mxu2 %v6948_v13 }
 0xc0d   :  { %4509 = vmatmul.bf16.vlgmr.msrb.gmra.mxu3 %v4499_v36 }
 0xc1d   :  { %4636 = vmatmul.bf16.vlgmr.msra.gmra.mxu3 %v4626_v50 }
 0xc3a   :  { %v3847_v58 = vpop.f32.mrf.mxu3 }
 0xc3b   :  { %v3851_v51 = vpack.c.bf16 %v3847_v58, %v3847_v58 }
 0xc3d   :  { %3925 = vmatmul.bf16.vlgmr.msrb.gmra.mxu0 %v3851_v51 }
 0xc3e   :  { %4286 = vmatpush.bf16.msrb.mxu0 %v4277_v63 }
 0xc42   :  { %v3849_v18 = vpop.f32.mrf.mxu3 }
 0xc50   :  { %v4034_v19 = vpop.f32.mrf.mxu3 }
 0xc51   :  { %v4038_v15 = vpack.c.bf16 %v4034_v19, %v4034_v19 }
 0xc53   :  { %4112 = vmatmul.bf16.vlgmr.msra.gmra.mxu2 %v4038_v15  ;;  %v3706_v15 = vpop.f32.mrf.mxu1 }
 0xc58   :  { %v4036_v30 = vpop.f32.mrf.mxu3 }
 0xc5b   :  { %v3708_v30 = vpop.f32.mrf.mxu1 }
 0xc60   :  { %v4129_v37 = vpop.f32.mrf.mxu3 }
 0xc61   :  { %v4133_v22 = vsel %vm1710_vm3, %v4129_v37, -inf }
 0xc62   :  { %4134 = vmax.xlane.f32.xlu0 %v4133_v22  ;;  %v3456_v22 = vperm.slane %v9190_v48, 5  ;;  %v6937_v48 = vld [vmem:[%s9542_s20 + $0x228] sm:$0xff] }
 0xc68   :  { %v4131_v28 = vpop.f32.mrf.mxu3 }
 0xc69   :  { %v3709_v28 = vadd.f32 %v3708_v30, %v3456_v22  ;;  %v6974_v30 = vld [vmem:[%s9542_s20 + $0x350] sm:$0xff] }
 0xc70   :  { %v4256_v21 = vpop.f32.mrf.mxu3 }
 0xc71   :  { %v4260_v25 = vsel %vm1710_vm3, %v4256_v21, -inf }
 0xc72   :  { %4261 = vmax.xlane.f32.xlu1 %v4260_v25  ;;  %v3707_v25 = vadd.f32 %v3706_v15, %v3456_v22  ;;  %v6987_v15 = vld [vmem:[%s9542_s20 + $0x3b8] sm:$0xff]  ;;  %v6973_v22 = vld [vmem:[%s9542_s20 + $0x348] sm:$0xff] }
 0xc78   :  { %v4258_v49 = vpop.f32.mrf.mxu3 }
 0xc80   :  { %v4383_v31 = vpop.f32.mrf.mxu3 }
 0xc81   :  { %v4387_v60 = vsel %vm1710_vm3, %v4383_v31, -inf }
 0xc82   :  { %4388 = vmax.xlane.f32.xlu0 %v4387_v60 }
 0xc88   :  { %v4385_v26 = vpop.f32.mrf.mxu3 }
 0xc90   :  { %v4510_v40 = vpop.f32.mrf.mxu3 }
 0xc91   :  { %v4514_v4 = vsel %vm1710_vm3, %v4510_v40, -inf }
 0xc92   :  { %4515 = vmax.xlane.f32.xlu2 %v4514_v4  ;;  %v6935_v4 = vld [vmem:[%s9542_s20 + $0x218] sm:$0xff] }
 0xc98   :  { %v4512_v2 = vpop.f32.mrf.mxu3 }
 0xc9a   :  { %3761 = vadd.xlane.f32.xlu2 %v3760_v5  ;;  %v6934_v5 = vld [vmem:[%s9542_s20 + $0x210] sm:$0xff] }
 0xca0   :  { %v4637_v6 = vpop.f32.mrf.mxu3 }
 0xca1   :  { %v4641_v11 = vsel %vm1710_vm3, %v4637_v6, -inf }
 0xca2   :  { %4642 = vmax.xlane.f32.xlu0 %v4641_v11  ;;  %v4531_v11 = vand.u32 %v4526_v47, %v8209_v56  ;;  %v6963_v47 = vld [vmem:[%s9542_s20 + $0x2f8] sm:$0xff] }
 0xca8   :  { %v4639_v17 = vpop.f32.mrf.mxu3 }
 0xca9   :  { %v6933_v17 = vld [vmem:[%s9542_s20 + $0x208] sm:$0xff] }
 0xcba   :  { %v9332_v20 = vpop.f32.mrf.mxu0 }
 0xcc2   :  { %v3928_v29 = vpop.f32.mrf.mxu0 }
 0xcd5   :  { %v4135_v35 = vpop.xlane.xlu0 %4134 }
 0xcd6   :  { %v4136_v46 = vsub.f32 %v4129_v37, %v4135_v35  ;;  %v9334_v43 = vpop.f32.mrf.mxu2  ;;  %v6932_v35 = vld [vmem:[%s9542_s20 + $0x200] sm:$0xff] }
 0xcd8   :  { %v4137_v54 = vmul.f32 1.442695, %v4136_v46 }
 0xcda   :  { %7071 = vpow2.f32 %v4137_v54 }
 0xcde   :  { %v4115_v39 = vpop.f32.mrf.mxu2 }
 0xcdf   :  { %v6971_v39 = vld [vmem:[%s9542_s20 + $0x338] sm:$0xff] }
 0xce0   :  { %v7072_v7 = vpop.eup %7071  ;;  %4358 = vmatpush.bf16.msrb.mxu2 %v6971_v39 }
 0xce1   :  { %v4139_v44 = vsel %vm1710_vm3, %v7072_v7, 0.0 }
 0xce2   :  { %4140 = vadd.xlane.f32.xlu1 %v4139_v44  ;;  %v6960_v44 = vld [vmem:[%s9542_s20 + $0x2e0] sm:$0xff] }
 0xce5   :  { %v4262_v59 = vpop.xlane.xlu1 %4261 }
 0xce6   :  { %v4263_v3 = vsub.f32 %v4256_v21, %v4262_v59  ;;  %v6939_v21 = vld [vmem:[%s9542_s20 + $0x238] sm:$0xff] }
 0xce7   :  { %3978 = vmatpush.bf16.msrb.mxu1 %v6939_v21  ;;  %v6972_v21 = vld [vmem:[%s9542_s20 + $0x340] sm:$0xff] }
 0xce8   :  { %v4264_v57 = vmul.f32 1.442695, %v4263_v3 }
 0xcea   :  { %7073 = vpow2.f32 %v4264_v57 }
 0xceb   :  { %3979 = vmatpush.bf16.msrb.mxu1 %v6938_v8  ;;  %v6995_v8 = vld [vmem:[%s9542_s20 + $0x3f8] sm:$0xff] }
 0xcef   :  { %3980 = vmatpush.bf16.msrb.mxu1 %v6937_v48 }
 0xcf0   :  { %v7074_v32 = vpop.eup %7073 }
 0xcf1   :  { %v4266_v45 = vsel %vm1710_vm3, %v7074_v32, 0.0 }
 0xcf2   :  { %4267 = vadd.xlane.f32.xlu1 %v4266_v45  ;;  %v6958_v45 = vld [vmem:[%s9542_s20 + $0x2d0] sm:$0xff] }
 0xcf5   :  { %v4389_v62 = vpop.xlane.xlu0 %4388 }
 0xcf6   :  { %v4390_v41 = vsub.f32 %v4383_v31, %v4389_v62  ;;  %v4399_v31 = vpack.c.bf16 %v3709_v28, %v3707_v25  ;;  %v6985_v28 = vld [vmem:[%s9542_s20 + $0x3a8] sm:$0xff]  ;;  %v6984_v25 = vld [vmem:[%s9542_s20 + $0x3a0] sm:$0xff] }
 0xcf8   :  { %v4391_v27 = vmul.f32 1.442695, %v4390_v41  ;;  %v4404_v26 = vand.u32 %v4399_v31, %v8209_v56  ;;  %v6970_v56 = vld [vmem:[%s9542_s20 + $0x330] sm:$0xff] }
 0xcf9   :  { %4359 = vmatpush.bf16.msrb.mxu2 %v6970_v56 }
 0xcfa   :  { %7075 = vpow2.f32 %v4391_v27 }
 0xcfd   :  { %4360 = vmatpush.bf16.msrb.mxu2 %v6969_v23 }
 0xd00   :  { %v9338_v9 = vpop.eup %7075 }
 0xd01   :  { %v4393_v36 = vsel %vm1710_vm3, %v9338_v9, 0.0 }
 0xd02   :  { %4394 = vadd.xlane.f32.xlu0 %v4393_v36 }
 0xd05   :  { %v4516_v12 = vpop.xlane.xlu2 %4515 }
 0xd06   :  { %v4517_v53 = vsub.f32 %v4510_v40, %v4516_v12  ;;  %v6936_v40 = vld [vmem:[%s9542_s20 + $0x220] sm:$0xff] }
 0xd07   :  { %3981 = vmatpush.bf16.msrb.mxu1 %v6936_v40  ;;  %v6993_v40 = vld [vmem:[%s9542_s20 + $0x3e8] sm:$0xff] }
 0xd08   :  { %v4518_v50 = vmul.f32 1.442695, %v4517_v53 }
 0xd0a   :  { %7077 = vpow2.f32 %v4518_v50 }
 0xd0b   :  { %3982 = vmatpush.bf16.msrb.mxu1 %v6935_v4  ;;  %v6980_v4 = vld [vmem:[%s9542_s20 + $0x380] sm:$0xff] }
 0xd0d   :  { %v3762_v42 = vpop.xlane.xlu2 %3761 }
 0xd0e   :  { %7079 = vrcp.f32 %v3762_v42  ;;  %v6956_v42 = vld [vmem:[%s9542_s20 + $0x2c0] sm:$0xff] }
 0xd0f   :  { %3983 = vmatpush.bf16.msrb.mxu1 %v6934_v5 }
 0xd10   :  { %v9342_v0 = vpop.eup %7077 }
 0xd11   :  { %v4520_v33 = vsel %vm1710_vm3, %v9342_v0, 0.0 }
 0xd12   :  { %4521 = vadd.xlane.f32.xlu2 %v4520_v33  ;;  %v6967_v33 = vld [vmem:[%s9542_s20 + $0x318] sm:$0xff] }
 0xd13   :  { %3984 = vmatpush.bf16.msrb.mxu1 %v6933_v17 }
 0xd14   :  { %v7080_v34 = vpop.eup %7079 }
 0xd15   :  { %v3764_v24 = vmul.f32 %v7080_v34, %v7070_v1  ;;  %v4643_v13 = vpop.xlane.xlu0 %4642  ;;  %v6979_v34 = vld [vmem:[%s9542_s20 + $0x378] sm:$0xff] }
 0xd16   :  { %v4644_v58 = vsub.f32 %v4637_v6, %v4643_v13  ;;  %v6978_v13 = vld [vmem:[%s9542_s20 + $0x370] sm:$0xff] }
 0xd17   :  { %v3765_v51 = vpack.c.bf16 %v3764_v24, %v3764_v24  ;;  %3985 = vmatpush.bf16.msrb.mxu1 %v6932_v35  ;;  %v6966_v24 = vld [vmem:[%s9542_s20 + $0x310] sm:$0xff]  ;;  %v6988_v35 = vld [vmem:[%s9542_s20 + $0x3c0] sm:$0xff] }
 0xd18   :  { %v4645_v63 = vmul.f32 1.442695, %v4644_v58  ;;  %v6965_v58 = vld [vmem:[%s9542_s20 + $0x308] sm:$0xff] }
 0xd19   :  { %6251 = vmatmul.msk.bf16.vlgmr.msra.gmra.mxu1 %vm1710_vm3, %v3765_v51  ;;  %v6977_v51 = vld [vmem:[%s9542_s20 + $0x368] sm:$0xff] }
 0xd1a   :  { %7081 = vpow2.f32 %v4645_v63  ;;  %v6964_v63 = vld [vmem:[%s9542_s20 + $0x300] sm:$0xff] }
 0xd1b   :  { %4231 = vmatpush.bf16.msra.mxu1 %v6963_v47 }
 0xd20   :  { %v9347_v18 = vpop.eup %7081 }
 0xd21   :  { %v4647_v19 = vsel %vm1710_vm3, %v9347_v18, 0.0 }
 0xd22   :  { %4648 = vadd.xlane.f32.xlu1 %v4647_v19  ;;  %v6975_v19 = vld [vmem:[%s9542_s20 + $0x358] sm:$0xff] }
 0xd55   :  { %v4141_v37 = vpop.xlane.xlu1 %4140 }
 0xd56   :  { %7083 = vrcp.f32 %v4141_v37  ;;  %v6986_v37 = vld [vmem:[%s9542_s20 + $0x3b0] sm:$0xff] }
 0xd5c   :  { %v7084_v49 = vpop.eup %7083 }
 0xd5d   :  { %v4143_v60 = vmul.f32 %v7084_v49, %v7072_v7  ;;  %v6962_v7 = vld [vmem:[%s9542_s20 + $0x2f0] sm:$0xff] }
 0xd5e   :  { %4232 = vmatpush.bf16.msra.mxu1 %v6962_v7 }
 0xd5f   :  { %v4144_v16 = vpack.c.bf16 %v4143_v60, %v4143_v60  ;;  %v6983_v60 = vld [vmem:[%s9542_s20 + $0x398] sm:$0xff] }
 0xd61   :  { %6398 = vmatmul.msk.bf16.vlgmr.msra.gmra.mxu0 %vm1710_vm3, %v4144_v16  ;;  %v6982_v16 = vld [vmem:[%s9542_s20 + $0x390] sm:$0xff] }
 0xd62   :  { %4413 = vmatpush.bf16.msra.mxu0 %v4404_v26  ;;  %4233 = vmatpush.bf16.msra.mxu1 %v6961_v14  ;;  %v6994_v26 = vld [vmem:[%s9542_s20 + $0x3f0] sm:$0xff] }
 0xd65   :  { %v4268_v55 = vpop.xlane.xlu1 %4267 }
 0xd66   :  { %7085 = vrcp.f32 %v4268_v55  ;;  %4234 = vmatpush.bf16.msra.mxu1 %v6960_v44  ;;  %v6981_v55 = vld [vmem:[%s9542_s20 + $0x388] sm:$0xff] }
 0xd6c   :  { %v7086_v1 = vpop.eup %7085 }
 0xd6d   :  { %v4270_v2 = vmul.f32 %v7086_v1, %v7074_v32  ;;  %v6959_v32 = vld [vmem:[%s9542_s20 + $0x2d8] sm:$0xff]  ;;  %v6992_v1 = vld [vmem:[%s9542_s20 + $0x3e0] sm:$0xff] }
 0xd6e   :  { %4235 = vmatpush.bf16.msra.mxu1 %v6959_v32 }
 0xd6f   :  { %v4271_v6 = vpack.c.bf16 %v4270_v2, %v4270_v2 }
 0xd71   :  { %6447 = vmatmul.msk.bf16.vlgmr.msrb.gmra.mxu0 %vm1710_vm3, %v4271_v6  ;;  %v6991_v6 = vld [vmem:[%s9542_s20 + $0x3d8] sm:$0xff] }
 0xd72   :  { %4540 = vmatpush.bf16.msrb.mxu0 %v4531_v11  ;;  %4236 = vmatpush.bf16.msra.mxu1 %v6958_v45  ;;  %v6990_v11 = vld [vmem:[%s9542_s20 + $0x3d0] sm:$0xff] }
 0xd75   :  { %v4395_v29 = vpop.xlane.xlu0 %4394 }
 0xd76   :  { %7087 = vrcp.f32 %v4395_v29  ;;  %v6989_v29 = vld [vmem:[%s9542_s20 + $0x3c8] sm:$0xff] }
 0xd7c   :  { %v7088_v46 = vpop.eup %7087 }
 0xd7d   :  { %v4397_v54 = vmul.f32 %v7088_v46, %v9338_v9  ;;  %v6957_v9 = vld [vmem:[%s9542_s20 + $0x2c8] sm:$0xff] }
 0xd7e   :  { %4237 = vmatpush.bf16.msra.mxu1 %v6957_v9 }
 0xd7f   :  { %v4398_v10 = vpack.c.bf16 %v4397_v54, %v4397_v54 }
 0xd81   :  { %6496 = vmatmul.msk.bf16.vlgmr.msra.gmra.mxu0 %vm1710_vm3, %v4398_v10 }
 0xd82   :  { %4667 = vmatpush.bf16.msra.mxu0 %v4658_v38  ;;  %4238 = vmatpush.bf16.msra.mxu1 %v6956_v42 }
 0xd85   :  { %v4522_v52 = vpop.xlane.xlu2 %4521 }
 0xd86   :  { %7089 = vrcp.f32 %v4522_v52 }
 0xd8c   :  { %v7090_v59 = vpop.eup %7089 }
 0xd8d   :  { %v4524_v3 = vmul.f32 %v7090_v59, %v9342_v0  ;;  %v6968_v0 = vld [vmem:[%s9542_s20 + $0x320] sm:$0xff] }
 0xd8e   :  { %4361 = vmatpush.bf16.msrb.mxu2 %v6968_v0 }
 0xd8f   :  { %v4525_v57 = vpack.c.bf16 %v4524_v3, %v4524_v3 }
 0xd91   :  { %6545 = vmatmul.msk.bf16.vlgmr.msrb.gmra.mxu0 %vm1710_vm3, %v4525_v57 }
 0xd92   :  { %4362 = vmatpush.bf16.msrb.mxu2 %v6967_v33  ;;  %v7012_v33 = vld [vmem:[%s9544_s21 + $0x1] ss:$0 sm:$0xff] }
 0xd95   :  { %v4649_v62 = vpop.xlane.xlu1 %4648 }
 0xd96   :  { %7091 = vrcp.f32 %v4649_v62  ;;  %v3782_v41 = vpop.f32.mrf.mxu1  ;;  %4363 = vmatpush.bf16.msrb.mxu2 %v6966_v24 }
 0xd97   :  { %v3786_v27 = vpack.c.bf16 %v3782_v41, %v3782_v41 }
 0xd99   :  { %3986 = vmatmul.bf16.vlgmr.msrb.gmra.mxu1 %v3786_v27 }
 0xd9a   :  { %4485 = vmatpush.bf16.msrb.mxu1 %v6979_v34  ;;  %4364 = vmatpush.bf16.msrb.mxu2 %v6965_v58 }
 0xd9c   :  { %v7092_v36 = vpop.eup %7091 }
 0xd9d   :  { %v4651_v12 = vmul.f32 %v7092_v36, %v9347_v18  ;;  %v6976_v18 = vld [vmem:[%s9542_s20 + $0x360] sm:$0xff] }
 0xd9e   :  { %v3784_v53 = vpop.f32.mrf.mxu1  ;;  %4486 = vmatpush.bf16.msrb.mxu1 %v6978_v13  ;;  %4365 = vmatpush.bf16.msrb.mxu2 %v6964_v63 }
 0xd9f   :  { %v4652_v50 = vpack.c.bf16 %v4651_v12, %v4651_v12 }
 0xda1   :  { %6594 = vmatmul.msk.bf16.vlgmr.msra.gmra.mxu0 %vm1710_vm3, %v4652_v50 }
 0xda2   :  { %4487 = vmatpush.bf16.msrb.mxu1 %v6977_v51  ;;  %4612 = vmatpush.bf16.msra.mxu2 %v6987_v15 }
 0xda6   :  { %4488 = vmatpush.bf16.msrb.mxu1 %v6976_v18  ;;  %4613 = vmatpush.bf16.msra.mxu2 %v6986_v37 }
 0xdaa   :  { %4489 = vmatpush.bf16.msrb.mxu1 %v6975_v19  ;;  %4614 = vmatpush.bf16.msra.mxu2 %v6985_v28 }
 0xdae   :  { %4490 = vmatpush.bf16.msrb.mxu1 %v6974_v30  ;;  %4615 = vmatpush.bf16.msra.mxu2 %v6984_v25 }
 0xdb2   :  { %4491 = vmatpush.bf16.msrb.mxu1 %v6973_v22  ;;  %4616 = vmatpush.bf16.msra.mxu2 %v6983_v60 }
 0xdb6   :  { %4492 = vmatpush.bf16.msrb.mxu1 %v6972_v21  ;;  %4617 = vmatpush.bf16.msra.mxu2 %v6982_v16 }
 0xdba   :  { %4618 = vmatpush.bf16.msra.mxu2 %v6981_v55 }
 0xdbe   :  { %4619 = vmatpush.bf16.msra.mxu2 %v6980_v4 }
 0xdde   :  { %v4161_v49 = vpop.f32.mrf.mxu0 }
 0xddf   :  { %v4165_v31 = vpack.c.bf16 %v4161_v49, %v4161_v49 }
 0xde1   :  { %4239 = vmatmul.bf16.vlgmr.msra.gmra.mxu1 %v4165_v31 }
 0xde2   :  { %4739 = vmatpush.bf16.msra.mxu1 %v6995_v8 }
 0xde6   :  { %v4163_v48 = vpop.f32.mrf.mxu0  ;;  %4740 = vmatpush.bf16.msra.mxu1 %v6994_v26 }
 0xdea   :  { %4741 = vmatpush.bf16.msra.mxu1 %v6993_v40 }
 0xdee   :  { %v4288_v2 = vpop.f32.mrf.mxu0  ;;  %4742 = vmatpush.bf16.msra.mxu1 %v6992_v1 }
 0xdef   :  { %v4292_v5 = vpack.c.bf16 %v4288_v2, %v4288_v2 }
 0xdf1   :  { %4366 = vmatmul.bf16.vlgmr.msrb.gmra.mxu2 %v4292_v5 }
 0xdf2   :  { %4743 = vmatpush.bf16.msra.mxu1 %v6991_v6 }
 0xdf6   :  { %v4290_v17 = vpop.f32.mrf.mxu0  ;;  %4744 = vmatpush.bf16.msra.mxu1 %v6990_v11 }
 0xdfa   :  { %4745 = vmatpush.bf16.msra.mxu1 %v6989_v29 }
 0xdfe   :  { %v4415_v46 = vpop.f32.mrf.mxu0  ;;  %4746 = vmatpush.bf16.msra.mxu1 %v6988_v35 }
 0xdff   :  { %v4419_v54 = vpack.c.bf16 %v4415_v46, %v4415_v46 }
 0xe01   :  { %4493 = vmatmul.bf16.vlgmr.msrb.gmra.mxu1 %v4419_v54 }
 0xe06   :  { %v4417_v10 = vpop.f32.mrf.mxu0 }
 0xe0e   :  { %v4542_v38 = vpop.f32.mrf.mxu0 }
 0xe0f   :  { %v4546_v47 = vpack.c.bf16 %v4542_v38, %v4542_v38 }
 0xe11   :  { %4620 = vmatmul.bf16.vlgmr.msra.gmra.mxu2 %v4546_v47 }
 0xe16   :  { %v3987_v39 = vpop.f32.mrf.mxu1  ;;  %v4544_v7 = vpop.f32.mrf.mxu0 }
 0xe17   :  { %v3988_v62 = vadd.f32 %v3987_v39, %v9332_v20 }
 0xe19   :  { %v4117_v27 = vadd.f32 %v9334_v43, %v3988_v62 }
 0xe1e   :  { %v3989_v56 = vpop.f32.mrf.mxu1  ;;  %v4669_v52 = vpop.f32.mrf.mxu0 }
 0xe1f   :  { %v4673_v14 = vpack.c.bf16 %v4669_v52, %v4669_v52 }
 0xe21   :  { %4747 = vmatmul.bf16.vlgmr.msra.gmra.mxu1 %v4673_v14 }
 0xe26   :  { %v4671_v23 = vpop.f32.mrf.mxu0 }
 0xe5e   :  { %v4240_v44 = vpop.f32.mrf.mxu1 }
 0xe5f   :  { %v4244_v9 = vadd.f32 %v4240_v44, %v4117_v27 }
 0xe66   :  { %v4242_v59 = vpop.f32.mrf.mxu1 }
 0xe74   :  { %v4367_v3 = vpop.f32.mrf.mxu2 }
 0xe75   :  { %v4371_v36 = vadd.f32 %v4367_v3, %v4244_v9 }
 0xe7c   :  { %v4369_v57 = vpop.f32.mrf.mxu2 }
 0xe7e   :  { %v4494_v32 = vpop.f32.mrf.mxu1 }
 0xe7f   :  { %v4498_v12 = vadd.f32 %v4494_v32, %v4371_v36 }
 0xe86   :  { %v4496_v45 = vpop.f32.mrf.mxu1 }
 0xe94   :  { %v4621_v41 = vpop.f32.mrf.mxu2 }
 0xe95   :  { %v4625_v50 = vadd.f32 %v4621_v41, %v4498_v12 }
 0xe9c   :  { %v4623_v53 = vpop.f32.mrf.mxu2 }
 0xe9e   :  { %v4748_v42 = vpop.f32.mrf.mxu1 }
 0xe9f   :  { %v4752_v0 = vadd.f32 %v4748_v42, %v4625_v50 }
 0xea1   :  { %v4753_v34 = vadd.f32 %v4752_v0, %v8495_v61 }
 0xea3   :  { %v4759_v24 = vadd.f32 %v7012_v33, %v4753_v34 }
 0xea5   :  { %4760 = vst.msk [vmem:[%s9545_s22] sm:$0xff] %vm314_vm5, %v4759_v24 }
 0xea6   :  { %v4750_v20 = vpop.f32.mrf.mxu1 }

</bundles_post_ra>
